<compile_context>
chip_gen: v7x
topology: tpu7x:2x2x1
jax: 0.10.0
libtpu: 0.0.40
codegen_flags: <defaults>
</compile_context>

<pallas_src>
import math

import jax
import jax.numpy as jnp
import numpy as np
from jax import lax
from jax.experimental import pallas as pl
from jax.experimental.pallas import tpu as pltpu


# ---------------------------------------------------------------------------
# helpers shared by the kernels and the pure-JAX reference
# ---------------------------------------------------------------------------
def _dotf32(a, b):
    """Full-precision f32 matmul with f32 accumulation (kernel + reference)."""
    return jnp.dot(a, b, precision=jax.lax.Precision.HIGHEST,
                   preferred_element_type=jnp.float32)


def _sigmoid(x):
    # numerically stable, exact logistic (no approx reciprocal)
    e = jnp.exp(-jnp.abs(x))
    return jnp.where(x >= 0.0, 1.0 / (1.0 + e), e / (1.0 + e))


def _softplus(x):
    return jnp.maximum(x, 0.0) + jnp.log(1.0 + jnp.exp(-jnp.abs(x)))


# ---------------------------------------------------------------------------
# Pallas kernels
# ---------------------------------------------------------------------------
def _bimamba_kernel(x_ref, win_ref, wconv_ref, bconv_ref, wxp_ref,
                    wdt_ref, bdt_ref, at_ref, dprm_ref, wout_ref,
                    out_ref, conv_carry, h_carry):
    """One Mamba block for one (direction, batch, L-chunk) grid point.

    x_ref    : (1, 1, T, D)            win_ref : (1, D, 2*Di)   [x | z]
    wconv_ref: (1, K, Di)              bconv_ref: (1, 1, Di)
    wxp_ref  : (1, Di, R+2N) [dt|B|C]  wdt_ref : (1, R, Di)     bdt_ref: (1, 1, Di)
    at_ref   : (1, N, Di)  (= A^T)     dprm_ref: (1, 1, Di)     wout_ref: (1, Di, D)
    out_ref  : (1, 1, T, D)
    scratch  : conv_carry (K-1, Di), h_carry (N, Di)  -- carried across chunks
    """
    T = x_ref.shape[2]
    K = wconv_ref.shape[1]
    Di = at_ref.shape[2]
    N = at_ref.shape[1]
    R = wdt_ref.shape[1]

    chunk = pl.program_id(2)

    @pl.when(chunk == 0)
    def _():
        conv_carry[...] = jnp.zeros(conv_carry.shape, conv_carry.dtype)
        h_carry[...] = jnp.zeros(h_carry.shape, h_carry.dtype)

    x = x_ref[0, 0]                                                  # (T, D)

    # fused in_proj: one MXU push for [x | z]
    xz = _dotf32(x, win_ref[0])                                      # (T, 2Di)
    xin = xz[:, :Di]
    z = xz[:, Di:]

    # causal depthwise conv (kernel K); the K-1 rows of left context come from
    # the previous chunk via scratch.  TODO(synk): pltpu.roll + mask variant.
    wconv = wconv_ref[0]                                             # (K, Di)
    xin_ext = jnp.concatenate([conv_carry[...], xin], axis=0)        # (T+K-1, Di)
    conv_carry[...] = xin_ext[T:, :]                                 # context for next chunk
    conv = jnp.broadcast_to(bconv_ref[0], (T, Di))
    for k in range(K):                                               # K = 4, static
        conv = conv + xin_ext[k:k + T, :] * wconv[k:k + 1, :]
    u = conv * _sigmoid(conv)                                        # (T, Di)

    # fused x_proj -> (dt_low | B | C), then dt_proj + softplus
    dbc = _dotf32(u, wxp_ref[0])                                     # (T, R+2N)
    dt_low = dbc[:, :R]
    Bm = dbc[:, R:R + N]
    Cm = dbc[:, R + N:R + 2 * N]
    delta = _softplus(_dotf32(dt_low, wdt_ref[0]) + bdt_ref[0])      # (T, Di)

    # -----------------------------------------------------------------
    # selective scan.  Vectorized precompute (no per-step Python loop, no
    # transpose), then a Hillis-Steele inclusive scan over the chunk:
    # ceil(log2 T) fully vectorized VPU rounds instead of a serial loop.
    # -----------------------------------------------------------------
    At = at_ref[0]                                                   # (N, Di)
    dA = jnp.exp(delta[:, None, :] * At[None, :, :])                 # (T, N, Di)
    dBu = Bm[:, :, None] * (delta * u)[:, None, :]                   # (T, N, Di)

    a_cum = dA
    b_cum = dBu
    off = 1
    while off < T:                                                   # static log2(T) rounds
        a_prev = jnp.concatenate(
            [jnp.ones((off, N, Di), jnp.float32), a_cum[:T - off]], axis=0)
        b_prev = jnp.concatenate(
            [jnp.zeros((off, N, Di), jnp.float32), b_cum[:T - off]], axis=0)
        b_cum = a_cum * b_prev + b_cum
        a_cum = a_cum * a_prev
        off *= 2

    # fold in the state carried from the previous chunk, update the carry
    H = a_cum * h_carry[...][None, :, :] + b_cum                     # (T, N, Di)
    h_carry[...] = H[T - 1]

    # y_t = C_t . h_t : one vectorized multiply + sublane reduce over N
    y_scan = jnp.sum(Cm[:, :, None] * H, axis=1)                     # (T, Di)

    y = (y_scan + u * dprm_ref[0]) * (z * _sigmoid(z))               # D skip + SiLU(z) gate
    out_ref[0, 0] = _dotf32(y, wout_ref[0])                          # (T, D)


def _tail_kernel(y_ref, wf_ref, wb_ref, bias_ref, gw_ref, gb_ref,
                 xres_ref, out_ref):
    """1x1 conv + GLU + GroupNorm(1, C) + residual for one batch element.

    y_ref: (2, 1, L, C) forward / backward mamba outputs (no XLA concat).
    Output is written in (L, C) layout (no in-kernel transpose).
    """
    C = gw_ref.shape[1]
    yf = y_ref[0, 0]                                                 # (L, C)
    yb = y_ref[1, 0]                                                 # (L, C)
    # conv weight split per branch, one fused [a | gate] output
    ag = _dotf32(yf, wf_ref[...]) + _dotf32(yb, wb_ref[...]) + bias_ref[...]
    a = ag[:, :C]
    g = ag[:, C:]
    glu = a * _sigmoid(g)                                            # (L, C)
    # single-pass GroupNorm(1, C) statistics over the (L, C) tile
    mean = jnp.mean(glu)
    var = jnp.mean(glu * glu) - mean * mean
    y = (glu - mean) * lax.rsqrt(var + 1e-5) * gw_ref[...] + gb_ref[...]
    out_ref[0] = xres_ref[0] + y                                     # (L, C)


# ---------------------------------------------------------------------------
# pallas_call wrappers
# ---------------------------------------------------------------------------
def bimamba_apply(x_both, mp, l_chunk=None):
    """x_both: (2, B, L, D) [dir 0 = x, dir 1 = time-flipped x] -> (2, B, L, D)."""
    _, B, L, D = x_both.shape
    K = mp["w_conv"].shape[1]
    Di = mp["w_conv"].shape[2]
    N = mp["At"].shape[1]

    if l_chunk is None:
        # largest divisor of L that is <= 128 and a multiple of 8 (block rule)
        l_chunk = L
        for cand in range(min(L, 128), 7, -1):
            if L % cand == 0 and cand % 8 == 0:
                l_chunk = cand
                break
    assert L % l_chunk == 0, "l_chunk must divide L"
    n_chunks = L // l_chunk

    def dir_spec(arr):
        blk = (1,) + tuple(arr.shape[1:])
        zeros = (0,) * (arr.ndim - 1)
        return pl.BlockSpec(blk, lambda d, b, c, _z=zeros: (d,) + _z)

    io_spec = pl.BlockSpec((1, 1, l_chunk, D), lambda d, b, c: (d, b, c, 0))
    weights = [mp["w_in"], mp["w_conv"], mp["b_conv"], mp["w_xp"],
               mp["w_dt"], mp["b_dt"], mp["At"], mp["Dp"], mp["w_out"]]

    return pl.pallas_call(
        _bimamba_kernel,
        out_shape=jax.ShapeDtypeStruct((2, B, L, D), jnp.float32),
        grid=(2, B, n_chunks),
        in_specs=[io_spec] + [dir_spec(w) for w in weights],
        out_specs=io_spec,
        scratch_shapes=[
            pltpu.VMEM((K - 1, Di), jnp.float32),   # causal-conv left context
            pltpu.VMEM((N, Di), jnp.float32),       # selective-scan state carry
        ],
        compiler_params=pltpu.CompilerParams(
            dimension_semantics=("parallel", "parallel", "arbitrary"),
            # safe on all generations (v7x physical VMEM is 64 MiB); raise
            # toward ~100 MiB on v5e/v6e if larger L-chunks are wanted.
            vmem_limit_bytes=64 * 1024 * 1024),
    )(x_both, *weights)


def tail_apply(y_both, x_res, tp):
    """y_both: (2, B, L, C) mamba outputs, x_res: (B, L, C).  Returns (B, L, C)."""
    _, B, L, C = y_both.shape

    def full_spec(arr):
        zeros = (0,) * arr.ndim
        return pl.BlockSpec(arr.shape, lambda b, _z=zeros: _z)

    return pl.pallas_call(
        _tail_kernel,
        out_shape=jax.ShapeDtypeStruct((B, L, C), jnp.float32),
        grid=(B,),
        in_specs=[
            pl.BlockSpec((2, 1, L, C), lambda b: (0, b, 0, 0)),
            full_spec(tp["w_f"]), full_spec(tp["w_b"]), full_spec(tp["bias"]),
            full_spec(tp["gn_w"]), full_spec(tp["gn_b"]),
            pl.BlockSpec((1, L, C), lambda b: (b, 0, 0)),
        ],
        out_specs=pl.BlockSpec((1, L, C), lambda b: (b, 0, 0)),
        compiler_params=pltpu.CompilerParams(
            dimension_semantics=("parallel",),
            vmem_limit_bytes=64 * 1024 * 1024),
    )(y_both, tp["w_f"], tp["w_b"], tp["bias"], tp["gn_w"], tp["gn_b"], x_res)


def bimamba_layer(x_blc, lp, l_chunk=None):
    """x + BiMambaWrapper(x) with x in (B, L, C) layout."""
    # dir 1 is the time-flipped sequence; like the torch code the backward
    # branch output is NOT flipped back before the channel concat.
    x_both = jnp.stack([x_blc, x_blc[:, ::-1, :]], axis=0)           # (2, B, L, C)
    y_both = bimamba_apply(x_both, lp["mamba"], l_chunk=l_chunk)     # (2, B, L, C)
    return tail_apply(y_both, x_blc, lp["tail"])                     # residual added inside


def resmamba_forward(x_bcl, kparams, l_chunk=None):
    x = jnp.transpose(x_bcl, (0, 2, 1))                              # NCL -> NLC, once
    for lp in kparams:
        x = bimamba_layer(x, lp, l_chunk=l_chunk)
    return jnp.transpose(x, (0, 2, 1))                               # back to NCL, once


# ---------------------------------------------------------------------------
# deterministic parameter initialization (synthetic weights) + kernel packing
# ---------------------------------------------------------------------------
def _normal(key, shape, scale):
    return jax.random.normal(key, shape, jnp.float32) * scale


def init_mamba_params(key, d_model, d_state=16, d_conv=4, expand=2):
    d_inner = expand * d_model
    dt_rank = max(1, math.ceil(d_model / 16))
    ks = jax.random.split(key, 10)
    p = {}
    p["win_x"] = _normal(ks[0], (d_model, d_inner), d_model ** -0.5)
    p["win_z"] = _normal(ks[1], (d_model, d_inner), d_model ** -0.5)
    p["wconvT"] = _normal(ks[2], (d_conv, d_inner), d_conv ** -0.5)   # conv weight (Di,1,K).T
    p["bconv"] = _normal(ks[3], (1, d_inner), 0.05)
    p["wx_dt"] = _normal(ks[4], (d_inner, dt_rank), d_inner ** -0.5)
    p["wx_B"] = _normal(ks[5], (d_inner, d_state), d_inner ** -0.5)
    p["wx_C"] = _normal(ks[6], (d_inner, d_state), d_inner ** -0.5)
    p["wdtT"] = _normal(ks[7], (dt_rank, d_inner), dt_rank ** -0.5)
    # dt bias = inverse-softplus of dt sampled in [1e-3, 1e-1] (standard mamba init)
    dt = jnp.exp(jax.random.uniform(ks[8], (1, d_inner), jnp.float32,
                                    math.log(1e-3), math.log(1e-1)))
    p["bdt"] = dt + jnp.log(-jnp.expm1(-dt))
    a_log = jnp.log(jnp.tile(jnp.arange(1, d_state + 1, dtype=jnp.float32)[None, :],
                             (d_inner, 1)))
    p["A"] = -jnp.exp(a_log)                                          # (Di, N)
    p["D"] = jnp.ones((1, d_inner), jnp.float32)
    p["woutT"] = _normal(ks[9], (d_inner, d_model), d_inner ** -0.5)
    return p


def init_tail_params(key, dim_in, dim_out):
    c_in, c_out = 2 * dim_in, 2 * dim_out
    k0, k1 = jax.random.split(key)
    wc = _normal(k0, (c_out, c_in), c_in ** -0.5)                     # Conv1d weight (out,in,1) squeezed
    bc = _normal(k1, (c_out,), 0.05)
    return {
        "wc_a": jnp.transpose(wc[:dim_out]),                          # (2*dim_in, dim_out)
        "bc_a": bc[:dim_out].reshape(1, dim_out),
        "wc_b": jnp.transpose(wc[dim_out:]),
        "bc_b": bc[dim_out:].reshape(1, dim_out),
        "gn_w": jnp.ones((1, dim_out), jnp.float32),                  # GroupNorm affine
        "gn_b": jnp.zeros((1, dim_out), jnp.float32),
    }


def init_resmamba_params(key, channels, depth=1):
    layers = []
    for i in range(depth):
        kf, kb, kt, key = jax.random.split(jax.random.fold_in(key, i), 4)
        layers.append({
            "forw": init_mamba_params(kf, channels),
            "back": init_mamba_params(kb, channels),
            "tail": init_tail_params(kt, channels, channels),
        })
    return layers


def _prep_mamba(p):
    """Fuse / transpose logical mamba weights into kernel-ready arrays."""
    return {
        "w_in": jnp.concatenate([p["win_x"], p["win_z"]], axis=1),            # (D, 2Di)
        "w_conv": p["wconvT"],                                                # (K, Di)
        "b_conv": p["bconv"],                                                 # (1, Di)
        "w_xp": jnp.concatenate([p["wx_dt"], p["wx_B"], p["wx_C"]], axis=1),  # (Di, R+2N)
        "w_dt": p["wdtT"],                                                    # (R, Di)
        "b_dt": p["bdt"],                                                     # (1, Di)
        "At": jnp.transpose(p["A"]),                                          # (N, Di)
        "Dp": p["D"],                                                         # (1, Di)
        "w_out": p["woutT"],                                                  # (Di, D)
    }


def _prep_tail(tp):
    """Split the 1x1 conv per branch so the kernel needs no (L, 2C) concat."""
    C = tp["gn_w"].shape[1]
    w_f = jnp.concatenate([tp["wc_a"][:C, :], tp["wc_b"][:C, :]], axis=1)     # (C, 2C)
    w_b = jnp.concatenate([tp["wc_a"][C:, :], tp["wc_b"][C:, :]], axis=1)     # (C, 2C)
    bias = jnp.concatenate([tp["bc_a"], tp["bc_b"]], axis=1)                  # (1, 2C)
    return {"w_f": w_f, "w_b": w_b, "bias": bias,
            "gn_w": tp["gn_w"], "gn_b": tp["gn_b"]}


def prepare_params(params):
    """Logical per-layer params -> stacked (forward|backward) kernel params."""
    kparams = []
    for lp in params:
        mf = _prep_mamba(lp["forw"])
        mb = _prep_mamba(lp["back"])
        mp = {k: jnp.stack([mf[k], mb[k]], axis=0) for k in mf}
        kparams.append({"mamba": mp, "tail": _prep_tail(lp["tail"])})
    return kparams


# ---------------------------------------------------------------------------
# pure-JAX reference (for numerical sanity check)
# ---------------------------------------------------------------------------
def _mamba_ref(x_bld, p):
    K = p["wconvT"].shape[0]
    L = x_bld.shape[1]
    xin = _dotf32(x_bld, p["win_x"])
    z = _dotf32(x_bld, p["win_z"])
    xpad = jnp.pad(xin, ((0, 0), (K - 1, 0), (0, 0)))
    conv = sum(xpad[:, k:k + L, :] * p["wconvT"][k][None, None, :] for k in range(K))
    conv = conv + p["bconv"][None]
    u = conv * _sigmoid(conv)
    dt = _dotf32(_dotf32(u, p["wx_dt"]), p["wdtT"]) + p["bdt"][None]
    delta = _softplus(dt)
    Bm = _dotf32(u, p["wx_B"])
    Cm = _dotf32(u, p["wx_C"])
    A = p["A"]
    dA = jnp.exp(delta[..., None] * A[None, None])
    dBu = (delta * u)[..., None] * Bm[:, :, None, :]

    def step(h, inp):
        dA_l, dBu_l, c_l = inp
        h = dA_l * h + dBu_l
        return h, jnp.sum(h * c_l[:, None, :], axis=-1)

    Bsz, Di, N = x_bld.shape[0], A.shape[0], A.shape[1]
    h0 = jnp.zeros((Bsz, Di, N), jnp.float32)
    _, ys = lax.scan(step, h0, (jnp.moveaxis(dA, 1, 0), jnp.moveaxis(dBu, 1, 0),
                                jnp.moveaxis(Cm, 1, 0)))
    ys = jnp.moveaxis(ys, 0, 1)
    y = (ys + u * p["D"][None]) * (z * _sigmoid(z))
    return _dotf32(y, p["woutT"])


def _resmamba_ref(x, params):
    for lp in params:
        x_blc = jnp.transpose(x, (0, 2, 1))
        yf = _mamba_ref(x_blc, lp["forw"])
        yb = _mamba_ref(x_blc[:, ::-1, :], lp["back"])
        ycat = jnp.concatenate([yf, yb], axis=-1)
        tp = lp["tail"]
        a = _dotf32(ycat, tp["wc_a"]) + tp["bc_a"][None]
        g = _dotf32(ycat, tp["wc_b"]) + tp["bc_b"][None]
        glu = a * _sigmoid(g)
        mean = jnp.mean(glu, axis=(1, 2), keepdims=True)
        var = jnp.mean((glu - mean) ** 2, axis=(1, 2), keepdims=True)
        y = (glu - mean) * lax.rsqrt(var + 1e-5) * tp["gn_w"][None] + tp["gn_b"][None]
        x = x + jnp.transpose(y, (0, 2, 1))
    return x


# ---------------------------------------------------------------------------
if __name__ == "__main__":
    B, C, L = 2, 8, 16
    depth = 2
    l_chunk = 8          # two L-chunks: exercises the cross-chunk h / conv carries

    key = jax.random.PRNGKey(0)
    kx, kp = jax.random.split(key)
    x = jax.random.normal(kx, (B, C, L), jnp.float32)
    params = init_resmamba_params(kp, C, depth=depth)
    kparams = prepare_params(params)

    fwd = jax.jit(lambda a, p: resmamba_forward(a, p, l_chunk=l_chunk))
    out = jax.block_until_ready(fwd(x, kparams))
    assert out.shape == (B, C, L)

    ref = jax.block_until_ready(_resmamba_ref(x, params))
    out_np, ref_np = np.asarray(out), np.asarray(ref)
    if not np.allclose(out_np, ref_np, rtol=1e-2, atol=1e-2):
        err = float(np.max(np.abs(out_np - ref_np)))
        raise AssertionError(
            f"Pallas kernel output mismatch vs pure-JAX reference (max abs err {err:.3e})")

    print("KERNEL_OK")
</pallas_src>

<mosaic_0001>
module attributes {stable_mosaic.version = 11 : i64} {
  func.func @_tail_kernel(%arg0: i32, %arg1: memref<2x1x16x8xf32, #tpu.memory_space<vmem>>, %arg2: memref<8x16xf32, #tpu.memory_space<vmem>>, %arg3: memref<8x16xf32, #tpu.memory_space<vmem>>, %arg4: memref<1x16xf32, #tpu.memory_space<vmem>>, %arg5: memref<1x8xf32, #tpu.memory_space<vmem>>, %arg6: memref<1x8xf32, #tpu.memory_space<vmem>>, %arg7: memref<1x16x8xf32, #tpu.memory_space<vmem>>, %arg8: memref<1x16x8xf32, #tpu.memory_space<vmem>>) attributes {dimension_semantics = [#tpu.dimension_semantics<parallel>], iteration_bounds = array<i64: 2>, scalar_prefetch = 0 : i64, scratch_operands = 0 : i64, tpu.core_type = #tpu.core_type<tc>, window_params = [{transform_indices = @transform_0, window_bounds = array<i64: 2, 1, 16, 8>}, {pipeline_mode = #tpu.pipeline_mode<synchronous>, transform_indices = @transform_1, window_bounds = array<i64: 8, 16>}, {pipeline_mode = #tpu.pipeline_mode<synchronous>, transform_indices = @transform_2, window_bounds = array<i64: 8, 16>}, {pipeline_mode = #tpu.pipeline_mode<synchronous>, transform_indices = @transform_3, window_bounds = array<i64: 1, 16>}, {pipeline_mode = #tpu.pipeline_mode<synchronous>, transform_indices = @transform_4, window_bounds = array<i64: 1, 8>}, {pipeline_mode = #tpu.pipeline_mode<synchronous>, transform_indices = @transform_5, window_bounds = array<i64: 1, 8>}, {transform_indices = @transform_6, window_bounds = array<i64: 1, 16, 8>}, {transform_indices = @transform_7, window_bounds = array<i64: 1, 16, 8>}]} {
    %c0 = arith.constant 0 : index
    %c0_0 = arith.constant 0 : index
    %c0_1 = arith.constant 0 : index
    %c0_2 = arith.constant 0 : index
    %0 = vector.load %arg1[%c0, %c0_0, %c0_1, %c0_2] : memref<2x1x16x8xf32, #tpu.memory_space<vmem>>, vector<1x1x16x8xf32>
    %1 = vector.shape_cast %0 : vector<1x1x16x8xf32> to vector<16x8xf32>
    %c1 = arith.constant 1 : index
    %c0_3 = arith.constant 0 : index
    %c0_4 = arith.constant 0 : index
    %c0_5 = arith.constant 0 : index
    %2 = vector.load %arg1[%c1, %c0_3, %c0_4, %c0_5] : memref<2x1x16x8xf32, #tpu.memory_space<vmem>>, vector<1x1x16x8xf32>
    %3 = vector.shape_cast %2 : vector<1x1x16x8xf32> to vector<16x8xf32>
    %c0_6 = arith.constant 0 : index
    %c0_7 = arith.constant 0 : index
    %4 = vector.load %arg2[%c0_6, %c0_7] : memref<8x16xf32, #tpu.memory_space<vmem>>, vector<8x16xf32>
    %cst = arith.constant dense<0.000000e+00> : vector<16x16xf32>
    %5 = tpu.matmul %1, %4, %cst {dimension_numbers = #tpu.dot_dimension_numbers<[1], [0], [0], [1], [0, 0, 1, 1], [], []>, precision = #tpu.contract_precision<fp32>} : vector<16x8xf32>, vector<8x16xf32>, vector<16x16xf32> -> vector<16x16xf32>
    %c0_8 = arith.constant 0 : index
    %c0_9 = arith.constant 0 : index
    %6 = vector.load %arg3[%c0_8, %c0_9] : memref<8x16xf32, #tpu.memory_space<vmem>>, vector<8x16xf32>
    %cst_10 = arith.constant dense<0.000000e+00> : vector<16x16xf32>
    %7 = tpu.matmul %3, %6, %cst_10 {dimension_numbers = #tpu.dot_dimension_numbers<[1], [0], [0], [1], [0, 0, 1, 1], [], []>, precision = #tpu.contract_precision<fp32>} : vector<16x8xf32>, vector<8x16xf32>, vector<16x16xf32> -> vector<16x16xf32>
    %8 = arith.addf %5, %7 : vector<16x16xf32>
    %c0_11 = arith.constant 0 : index
    %c0_12 = arith.constant 0 : index
    %9 = vector.load %arg4[%c0_11, %c0_12] : memref<1x16xf32, #tpu.memory_space<vmem>>, vector<1x16xf32>
    %10 = vector.broadcast %9 : vector<1x16xf32> to vector<16x16xf32>
    %11 = arith.addf %8, %10 : vector<16x16xf32>
    %12 = vector.extract_strided_slice %11 {offsets = [0, 0], sizes = [16, 8], strides = [1, 1]} : vector<16x16xf32> to vector<16x8xf32>
    %13 = vector.extract_strided_slice %11 {offsets = [0, 8], sizes = [16, 8], strides = [1, 1]} : vector<16x16xf32> to vector<16x8xf32>
    %14 = math.absf %13 : vector<16x8xf32>
    %cst_13 = arith.constant 0.000000e+00 : f32
    %15 = vector.broadcast %cst_13 : f32 to vector<16x8xf32>
    %16 = arith.subf %15, %14 : vector<16x8xf32>
    %17 = math.exp %16 : vector<16x8xf32>
    %cst_14 = arith.constant 0.000000e+00 : f32
    %18 = vector.broadcast %cst_14 : f32 to vector<16x8xf32>
    %19 = arith.cmpf oge, %13, %18 : vector<16x8xf32>
    %cst_15 = arith.constant 1.000000e+00 : f32
    %20 = vector.broadcast %cst_15 : f32 to vector<16x8xf32>
    %21 = arith.addf %20, %17 : vector<16x8xf32>
    %cst_16 = arith.constant 1.000000e+00 : f32
    %22 = vector.broadcast %cst_16 : f32 to vector<16x8xf32>
    %23 = arith.divf %22, %21 : vector<16x8xf32>
    %cst_17 = arith.constant 1.000000e+00 : f32
    %24 = vector.broadcast %cst_17 : f32 to vector<16x8xf32>
    %25 = arith.addf %24, %17 : vector<16x8xf32>
    %26 = arith.divf %17, %25 : vector<16x8xf32>
    %27 = arith.select %19, %23, %26 : vector<16x8xi1>, vector<16x8xf32>
    %28 = arith.mulf %12, %27 : vector<16x8xf32>
    %29 = vector.shape_cast %28 : vector<16x8xf32> to vector<1x16x8xf32>
    %cst_18 = arith.constant dense<0.000000e+00> : vector<1xf32>
    %30 = vector.multi_reduction <add>, %29, %cst_18 [1, 2] : vector<1x16x8xf32> to vector<1xf32>
    %31 = vector.shape_cast %30 : vector<1xf32> to vector<1x1x1xf32>
    %32 = vector.extract %31[0, 0, 0] : f32 from vector<1x1x1xf32>
    %cst_19 = arith.constant 1.280000e+02 : f32
    %33 = arith.divf %32, %cst_19 : f32
    %34 = arith.mulf %28, %28 : vector<16x8xf32>
    %35 = vector.shape_cast %34 : vector<16x8xf32> to vector<1x16x8xf32>
    %cst_20 = arith.constant dense<0.000000e+00> : vector<1xf32>
    %36 = vector.multi_reduction <add>, %35, %cst_20 [1, 2] : vector<1x16x8xf32> to vector<1xf32>
    %37 = vector.shape_cast %36 : vector<1xf32> to vector<1x1x1xf32>
    %38 = vector.extract %37[0, 0, 0] : f32 from vector<1x1x1xf32>
    %cst_21 = arith.constant 1.280000e+02 : f32
    %39 = arith.divf %38, %cst_21 : f32
    %40 = arith.mulf %33, %33 : f32
    %41 = arith.subf %39, %40 : f32
    %42 = vector.broadcast %33 : f32 to vector<16x8xf32>
    %43 = arith.subf %28, %42 : vector<16x8xf32>
    %cst_22 = arith.constant 9.99999974E-6 : f32
    %44 = arith.addf %41, %cst_22 : f32
    %45 = math.rsqrt %44 : f32
    %46 = vector.broadcast %45 : f32 to vector<16x8xf32>
    %47 = arith.mulf %43, %46 : vector<16x8xf32>
    %c0_23 = arith.constant 0 : index
    %c0_24 = arith.constant 0 : index
    %48 = vector.load %arg5[%c0_23, %c0_24] : memref<1x8xf32, #tpu.memory_space<vmem>>, vector<1x8xf32>
    %49 = vector.broadcast %48 : vector<1x8xf32> to vector<16x8xf32>
    %50 = arith.mulf %47, %49 : vector<16x8xf32>
    %c0_25 = arith.constant 0 : index
    %c0_26 = arith.constant 0 : index
    %51 = vector.load %arg6[%c0_25, %c0_26] : memref<1x8xf32, #tpu.memory_space<vmem>>, vector<1x8xf32>
    %52 = vector.broadcast %51 : vector<1x8xf32> to vector<16x8xf32>
    %53 = arith.addf %50, %52 : vector<16x8xf32>
    %c0_27 = arith.constant 0 : index
    %c0_28 = arith.constant 0 : index
    %c0_29 = arith.constant 0 : index
    %54 = vector.load %arg7[%c0_27, %c0_28, %c0_29] : memref<1x16x8xf32, #tpu.memory_space<vmem>>, vector<1x16x8xf32>
    %55 = vector.shape_cast %54 : vector<1x16x8xf32> to vector<16x8xf32>
    %56 = arith.addf %55, %53 : vector<16x8xf32>
    %c0_30 = arith.constant 0 : index
    %c0_31 = arith.constant 0 : index
    %c0_32 = arith.constant 0 : index
    %57 = vector.load %arg8[%c0_30, %c0_31, %c0_32] : memref<1x16x8xf32, #tpu.memory_space<vmem>>, vector<1x16x8xf32>
    %58 = vector.shape_cast %57 : vector<1x16x8xf32> to vector<16x8xf32>
    %59 = vector.shape_cast %56 : vector<16x8xf32> to vector<1x16x8xf32>
    tpu.vector_store %arg8[%c0_30, %c0_31, %c0_32], %59 {strides = array<i32>} : memref<1x16x8xf32, #tpu.memory_space<vmem>>, vector<1x16x8xf32>,
    return
  }
  func.func @transform_0(%arg0: i32) -> (i32, i32, i32, i32) {
    %c0_i32 = arith.constant 0 : i32
    %c0_i32_0 = arith.constant 0 : i32
    %c0_i32_1 = arith.constant 0 : i32
    %c0_i32_2 = arith.constant 0 : i32
    return %c0_i32, %arg0, %c0_i32_0, %c0_i32_1 : i32, i32, i32, i32
  }
  func.func @transform_1(%arg0: i32) -> (i32, i32) {
    %c0_i32 = arith.constant 0 : i32
    %c0_i32_0 = arith.constant 0 : i32
    %c0_i32_1 = arith.constant 0 : i32
    return %c0_i32, %c0_i32_0 : i32, i32
  }
  func.func @transform_2(%arg0: i32) -> (i32, i32) {
    %c0_i32 = arith.constant 0 : i32
    %c0_i32_0 = arith.constant 0 : i32
    %c0_i32_1 = arith.constant 0 : i32
    return %c0_i32, %c0_i32_0 : i32, i32
  }
  func.func @transform_3(%arg0: i32) -> (i32, i32) {
    %c0_i32 = arith.constant 0 : i32
    %c0_i32_0 = arith.constant 0 : i32
    %c0_i32_1 = arith.constant 0 : i32
    return %c0_i32, %c0_i32_0 : i32, i32
  }
  func.func @transform_4(%arg0: i32) -> (i32, i32) {
    %c0_i32 = arith.constant 0 : i32
    %c0_i32_0 = arith.constant 0 : i32
    %c0_i32_1 = arith.constant 0 : i32
    return %c0_i32, %c0_i32_0 : i32, i32
  }
  func.func @transform_5(%arg0: i32) -> (i32, i32) {
    %c0_i32 = arith.constant 0 : i32
    %c0_i32_0 = arith.constant 0 : i32
    %c0_i32_1 = arith.constant 0 : i32
    return %c0_i32, %c0_i32_0 : i32, i32
  }
  func.func @transform_6(%arg0: i32) -> (i32, i32, i32) {
    %c0_i32 = arith.constant 0 : i32
    %c0_i32_0 = arith.constant 0 : i32
    %c0_i32_1 = arith.constant 0 : i32
    return %arg0, %c0_i32, %c0_i32_0 : i32, i32, i32
  }
  func.func @transform_7(%arg0: i32) -> (i32, i32, i32) {
    %c0_i32 = arith.constant 0 : i32
    %c0_i32_0 = arith.constant 0 : i32
    %c0_i32_1 = arith.constant 0 : i32
    return %arg0, %c0_i32, %c0_i32_0 : i32, i32, i32
  }
}

module attributes {stable_mosaic.version = 11 : i64} {
  func.func @_bimamba_kernel(%arg0: i32, %arg1: i32, %arg2: i32, %arg3: memref<1x1x8x8xf32, #tpu.memory_space<vmem>>, %arg4: memref<1x8x32xf32, #tpu.memory_space<vmem>>, %arg5: memref<1x4x16xf32, #tpu.memory_space<vmem>>, %arg6: memref<1x1x16xf32, #tpu.memory_space<vmem>>, %arg7: memref<1x16x33xf32, #tpu.memory_space<vmem>>, %arg8: memref<1x1x16xf32, #tpu.memory_space<vmem>>, %arg9: memref<1x1x16xf32, #tpu.memory_space<vmem>>, %arg10: memref<1x16x16xf32, #tpu.memory_space<vmem>>, %arg11: memref<1x1x16xf32, #tpu.memory_space<vmem>>, %arg12: memref<1x16x8xf32, #tpu.memory_space<vmem>>, %arg13: memref<1x1x8x8xf32, #tpu.memory_space<vmem>>, %arg14: memref<3x16xf32, #tpu.memory_space<vmem>>, %arg15: memref<16x16xf32, #tpu.memory_space<vmem>>) attributes {dimension_semantics = [#tpu.dimension_semantics<parallel>, #tpu.dimension_semantics<parallel>, #tpu.dimension_semantics<arbitrary>], iteration_bounds = array<i64: 2, 2, 2>, scalar_prefetch = 0 : i64, scratch_operands = 2 : i64, tpu.core_type = #tpu.core_type<tc>, window_params = [{transform_indices = @transform_0, window_bounds = array<i64: 1, 1, 8, 8>}, {transform_indices = @transform_1, window_bounds = array<i64: 1, 8, 32>}, {transform_indices = @transform_2, window_bounds = array<i64: 1, 4, 16>}, {transform_indices = @transform_3, window_bounds = array<i64: 1, 1, 16>}, {transform_indices = @transform_4, window_bounds = array<i64: 1, 16, 33>}, {transform_indices = @transform_5, window_bounds = array<i64: 1, 1, 16>}, {transform_indices = @transform_6, window_bounds = array<i64: 1, 1, 16>}, {transform_indices = @transform_7, window_bounds = array<i64: 1, 16, 16>}, {transform_indices = @transform_8, window_bounds = array<i64: 1, 1, 16>}, {transform_indices = @transform_9, window_bounds = array<i64: 1, 16, 8>}, {transform_indices = @transform_10, window_bounds = array<i64: 1, 1, 8, 8>}]} {
    %c0_i32 = arith.constant 0 : i32
    %0 = arith.cmpi eq, %arg2, %c0_i32 : i32
    %1 = arith.extui %0 : i1 to i32
    %c0_i32_0 = arith.constant 0 : i32
    %2 = arith.cmpi ne, %1, %c0_i32_0 : i32
    scf.if %2 {
      %cst_66 = arith.constant 0.000000e+00 : f32
      %158 = vector.broadcast %cst_66 : f32 to vector<3x16xf32>
      %c0_67 = arith.constant 0 : index
      %c0_68 = arith.constant 0 : index
      %159 = vector.load %arg14[%c0_67, %c0_68] : memref<3x16xf32, #tpu.memory_space<vmem>>, vector<3x16xf32>
      tpu.vector_store %arg14[%c0_67, %c0_68], %158 {strides = array<i32>} : memref<3x16xf32, #tpu.memory_space<vmem>>, vector<3x16xf32>,
      %cst_69 = arith.constant 0.000000e+00 : f32
      %160 = vector.broadcast %cst_69 : f32 to vector<16x16xf32>
      %c0_70 = arith.constant 0 : index
      %c0_71 = arith.constant 0 : index
      %161 = vector.load %arg15[%c0_70, %c0_71] : memref<16x16xf32, #tpu.memory_space<vmem>>, vector<16x16xf32>
      tpu.vector_store %arg15[%c0_70, %c0_71], %160 {strides = array<i32>} : memref<16x16xf32, #tpu.memory_space<vmem>>, vector<16x16xf32>,
    } else {
    }
    %c0 = arith.constant 0 : index
    %c0_1 = arith.constant 0 : index
    %c0_2 = arith.constant 0 : index
    %c0_3 = arith.constant 0 : index
    %3 = vector.load %arg3[%c0, %c0_1, %c0_2, %c0_3] : memref<1x1x8x8xf32, #tpu.memory_space<vmem>>, vector<1x1x8x8xf32>
    %4 = vector.shape_cast %3 : vector<1x1x8x8xf32> to vector<8x8xf32>
    %c0_4 = arith.constant 0 : index
    %c0_5 = arith.constant 0 : index
    %c0_6 = arith.constant 0 : index
    %5 = vector.load %arg4[%c0_4, %c0_5, %c0_6] : memref<1x8x32xf32, #tpu.memory_space<vmem>>, vector<1x8x32xf32>
    %6 = vector.shape_cast %5 : vector<1x8x32xf32> to vector<8x32xf32>
    %cst = arith.constant dense<0.000000e+00> : vector<8x32xf32>
    %7 = tpu.matmul %4, %6, %cst {dimension_numbers = #tpu.dot_dimension_numbers<[1], [0], [0], [1], [0, 0, 1, 1], [], []>, precision = #tpu.contract_precision<fp32>} : vector<8x8xf32>, vector<8x32xf32>, vector<8x32xf32> -> vector<8x32xf32>
    %8 = vector.extract_strided_slice %7 {offsets = [0, 0], sizes = [8, 16], strides = [1, 1]} : vector<8x32xf32> to vector<8x16xf32>
    %9 = vector.extract_strided_slice %7 {offsets = [0, 16], sizes = [8, 16], strides = [1, 1]} : vector<8x32xf32> to vector<8x16xf32>
    %c0_7 = arith.constant 0 : index
    %c0_8 = arith.constant 0 : index
    %c0_9 = arith.constant 0 : index
    %10 = vector.load %arg5[%c0_7, %c0_8, %c0_9] : memref<1x4x16xf32, #tpu.memory_space<vmem>>, vector<1x4x16xf32>
    %11 = vector.shape_cast %10 : vector<1x4x16xf32> to vector<4x16xf32>
    %c0_10 = arith.constant 0 : index
    %c0_11 = arith.constant 0 : index
    %12 = vector.load %arg14[%c0_10, %c0_11] : memref<3x16xf32, #tpu.memory_space<vmem>>, vector<3x16xf32>
    %13 = tpu.concatenate %12, %8 in 0 : vector<3x16xf32>, vector<8x16xf32> -> vector<11x16xf32>
    %14 = vector.extract_strided_slice %13 {offsets = [8, 0], sizes = [3, 16], strides = [1, 1]} : vector<11x16xf32> to vector<3x16xf32>
    %c0_12 = arith.constant 0 : index
    %c0_13 = arith.constant 0 : index
    %15 = vector.load %arg14[%c0_12, %c0_13] : memref<3x16xf32, #tpu.memory_space<vmem>>, vector<3x16xf32>
    tpu.vector_store %arg14[%c0_12, %c0_13], %14 {strides = array<i32>} : memref<3x16xf32, #tpu.memory_space<vmem>>, vector<3x16xf32>,
    %c0_14 = arith.constant 0 : index
    %c0_15 = arith.constant 0 : index
    %c0_16 = arith.constant 0 : index
    %16 = vector.load %arg6[%c0_14, %c0_15, %c0_16] : memref<1x1x16xf32, #tpu.memory_space<vmem>>, vector<1x1x16xf32>
    %17 = vector.shape_cast %16 : vector<1x1x16xf32> to vector<1x16xf32>
    %18 = vector.shape_cast %17 : vector<1x16xf32> to vector<1x16xf32>
    %19 = vector.broadcast %18 : vector<1x16xf32> to vector<8x16xf32>
    %20 = vector.extract_strided_slice %13 {offsets = [0, 0], sizes = [8, 16], strides = [1, 1]} : vector<11x16xf32> to vector<8x16xf32>
    %21 = vector.extract_strided_slice %11 {offsets = [0, 0], sizes = [1, 16], strides = [1, 1]} : vector<4x16xf32> to vector<1x16xf32>
    %22 = vector.broadcast %21 : vector<1x16xf32> to vector<8x16xf32>
    %23 = arith.mulf %20, %22 : vector<8x16xf32>
    %24 = arith.addf %19, %23 : vector<8x16xf32>
    %25 = vector.extract_strided_slice %13 {offsets = [1, 0], sizes = [8, 16], strides = [1, 1]} : vector<11x16xf32> to vector<8x16xf32>
    %26 = vector.extract_strided_slice %11 {offsets = [1, 0], sizes = [1, 16], strides = [1, 1]} : vector<4x16xf32> to vector<1x16xf32>
    %27 = vector.broadcast %26 : vector<1x16xf32> to vector<8x16xf32>
    %28 = arith.mulf %25, %27 : vector<8x16xf32>
    %29 = arith.addf %24, %28 : vector<8x16xf32>
    %30 = vector.extract_strided_slice %13 {offsets = [2, 0], sizes = [8, 16], strides = [1, 1]} : vector<11x16xf32> to vector<8x16xf32>
    %31 = vector.extract_strided_slice %11 {offsets = [2, 0], sizes = [1, 16], strides = [1, 1]} : vector<4x16xf32> to vector<1x16xf32>
    %32 = vector.broadcast %31 : vector<1x16xf32> to vector<8x16xf32>
    %33 = arith.mulf %30, %32 : vector<8x16xf32>
    %34 = arith.addf %29, %33 : vector<8x16xf32>
    %35 = vector.extract_strided_slice %13 {offsets = [3, 0], sizes = [8, 16], strides = [1, 1]} : vector<11x16xf32> to vector<8x16xf32>
    %36 = vector.extract_strided_slice %11 {offsets = [3, 0], sizes = [1, 16], strides = [1, 1]} : vector<4x16xf32> to vector<1x16xf32>
    %37 = vector.broadcast %36 : vector<1x16xf32> to vector<8x16xf32>
    %38 = arith.mulf %35, %37 : vector<8x16xf32>
    %39 = arith.addf %34, %38 : vector<8x16xf32>
    %40 = math.absf %39 : vector<8x16xf32>
    %cst_17 = arith.constant 0.000000e+00 : f32
    %41 = vector.broadcast %cst_17 : f32 to vector<8x16xf32>
    %42 = arith.subf %41, %40 : vector<8x16xf32>
    %43 = math.exp %42 : vector<8x16xf32>
    %cst_18 = arith.constant 0.000000e+00 : f32
    %44 = vector.broadcast %cst_18 : f32 to vector<8x16xf32>
    %45 = arith.cmpf oge, %39, %44 : vector<8x16xf32>
    %cst_19 = arith.constant 1.000000e+00 : f32
    %46 = vector.broadcast %cst_19 : f32 to vector<8x16xf32>
    %47 = arith.addf %46, %43 : vector<8x16xf32>
    %cst_20 = arith.constant 1.000000e+00 : f32
    %48 = vector.broadcast %cst_20 : f32 to vector<8x16xf32>
    %49 = arith.divf %48, %47 : vector<8x16xf32>
    %cst_21 = arith.constant 1.000000e+00 : f32
    %50 = vector.broadcast %cst_21 : f32 to vector<8x16xf32>
    %51 = arith.addf %50, %43 : vector<8x16xf32>
    %52 = arith.divf %43, %51 : vector<8x16xf32>
    %53 = arith.select %45, %49, %52 : vector<8x16xi1>, vector<8x16xf32>
    %54 = arith.mulf %39, %53 : vector<8x16xf32>
    %c0_22 = arith.constant 0 : index
    %c0_23 = arith.constant 0 : index
    %c0_24 = arith.constant 0 : index
    %55 = vector.load %arg7[%c0_22, %c0_23, %c0_24] : memref<1x16x33xf32, #tpu.memory_space<vmem>>, vector<1x16x33xf32>
    %56 = vector.shape_cast %55 : vector<1x16x33xf32> to vector<16x33xf32>
    %cst_25 = arith.constant dense<0.000000e+00> : vector<8x33xf32>
    %57 = tpu.matmul %54, %56, %cst_25 {dimension_numbers = #tpu.dot_dimension_numbers<[1], [0], [0], [1], [0, 0, 1, 1], [], []>, precision = #tpu.contract_precision<fp32>} : vector<8x16xf32>, vector<16x33xf32>, vector<8x33xf32> -> vector<8x33xf32>
    %58 = vector.extract_strided_slice %57 {offsets = [0, 0], sizes = [8, 1], strides = [1, 1]} : vector<8x33xf32> to vector<8x1xf32>
    %59 = vector.extract_strided_slice %57 {offsets = [0, 1], sizes = [8, 16], strides = [1, 1]} : vector<8x33xf32> to vector<8x16xf32>
    %60 = vector.extract_strided_slice %57 {offsets = [0, 17], sizes = [8, 16], strides = [1, 1]} : vector<8x33xf32> to vector<8x16xf32>
    %c0_26 = arith.constant 0 : index
    %c0_27 = arith.constant 0 : index
    %c0_28 = arith.constant 0 : index
    %61 = vector.load %arg8[%c0_26, %c0_27, %c0_28] : memref<1x1x16xf32, #tpu.memory_space<vmem>>, vector<1x1x16xf32>
    %62 = vector.shape_cast %61 : vector<1x1x16xf32> to vector<1x16xf32>
    %cst_29 = arith.constant dense<0.000000e+00> : vector<8x16xf32>
    %63 = tpu.matmul %58, %62, %cst_29 {dimension_numbers = #tpu.dot_dimension_numbers<[1], [0], [0], [1], [0, 0, 1, 1], [], []>, precision = #tpu.contract_precision<fp32>} : vector<8x1xf32>, vector<1x16xf32>, vector<8x16xf32> -> vector<8x16xf32>
    %c0_30 = arith.constant 0 : index
    %c0_31 = arith.constant 0 : index
    %c0_32 = arith.constant 0 : index
    %64 = vector.load %arg9[%c0_30, %c0_31, %c0_32] : memref<1x1x16xf32, #tpu.memory_space<vmem>>, vector<1x1x16xf32>
    %65 = vector.shape_cast %64 : vector<1x1x16xf32> to vector<1x16xf32>
    %66 = vector.broadcast %65 : vector<1x16xf32> to vector<8x16xf32>
    %67 = arith.addf %63, %66 : vector<8x16xf32>
    %cst_33 = arith.constant 0.000000e+00 : f32
    %68 = vector.broadcast %cst_33 : f32 to vector<8x16xf32>
    %69 = arith.maximumf %67, %68 : vector<8x16xf32>
    %70 = math.absf %67 : vector<8x16xf32>
    %cst_34 = arith.constant 0.000000e+00 : f32
    %71 = vector.broadcast %cst_34 : f32 to vector<8x16xf32>
    %72 = arith.subf %71, %70 : vector<8x16xf32>
    %73 = math.exp %72 : vector<8x16xf32>
    %cst_35 = arith.constant 1.000000e+00 : f32
    %74 = vector.broadcast %cst_35 : f32 to vector<8x16xf32>
    %75 = arith.addf %74, %73 : vector<8x16xf32>
    %76 = math.log %75 : vector<8x16xf32>
    %77 = arith.addf %69, %76 : vector<8x16xf32>
    %c0_36 = arith.constant 0 : index
    %c0_37 = arith.constant 0 : index
    %c0_38 = arith.constant 0 : index
    %78 = vector.load %arg10[%c0_36, %c0_37, %c0_38] : memref<1x16x16xf32, #tpu.memory_space<vmem>>, vector<1x16x16xf32>
    %79 = vector.shape_cast %78 : vector<1x16x16xf32> to vector<16x16xf32>
    %80 = vector.shape_cast %77 : vector<8x16xf32> to vector<8x1x16xf32>
    %81 = vector.shape_cast %79 : vector<16x16xf32> to vector<1x16x16xf32>
    %82 = vector.broadcast %80 : vector<8x1x16xf32> to vector<8x16x16xf32>
    %83 = vector.broadcast %81 : vector<1x16x16xf32> to vector<8x16x16xf32>
    %84 = arith.mulf %82, %83 : vector<8x16x16xf32>
    %85 = math.exp %84 : vector<8x16x16xf32>
    %86 = vector.shape_cast %59 : vector<8x16xf32> to vector<8x16x1xf32>
    %87 = arith.mulf %77, %54 : vector<8x16xf32>
    %88 = vector.shape_cast %87 : vector<8x16xf32> to vector<8x1x16xf32>
    %89 = vector.broadcast %86 : vector<8x16x1xf32> to vector<8x16x16xf32>
    %90 = vector.broadcast %88 : vector<8x1x16xf32> to vector<8x16x16xf32>
    %91 = arith.mulf %89, %90 : vector<8x16x16xf32>
    %cst_39 = arith.constant 1.000000e+00 : f32
    %92 = vector.broadcast %cst_39 : f32 to vector<1x16x16xf32>
    %93 = vector.extract_strided_slice %85 {offsets = [0, 0, 0], sizes = [7, 16, 16], strides = [1, 1, 1]} : vector<8x16x16xf32> to vector<7x16x16xf32>
    %94 = tpu.concatenate %92, %93 in 0 : vector<1x16x16xf32>, vector<7x16x16xf32> -> vector<8x16x16xf32>
    %cst_40 = arith.constant 0.000000e+00 : f32
    %95 = vector.broadcast %cst_40 : f32 to vector<1x16x16xf32>
    %96 = vector.extract_strided_slice %91 {offsets = [0, 0, 0], sizes = [7, 16, 16], strides = [1, 1, 1]} : vector<8x16x16xf32> to vector<7x16x16xf32>
    %97 = tpu.concatenate %95, %96 in 0 : vector<1x16x16xf32>, vector<7x16x16xf32> -> vector<8x16x16xf32>
    %98 = arith.mulf %85, %97 : vector<8x16x16xf32>
    %99 = arith.addf %98, %91 : vector<8x16x16xf32>
    %100 = arith.mulf %85, %94 : vector<8x16x16xf32>
    %cst_41 = arith.constant 1.000000e+00 : f32
    %101 = vector.broadcast %cst_41 : f32 to vector<2x16x16xf32>
    %102 = vector.extract_strided_slice %100 {offsets = [0, 0, 0], sizes = [6, 16, 16], strides = [1, 1, 1]} : vector<8x16x16xf32> to vector<6x16x16xf32>
    %103 = tpu.concatenate %101, %102 in 0 : vector<2x16x16xf32>, vector<6x16x16xf32> -> vector<8x16x16xf32>
    %cst_42 = arith.constant 0.000000e+00 : f32
    %104 = vector.broadcast %cst_42 : f32 to vector<2x16x16xf32>
    %105 = vector.extract_strided_slice %99 {offsets = [0, 0, 0], sizes = [6, 16, 16], strides = [1, 1, 1]} : vector<8x16x16xf32> to vector<6x16x16xf32>
    %106 = tpu.concatenate %104, %105 in 0 : vector<2x16x16xf32>, vector<6x16x16xf32> -> vector<8x16x16xf32>
    %107 = arith.mulf %100, %106 : vector<8x16x16xf32>
    %108 = arith.addf %107, %99 : vector<8x16x16xf32>
    %109 = arith.mulf %100, %103 : vector<8x16x16xf32>
    %cst_43 = arith.constant 1.000000e+00 : f32
    %110 = vector.broadcast %cst_43 : f32 to vector<4x16x16xf32>
    %111 = vector.extract_strided_slice %109 {offsets = [0, 0, 0], sizes = [4, 16, 16], strides = [1, 1, 1]} : vector<8x16x16xf32> to vector<4x16x16xf32>
    %112 = tpu.concatenate %110, %111 in 0 : vector<4x16x16xf32>, vector<4x16x16xf32> -> vector<8x16x16xf32>
    %cst_44 = arith.constant 0.000000e+00 : f32
    %113 = vector.broadcast %cst_44 : f32 to vector<4x16x16xf32>
    %114 = vector.extract_strided_slice %108 {offsets = [0, 0, 0], sizes = [4, 16, 16], strides = [1, 1, 1]} : vector<8x16x16xf32> to vector<4x16x16xf32>
    %115 = tpu.concatenate %113, %114 in 0 : vector<4x16x16xf32>, vector<4x16x16xf32> -> vector<8x16x16xf32>
    %116 = arith.mulf %109, %115 : vector<8x16x16xf32>
    %117 = arith.addf %116, %108 : vector<8x16x16xf32>
    %118 = arith.mulf %109, %112 : vector<8x16x16xf32>
    %c0_45 = arith.constant 0 : index
    %c0_46 = arith.constant 0 : index
    %119 = vector.load %arg15[%c0_45, %c0_46] : memref<16x16xf32, #tpu.memory_space<vmem>>, vector<16x16xf32>
    %120 = vector.shape_cast %119 : vector<16x16xf32> to vector<1x16x16xf32>
    %121 = vector.broadcast %120 : vector<1x16x16xf32> to vector<8x16x16xf32>
    %122 = arith.mulf %118, %121 : vector<8x16x16xf32>
    %123 = arith.addf %122, %117 : vector<8x16x16xf32>
    %124 = vector.extract_strided_slice %123 {offsets = [7, 0, 0], sizes = [1, 16, 16], strides = [1, 1, 1]} : vector<8x16x16xf32> to vector<1x16x16xf32>
    %125 = vector.shape_cast %124 : vector<1x16x16xf32> to vector<16x16xf32>
    %c0_47 = arith.constant 0 : index
    %c0_48 = arith.constant 0 : index
    %126 = vector.load %arg15[%c0_47, %c0_48] : memref<16x16xf32, #tpu.memory_space<vmem>>, vector<16x16xf32>
    tpu.vector_store %arg15[%c0_47, %c0_48], %125 {strides = array<i32>} : memref<16x16xf32, #tpu.memory_space<vmem>>, vector<16x16xf32>,
    %127 = vector.shape_cast %60 : vector<8x16xf32> to vector<8x16x1xf32>
    %128 = vector.broadcast %127 : vector<8x16x1xf32> to vector<8x16x16xf32>
    %129 = arith.mulf %128, %123 : vector<8x16x16xf32>
    %cst_49 = arith.constant dense<0.000000e+00> : vector<8x16xf32>
    %130 = vector.multi_reduction <add>, %129, %cst_49 [1] : vector<8x16x16xf32> to vector<8x16xf32>
    %c0_50 = arith.constant 0 : index
    %c0_51 = arith.constant 0 : index
    %c0_52 = arith.constant 0 : index
    %131 = vector.load %arg11[%c0_50, %c0_51, %c0_52] : memref<1x1x16xf32, #tpu.memory_space<vmem>>, vector<1x1x16xf32>
    %132 = vector.shape_cast %131 : vector<1x1x16xf32> to vector<1x16xf32>
    %133 = vector.broadcast %132 : vector<1x16xf32> to vector<8x16xf32>
    %134 = arith.mulf %54, %133 : vector<8x16xf32>
    %135 = arith.addf %130, %134 : vector<8x16xf32>
    %136 = math.absf %9 : vector<8x16xf32>
    %cst_53 = arith.constant 0.000000e+00 : f32
    %137 = vector.broadcast %cst_53 : f32 to vector<8x16xf32>
    %138 = arith.subf %137, %136 : vector<8x16xf32>
    %139 = math.exp %138 : vector<8x16xf32>
    %cst_54 = arith.constant 0.000000e+00 : f32
    %140 = vector.broadcast %cst_54 : f32 to vector<8x16xf32>
    %141 = arith.cmpf oge, %9, %140 : vector<8x16xf32>
    %cst_55 = arith.constant 1.000000e+00 : f32
    %142 = vector.broadcast %cst_55 : f32 to vector<8x16xf32>
    %143 = arith.addf %142, %139 : vector<8x16xf32>
    %cst_56 = arith.constant 1.000000e+00 : f32
    %144 = vector.broadcast %cst_56 : f32 to vector<8x16xf32>
    %145 = arith.divf %144, %143 : vector<8x16xf32>
    %cst_57 = arith.constant 1.000000e+00 : f32
    %146 = vector.broadcast %cst_57 : f32 to vector<8x16xf32>
    %147 = arith.addf %146, %139 : vector<8x16xf32>
    %148 = arith.divf %139, %147 : vector<8x16xf32>
    %149 = arith.select %141, %145, %148 : vector<8x16xi1>, vector<8x16xf32>
    %150 = arith.mulf %9, %149 : vector<8x16xf32>
    %151 = arith.mulf %135, %150 : vector<8x16xf32>
    %c0_58 = arith.constant 0 : index
    %c0_59 = arith.constant 0 : index
    %c0_60 = arith.constant 0 : index
    %152 = vector.load %arg12[%c0_58, %c0_59, %c0_60] : memref<1x16x8xf32, #tpu.memory_space<vmem>>, vector<1x16x8xf32>
    %153 = vector.shape_cast %152 : vector<1x16x8xf32> to vector<16x8xf32>
    %cst_61 = arith.constant dense<0.000000e+00> : vector<8x8xf32>
    %154 = tpu.matmul %151, %153, %cst_61 {dimension_numbers = #tpu.dot_dimension_numbers<[1], [0], [0], [1], [0, 0, 1, 1], [], []>, precision = #tpu.contract_precision<fp32>} : vector<8x16xf32>, vector<16x8xf32>, vector<8x8xf32> -> vector<8x8xf32>
    %c0_62 = arith.constant 0 : index
    %c0_63 = arith.constant 0 : index
    %c0_64 = arith.constant 0 : index
    %c0_65 = arith.constant 0 : index
    %155 = vector.load %arg13[%c0_62, %c0_63, %c0_64, %c0_65] : memref<1x1x8x8xf32, #tpu.memory_space<vmem>>, vector<1x1x8x8xf32>
    %156 = vector.shape_cast %155 : vector<1x1x8x8xf32> to vector<8x8xf32>
    %157 = vector.shape_cast %154 : vector<8x8xf32> to vector<1x1x8x8xf32>
    tpu.vector_store %arg13[%c0_62, %c0_63, %c0_64, %c0_65], %157 {strides = array<i32>} : memref<1x1x8x8xf32, #tpu.memory_space<vmem>>, vector<1x1x8x8xf32>,
    return
  }
  func.func @transform_0(%arg0: i32, %arg1: i32, %arg2: i32) -> (i32, i32, i32, i32) {
    %c0_i32 = arith.constant 0 : i32
    %c0_i32_0 = arith.constant 0 : i32
    return %arg0, %arg1, %arg2, %c0_i32 : i32, i32, i32, i32
  }
  func.func @transform_1(%arg0: i32, %arg1: i32, %arg2: i32) -> (i32, i32, i32) {
    %c0_i32 = arith.constant 0 : i32
    %c0_i32_0 = arith.constant 0 : i32
    %c0_i32_1 = arith.constant 0 : i32
    return %arg0, %c0_i32, %c0_i32_0 : i32, i32, i32
  }
  func.func @transform_2(%arg0: i32, %arg1: i32, %arg2: i32) -> (i32, i32, i32) {
    %c0_i32 = arith.constant 0 : i32
    %c0_i32_0 = arith.constant 0 : i32
    %c0_i32_1 = arith.constant 0 : i32
    return %arg0, %c0_i32, %c0_i32_0 : i32, i32, i32
  }
  func.func @transform_3(%arg0: i32, %arg1: i32, %arg2: i32) -> (i32, i32, i32) {
    %c0_i32 = arith.constant 0 : i32
    %c0_i32_0 = arith.constant 0 : i32
    %c0_i32_1 = arith.constant 0 : i32
    return %arg0, %c0_i32, %c0_i32_0 : i32, i32, i32
  }
  func.func @transform_4(%arg0: i32, %arg1: i32, %arg2: i32) -> (i32, i32, i32) {
    %c0_i32 = arith.constant 0 : i32
    %c0_i32_0 = arith.constant 0 : i32
    %c0_i32_1 = arith.constant 0 : i32
    return %arg0, %c0_i32, %c0_i32_0 : i32, i32, i32
  }
  func.func @transform_5(%arg0: i32, %arg1: i32, %arg2: i32) -> (i32, i32, i32) {
    %c0_i32 = arith.constant 0 : i32
    %c0_i32_0 = arith.constant 0 : i32
    %c0_i32_1 = arith.constant 0 : i32
    return %arg0, %c0_i32, %c0_i32_0 : i32, i32, i32
  }
  func.func @transform_6(%arg0: i32, %arg1: i32, %arg2: i32) -> (i32, i32, i32) {
    %c0_i32 = arith.constant 0 : i32
    %c0_i32_0 = arith.constant 0 : i32
    %c0_i32_1 = arith.constant 0 : i32
    return %arg0, %c0_i32, %c0_i32_0 : i32, i32, i32
  }
  func.func @transform_7(%arg0: i32, %arg1: i32, %arg2: i32) -> (i32, i32, i32) {
    %c0_i32 = arith.constant 0 : i32
    %c0_i32_0 = arith.constant 0 : i32
    %c0_i32_1 = arith.constant 0 : i32
    return %arg0, %c0_i32, %c0_i32_0 : i32, i32, i32
  }
  func.func @transform_8(%arg0: i32, %arg1: i32, %arg2: i32) -> (i32, i32, i32) {
    %c0_i32 = arith.constant 0 : i32
    %c0_i32_0 = arith.constant 0 : i32
    %c0_i32_1 = arith.constant 0 : i32
    return %arg0, %c0_i32, %c0_i32_0 : i32, i32, i32
  }
  func.func @transform_9(%arg0: i32, %arg1: i32, %arg2: i32) -> (i32, i32, i32) {
    %c0_i32 = arith.constant 0 : i32
    %c0_i32_0 = arith.constant 0 : i32
    %c0_i32_1 = arith.constant 0 : i32
    return %arg0, %c0_i32, %c0_i32_0 : i32, i32, i32
  }
  func.func @transform_10(%arg0: i32, %arg1: i32, %arg2: i32) -> (i32, i32, i32, i32) {
    %c0_i32 = arith.constant 0 : i32
    %c0_i32_0 = arith.constant 0 : i32
    return %arg0, %arg1, %arg2, %c0_i32 : i32, i32, i32, i32
  }
}

</mosaic_0001>

<bundles_post_ra>
// kernel: _lambda_.5
= control target key start
LH: loop header
LB: loop body
LE: loop exit
PB: predicated region body
PF: predicated region fallthrough
CT: control target
= control target key end

     0   :  { %s2650_s0 = inlined_call_operand.hbm [shape: f32[2,2,16,8], index: 0, kind: input, shape index: {}]   ;;  %s2651_s1 = inlined_call_operand.hbm [shape: f32[8,16], index: 1, kind: input, shape index: {}]   ;;  %s2652_s2 = inlined_call_operand.hbm [shape: f32[8,16], index: 2, kind: input, shape index: {}]   ;;  %s2653_s3 = inlined_call_operand.hbm [shape: f32[1,16], index: 3, kind: input, shape index: {}]   ;;  %s2654_s4 = inlined_call_operand.hbm [shape: f32[1,8], index: 4, kind: input, shape index: {}]   ;;  %s2655_s5 = inlined_call_operand.hbm [shape: f32[1,8], index: 5, kind: input, shape index: {}]   ;;  %s2656_s6 = inlined_call_operand.hbm [shape: f32[2,16,8], index: 6, kind: input, shape index: {}]   ;;  %s2657_s7 = inlined_call_operand.hbm [shape: f32[2,16,8], index: 7, kind: output, shape index: {}]  }
   0x1   :  { %2666 = sst [smem:[#allocation27_spill]] %s2650_s0 }
   0x2   :  { %2667 = sst [smem:[#allocation28_spill]] %s2651_s1 }
   0x3   :  { %12 = vsyncpa [#allocation3], 0 }
   0x4   :  { %14 = vsyncpa [#allocation3 + $0x1], 0 }
   0x5   :  { %15 = vsyncpa [#allocation6], 0 }
   0x6   :  { %16 = vsyncpa [#allocation9], 0 }
   0x7   :  { %17 = vsyncpa [#allocation12], 0 }
   0x8   :  { %18 = vsyncpa [#allocation4], 0 }
   0x9   :  { %20 = vsyncpa [#allocation4 + $0x1], 0  ;;  %s2276_s24 = smov 0   ;;  %s2278_s25 = smov 0  }
   0xa   :  { %s2280_s26 = smov 0   ;;  %s2282_s27 = smov 0  }
   0xb LB: > { %s2297_s28 = sadd.s32 4294967295, %s2216_s27   ;;  %s1682_s29 = sadd.s32 4294967294, %s2216_s27   ;;  %s2216_s27 = sphi %s2282_s27, %s2692_s27   ;;  %s2212_s26 = sphi %s2280_s26, %s2696_s26   ;;  %s2208_s25 = sphi %s2278_s25, %s2695_s25   ;;  %s2204_s24 = sphi %s2276_s24, %s2694_s24  }
   0xc   : > { %s2301_s30 = sadd.s32 1, %s2216_s27   ;;  %s33_s8 = sadd.s32 1, %s2212_s26 }
   0xd   : > { %2668 = sst [smem:[#allocation24_spill]] %s2301_s30  ;;  %s30_s9 = ssub.s32 %s2216_s27, %s2301_s30 }
   0xe   : > { %p40_p0 = scmp.ne.s32.totalorder %s2212_s26, %s2208_s25  ;;  %p31_p1 = scmp.eq.s32.totalorder %s30_s9, 0 }
   0xf   : > { %p41_p2 = scmp.eq.s32.totalorder %s2216_s27, 0  ;;  %p46_p3 = scmp.ne.s32.totalorder %s2208_s25, %s2204_s24 }
  0x10   : > { %p2658_p4 = scmp.eq.s32.totalorder %s2297_s28, 0  ;;  %p201_p7 = scmp.eq.s32.totalorder %s2297_s28, 1 }
  0x11   : > { %s2313_s10 = scalar_select %p31_p1, %s2212_s26, %s33_s8  }
  0x12   : > { %p2315_p5 = por %p41_p2, %p40_p0  ;;  %p2321_p6 = por %p2658_p4, %p46_p3 }
  0x13   : > { %2669 = sst [smem:[#allocation25_spill]] %s2313_s10  ;;  %p207_p8 = scmp.eq.s32.totalorder %s1682_s29, 1 }
  0x14   : > { %s2670_s11 = scalar_select %p2315_p5, 1, 0 }
  0x15   : > { %s2671_s12 = scalar_select %p2321_p6, 1, 0 }
  0x16   : > { %p1683_p9 = scmp.ge.s32.totalorder %s2216_s27, 1  ;;  %p214_p10 = scmp.lt.s32.totalorder %s2216_s27, 3 }
  0x17   : > { %p2328_p11 = por %p201_p7, %p40_p0  ;;  %p2332_p12 = por %p207_p8, %p46_p3 }
  0x18   : > { %p2336_p13 = pnand %p1683_p9, %p214_p10  ;;  %s2218_s16 = smov [#allocation5]  }
  0x19   : > { %s2672_s13 = scalar_select %p2328_p11, 1, 0 }
  0x1a   : > { %s2673_s14 = scalar_select %p2332_p12, 1, 0 }
  0x1b   : > { %s2675_s15 = scalar_select %p2336_p13, 1, 0 }
  0x1c   : > { %2674 = sst [smem:[#allocation26_spill]] %s2673_s14  ;;  %p1877_p1 = pneg %p2336_p13 }
  0x1d   : > { %s227_s17 = sshll.u32 %s2218_s16, 4  ;;  %s2219_s18 = smov [#allocation8]   ;;  %s228_s17 = int_to_ptr.vmem [resolvable:$true] %s227_s17 }
  0x1e   : > { %s249_s19 = sshll.u32 %s2219_s18, 4  ;;  %p2344_p0 = pnand %p1877_p1, %p2658_p4  ;;  %s2348_s19 = int_to_ptr.vmem [resolvable:$true] %s249_s19 }
  0x1f   : > { %s2220_s21 = smov [#allocation7]   ;;  %s2677_s1 = sld [smem:[#allocation28_spill]] }
  0x20   : > { %s2350_s22 = sshll.u32 %s2220_s21, 4  ;;  %p2360_p3 = pneg %p2344_p0  ;;  %s239_s22 = int_to_ptr.vmem [resolvable:$true] %s2350_s22 }
  0x25   : > { %s1966_s8 = scalar_lea.hbm %s2677_s1, 128 }
  0x26   : > { %p1967_p2 = scmp.ne.s32.totalorder %s2677_s1, %s1966_s8  ;;  %p1973_p9 = scmp.lt.u32.totalorder %s1966_s8, %s2677_s1 }
  0x28   : > { %p1969_p7 = pnand %p2360_p3, %p1967_p2 }
  0x2a   : > { %p1970_p8 = pneg %p1969_p7 }
  0x2c   : > { %p1975_p10 = pnand %p1973_p9, %p1970_p8 }
  0x2e   : > { %1978 = shalt.err (!%p1975_p10)
}
  0x2f   : > { %s1979_s23 = scalar_lea.vmem %s228_s17, 128  ;;  %p1987_p11 = scmp.lt.s32.totalorder %s228_s17, %s228_s17 }
  0x30   : > { %p1980_p1 = scmp.ne.s32.totalorder %s228_s17, %s1979_s23  ;;  %p1988_p6 = scmp.lt.s32.totalorder %s1979_s23, %s1979_s23 }
  0x32   : > { %p1982_p4 = pnand %p1980_p1, %p2360_p3  ;;  %p1989_p13 = por %p1988_p6, %p1987_p11 }
  0x34   : > { %p1983_p12 = pneg %p1982_p4 }
  0x36   : > { %p1990_p5 = pnand %p1989_p13, %p1983_p12 }
  0x38   : > { %1993 = shalt.err (!%p1990_p5)
}
  0x39   : > { %1880 = dma.hbm_to_vmem [thread:$0]  (!%p2344_p0), %s2677_s1, 128, %s228_s17, [#allocation6]  }
  0x3a   : > { %s1994_s16 = scalar_lea.hbm %s2653_s3, 16 }
  0x3b   : > { %p1995_p4 = scmp.ne.s32.totalorder %s2653_s3, %s1994_s16  ;;  %p2001_p5 = scmp.lt.u32.totalorder %s1994_s16, %s2653_s3 }
  0x3d   : > { %p1997_p2 = pnand %p1995_p4, %p2360_p3 }
  0x3f   : > { %p1998_p6 = pneg %p1997_p2 }
  0x41   : > { %p2003_p11 = pnand %p2001_p5, %p1998_p6 }
  0x43   : > { %2006 = shalt.err (!%p2003_p11)
}
  0x44   : > { %s2007_s17 = scalar_lea.vmem %s2348_s19, 16  ;;  %s2014_s30 = scalar_lea.vmem %s2348_s19, 32 }
  0x45   : > { %p2008_p12 = scmp.ne.s32.totalorder %s2348_s19, %s2007_s17  ;;  %p2015_p8 = scmp.lt.s32.totalorder %s2348_s19, %s2348_s19 }
  0x46   : > { %p2016_p9 = scmp.lt.s32.totalorder %s2014_s30, %s2007_s17 }
  0x47   : > { %p2010_p13 = pnand %p2008_p12, %p2360_p3 }
  0x48   : > { %p2017_p10 = por %p2016_p9, %p2015_p8 }
  0x49   : > { %p2011_p7 = pneg %p2010_p13 }
  0x4b   : > { %p2018_p1 = pnand %p2017_p10, %p2011_p7 }
  0x4d   : > { %2021 = shalt.err (!%p2018_p1)
}
  0x4e   : > { %1886 = dma.hbm_to_vmem [thread:$0]  (!%p2344_p0), %s2653_s3, 16, %s2348_s19, [#allocation9]  }
  0x4f   : > { %s2221_s9 = smov [#allocation10]   ;;  %s2022_s21 = scalar_lea.hbm %s2652_s2, 128 }
  0x50   : > { %s260_s10 = sshll.u32 %s2221_s9, 4  ;;  %p2023_p4 = scmp.ne.s32.totalorder %s2652_s2, %s2022_s21  ;;  %s261_s10 = int_to_ptr.vmem [resolvable:$true] %s260_s10 }
  0x51   : > { %p2029_p5 = scmp.lt.u32.totalorder %s2022_s21, %s2652_s2 }
  0x52   : > { %p2025_p2 = pnand %p2023_p4, %p2360_p3 }
  0x54   : > { %p2026_p6 = pneg %p2025_p2 }
  0x56   : > { %p2031_p11 = pnand %p2029_p5, %p2026_p6 }
  0x58   : > { %2034 = shalt.err (!%p2031_p11)
}
  0x59   : > { %s2035_s19 = scalar_lea.vmem %s239_s22, 128  ;;  %p2043_p8 = scmp.lt.s32.totalorder %s239_s22, %s239_s22 }
  0x5a   : > { %p2036_p12 = scmp.ne.s32.totalorder %s239_s22, %s2035_s19  ;;  %p2044_p9 = scmp.lt.s32.totalorder %s2035_s19, %s2035_s19 }
  0x5c   : > { %p2038_p13 = pnand %p2036_p12, %p2360_p3  ;;  %p2045_p10 = por %p2044_p9, %p2043_p8 }
  0x5e   : > { %p2039_p7 = pneg %p2038_p13 }
  0x60   : > { %p2046_p1 = pnand %p2045_p10, %p2039_p7 }
  0x62   : > { %2049 = shalt.err (!%p2046_p1)
}
  0x63   : > { %1883 = dma.hbm_to_vmem [thread:$0]  (!%p2344_p0), %s2652_s2, 128, %s239_s22, [#allocation6]  }
  0x64   : > { %s2050_s8 = scalar_lea.hbm %s2654_s4, 16 }
  0x65   : > { %p2051_p4 = scmp.ne.s32.totalorder %s2654_s4, %s2050_s8  ;;  %p2057_p5 = scmp.lt.u32.totalorder %s2050_s8, %s2654_s4 }
  0x67   : > { %p2053_p2 = pnand %p2051_p4, %p2360_p3 }
  0x69   : > { %p2054_p6 = pneg %p2053_p2 }
  0x6b   : > { %p2059_p11 = pnand %p2057_p5, %p2054_p6 }
  0x6d   : > { %2062 = shalt.err (!%p2059_p11)
}
  0x6e   : > { %s2063_s30 = scalar_lea.vmem %s261_s10, 16  ;;  %s2070_s22 = scalar_lea.vmem %s261_s10, 32 }
  0x6f   : > { %p2064_p12 = scmp.ne.s32.totalorder %s261_s10, %s2063_s30  ;;  %p2071_p8 = scmp.lt.s32.totalorder %s261_s10, %s261_s10 }
  0x70   : > { %p2072_p9 = scmp.lt.s32.totalorder %s2070_s22, %s2063_s30 }
  0x71   : > { %p2066_p13 = pnand %p2064_p12, %p2360_p3 }
  0x72   : > { %p2073_p10 = por %p2072_p9, %p2071_p8 }
  0x73   : > { %p2067_p7 = pneg %p2066_p13 }
  0x75   : > { %p2074_p1 = pnand %p2073_p10, %p2067_p7 }
  0x77   : > { %2077 = shalt.err (!%p2074_p1)
}
  0x78   : > { %1889 = dma.hbm_to_vmem [thread:$0]  (!%p2344_p0), %s2654_s4, 16, %s261_s10, [#allocation9]  }
  0x79   : > { %s2222_s29 = smov [#allocation11]   ;;  %s2078_s16 = scalar_lea.hbm %s2655_s5, 16 }
  0x7a   : > { %s271_s1 = sshll.u32 %s2222_s29, 4  ;;  %p2079_p4 = scmp.ne.s32.totalorder %s2655_s5, %s2078_s16  ;;  %s272_s1 = int_to_ptr.vmem [resolvable:$true] %s271_s1 }
  0x7b   : > { %p2085_p5 = scmp.lt.u32.totalorder %s2078_s16, %s2655_s5 }
  0x7c   : > { %p2081_p2 = pnand %p2079_p4, %p2360_p3 }
  0x7e   : > { %p2082_p6 = pneg %p2081_p2 }
  0x80   : > { %p2087_p11 = pnand %p2085_p5, %p2082_p6 }
  0x82   : > { %2090 = shalt.err (!%p2087_p11)
}
  0x83   : > { %s2091_s10 = scalar_lea.vmem %s272_s1, 16  ;;  %s2098_s22 = scalar_lea.vmem %s272_s1, 32 }
  0x84   : > { %p2092_p12 = scmp.ne.s32.totalorder %s272_s1, %s2091_s10  ;;  %p2099_p8 = scmp.lt.s32.totalorder %s272_s1, %s272_s1 }
  0x85   : > { %p2100_p9 = scmp.lt.s32.totalorder %s2098_s22, %s2091_s10 }
  0x86   : > { %p2094_p13 = pnand %p2092_p12, %p2360_p3 }
  0x87   : > { %p2101_p10 = por %p2100_p9, %p2099_p8 }
  0x88   : > { %p2095_p7 = pneg %p2094_p13 }
  0x8a   : > { %p2102_p1 = pnand %p2101_p10, %p2095_p7 }
  0x8c   : > { %2105 = shalt.err (!%p2102_p1)
}
  0x8d   : > { %1892 = dma.hbm_to_vmem [thread:$0]  (!%p2344_p0), %s2655_s5, 16, %s272_s1, [#allocation12]  }
  0x8e   : > { %p1689_p4 = scmp.ge.s32.totalorder %s2216_s27, 2 }
  0x90   : > { %278 = sbr.rel (%p1689_p4) target bundleno = 190 (0xbe), region = 36 }
  0x97   : > { %s282_s18 = sand.u32 1, %s2216_s27   ;;  %s284_s29 = sand.u32 1, %s2212_s26  }
  0x98   : > { %s1690_s20 = sshll.u32 %s284_s29, 5  ;;  %s1717_s9 = sshll.u32 %s2216_s27, 8 }
  0x99   : > { %s2679_s0 = sld [smem:[#allocation27_spill]]  ;;  %p2680_p0 = scmp.ne.s32.totalorder %s2670_s11, 0 }
  0x9a   : > { %s286_s23 = scalar_lea.vmem [#allocation2], %s1690_s20  ;;  %s2223_s10 = smov 512  }
  0x9b   : > { %s1854_s21 = scalar_select %p2680_p0, [#allocation0], [#allocation17] }
  0x9c   : > { %s305_s17 = sshll.u32 %s286_s23, 4  ;;  %1855 = sst [smem:[#allocation16]] (%p2680_p0), %s2223_s10  ;;  %s306_s17 = int_to_ptr.vmem [resolvable:$true] %s305_s17 }
  0x9d   : > { %s297_s30 = sld [smem:[%s1854_s21]]   ;;  %s2224_s22 = smov 256  }
  0x9e   : > { %1856 = sst [smem:[#allocation16 + $0x1]] (%p2680_p0), %s2224_s22  ;;  %s2225_s19 = smov 2  }
  0x9f   : > { %s292_s16 = scalar_lea.hbm %s2679_s0, %s1717_s9  ;;  %1857 = sst [smem:[#allocation16 + $0x2]] (%p2680_p0), %s2225_s19 }
  0xa0   : > { %s2226_s14 = smov 128   ;;  %s2227_s20 = smov 8  }
  0xa1   : > { %1858 = sst [smem:[#allocation16 + $0x3]] (%p2680_p0), %s2226_s14  ;;  %s2478_s21 = scalar_lea.sflag [#allocation3], %s282_s18 }
  0xa2   : > { %1859 = sst [smem:[#allocation16 + $0x4]] (%p2680_p0), %s2226_s14  ;;  %s2228_s23 = smov [#allocation15]  }
  0xa3   : > { %s1693_s8 = sshll.u32 %s297_s30, 26  ;;  %1860 = sst [smem:[#allocation16 + $0x5]] (%p2680_p0), %s2227_s20 }
  0xa4   : > { %s1694_s1 = sadd.s32 134217728, %s1693_s8  ;;  %s1695_s10 = sshll.u32 %s284_s29, 4 }
  0xa5   : > { %1861 = dma.general (%p2680_p0), %s292_s16, 512, %s306_s17, %s2478_s21, %s2228_s23, [#allocation16], %s1694_s1, 0  }
  0xa6   : > { %s2486_s0 = scalar_lea.hbm %s2656_s6, %s1717_s9  ;;  %s332_s30 = scalar_lea.vmem [#allocation13], %s1695_s10 }
  0xa7   : > { %s339_s14 = sshll.u32 %s332_s30, 4  ;;  %s2106_s18 = scalar_lea.hbm %s2486_s0, 256  ;;  %s2488_s14 = int_to_ptr.vmem [resolvable:$true] %s339_s14 }
  0xa8   : > { %p2107_p3 = scmp.ne.s32.totalorder %s2486_s0, %s2106_s18  ;;  %s2110_s17 = scalar_lea.hbm %s2656_s6, 512 }
  0xa9   : > { %p2111_p5 = scmp.lt.u32.totalorder %s2486_s0, %s2656_s6  ;;  %p2112_p11 = scmp.lt.u32.totalorder %s2110_s17, %s2106_s18 }
  0xaa   : > { %p2108_p2 = pnand %p2107_p3, %p2680_p0  ;;  %p2114_p13 = scmp.lt.u32.totalorder %s2106_s18, %s2486_s0 }
  0xab   : > { %p2113_p12 = por %p2112_p11, %p2111_p5 }
  0xac   : > { %p2109_p6 = pneg %p2108_p2 }
  0xad   : > { %p2115_p7 = por %p2114_p13, %p2113_p12 }
  0xaf   : > { %p2116_p8 = pnand %p2115_p7, %p2109_p6 }
  0xb1   : > { %2119 = shalt.err (!%p2116_p8)
}
  0xb2   : > { %s2120_s20 = scalar_lea.vmem %s2488_s14, 256  ;;  %s2229_s1 = smov [#allocation13]  }
  0xb3   : > { %p2121_p9 = scmp.ne.s32.totalorder %s2488_s14, %s2120_s20  ;;  %s2124_s23 = sshll.u32 %s2229_s1, 4  ;;  %s2125_s23 = int_to_ptr.vmem [resolvable:$false] %s2124_s23 }
  0xb4   : > { %s2126_s10 = scalar_lea.vmem %s2125_s23, 512  ;;  %p2127_p3 = scmp.lt.s32.totalorder %s2488_s14, %s2125_s23 }
  0xb5   : > { %p2122_p10 = pnand %p2121_p9, %p2680_p0  ;;  %p2128_p2 = scmp.lt.s32.totalorder %s2126_s10, %s2120_s20 }
  0xb7   : > { %p2123_p1 = pneg %p2122_p10  ;;  %p2129_p5 = por %p2128_p2, %p2127_p3 }
  0xb9   : > { %p2130_p11 = pnand %p2129_p5, %p2123_p1 }
  0xbb   : > { %2133 = shalt.err (!%p2130_p11)
}
  0xbc   : > { %s2230_s22 = smov 128   ;;  %s2231_s19 = smov 8  }
  0xbd   : > { %1862 = dma.hbm_to_vmem [thread:$0]  (%p2680_p0), %s2486_s0, 256, %s2488_s14, %s2478_s21, %s2230_s22, %s2230_s22, %s2231_s19  }
  0xbe PF: > { %p2681_p6 = scmp.ne.s32.totalorder %s2675_s15, 0 }
  0xbf   : > { %s353_s30 = sand.u32 (!%p2681_p6), 1, %s2297_s28   ;;  %s2516_s18 = sand.u32 (!%p2681_p6), 1, %s2208_s25  }
  0xc0   : > { %351 = sbr.rel (%p2681_p6) target bundleno = 940 (0x3ac), region = 48  ;;  %s1699_s29 = sshll.u32 (!%p2681_p6), %s2516_s18, 5 }
  0xc1   : > { %s354_s16 = scalar_lea.sflag (!%p2681_p6), [#allocation3], %s353_s30  ;;  %s357_s17 = scalar_lea.vmem (!%p2681_p6), [#allocation2], %s1699_s29 }
  0xc2   : > { %p2682_p12 = scmp.ne.s32.totalorder (!%p2681_p6), %s2671_s12, 0 }
  0xc7   : > { %2179 = dma.done.wait (%p2682_p12), %s354_s16, 512  }
  0xc8   : > { %2181 = vsyncadd (%p2682_p12), %s354_s16, 4294966784  ;;  %p2683_p0 = scmp.eq.s32.totalorder %s2297_s28, 0 }
  0xca   : > { %2183 = dma.done.wait (%p2683_p0), [#allocation6], 256   ;;  %p2684_p13 = pmov %p2683_p0 }
  0xcb   : > { %p2685_p7 = pmov %p2683_p0 }
  0xcc   : > { %2185 = vsyncadd (%p2684_p13), [#allocation6], 4294967040 }
  0xcd   : > { %2187 = dma.done.wait (%p2685_p7), [#allocation9], 32   ;;  %p2686_p8 = pmov %p2683_p0 }
  0xce   : > { %p2687_p9 = pmov %p2683_p0 }
  0xcf   : > { %2189 = vsyncadd (%p2686_p8), [#allocation9], 4294967264 }
  0xd0   : > { %2191 = dma.done.wait (%p2687_p9), [#allocation12], 16   ;;  %p2688_p10 = pmov %p2683_p0 }
  0xd1   : > { %s1705_s0 = sshll.u32 %s2516_s18, 4 }
  0xd2   : > { %2193 = vsyncadd (%p2688_p10), [#allocation12], 4294967280  ;;  %s2538_s11 = scalar_lea.vmem [#allocation13], %s1705_s0 }
  0xd3   : > { %2195 = dma.done.wait (%p2682_p12), %s354_s16, 256  }
  0xd4   : > { %2197 = vsyncadd (%p2682_p12), %s354_s16, 4294967040  ;;  %vm429_vm0 = vcmask 64512   ;;  %v428_v0 = vld [vmem:[#allocation7] sm:$0xff]  ;;  %v427_v1 = vld [vmem:[#allocation5] sm:$0xff]  ;;  %s2232_s12 = smov 120   ;;  %s1719_s10 = sshll.u32 %s2297_s28, 8 }
  0xd5   : > { %v1707_v2 = vld [vmem:[%s357_s17 + $0x10] sm:$0xff]  ;;  %v2544_v3 = vand.u32 4294901760, %v428_v0  ;;  %v2546_v4 = vand.u32 4294901760, %v427_v1  ;;  %v422_v6 = vld [vmem:[%s357_s17] sm:$0xff]  ;;  %v1708_v7 = vld [vmem:[%s357_s17 + $0x18] sm:$0xff]  ;;  %s421_s22 = scalar_lea.vmem [#allocation14], %s1705_s0  ;;  %s2602_s16 = scalar_lea.hbm %s2657_s7, %s1719_s10 }
  0xd6   : > { %v431_v5 = vsel %vm429_vm0, %v1707_v2, 0  ;;  %v423_v8 = vld [vmem:[%s357_s17 + $0x8] sm:$0xff]  ;;  %v926_v10 = vsel %vm429_vm0, %v422_v6, 0  ;;  %v434_v11 = vsel %vm429_vm0, %v1708_v7, 0  ;;  %v1709_v42 = vld [vmem:[#allocation8] ss:$0 sm:$0xff] }
  0xd7   : > { %v2549_v9 = vand.u32 4294901760, %v431_v5  ;;  %v929_v12 = vsel %vm429_vm0, %v423_v8, 0  ;;  %1756 = vmatprep.subr.mxu1 %v2544_v3  ;;  %1786 = vmatprep.subr.mxu0 %v2546_v4  ;;  %v524_v13 = vsub.f32 %v428_v0, %v2544_v3  ;;  %v2557_v14 = vand.u32 4294901760, %v926_v10  ;;  %s1541_s19 = sshll.u32 %s421_s22, 4  ;;  %s1528_s28 = scalar_lea.sflag [#allocation4], %s2516_s18  ;;  %s2604_s19 = int_to_ptr.vmem [resolvable:$true] %s1541_s19 }
  0xd8   : > { %v1019_v15 = vsub.f32 %v427_v1, %v2546_v4  ;;  %v2560_v16 = vand.u32 4294901760, %v434_v11  ;;  %1757 = vmatpush3.msra.mxu1 %v2544_v3  ;;  %1787 = vmatpush3.msra.mxu0 %v2546_v4  ;;  %v2565_v18 = vand.u32 4294901760, %v929_v12  ;;  %s2134_s17 = scalar_lea.vmem %s2604_s19, 256  ;;  %p2689_p3 = scmp.ne.s32.totalorder %s2672_s13, 0 }
  0xd9   : > { %v503_v17 = vsub.f32 %v431_v5, %v2549_v9  ;;  %v525_v19 = vand.u32 4294901760, %v524_v13  ;;  %v998_v20 = vsub.f32 %v926_v10, %v2557_v14  ;;  %p2135_p1 = scmp.ne.s32.totalorder %s2604_s19, %s2134_s17  ;;  %s2233_s0 = smov [#allocation14]  }
  0xda   : > { %v1020_v21 = vand.u32 4294901760, %v1019_v15  ;;  %v513_v22 = vsub.f32 %v434_v11, %v2560_v16  ;;  %v1008_v24 = vsub.f32 %v929_v12, %v2565_v18 }
  0xdb   : > { %v504_v23 = vand.u32 4294901760, %v503_v17  ;;  %v526_v25 = vsub.f32 %v524_v13, %v525_v19  ;;  %v999_v26 = vand.u32 4294901760, %v998_v20  ;;  %p2136_p2 = pnand %p2135_p1, %p2689_p3 }
  0xdc   : > { %v1021_v27 = vsub.f32 %v1019_v15, %v1020_v21  ;;  %v514_v28 = vand.u32 4294901760, %v513_v22  ;;  %v1009_v30 = vand.u32 4294901760, %v1008_v24 }
  0xdd   : > { %v505_v29 = vsub.f32 %v503_v17, %v504_v23  ;;  %v527_v31 = vand.u32 4294901760, %v526_v25  ;;  %v1000_v32 = vsub.f32 %v998_v20, %v999_v26  ;;  %p2137_p5 = pneg %p2136_p2 }
  0xde   : > { %v1022_v33 = vand.u32 4294901760, %v1021_v27  ;;  %v515_v34 = vsub.f32 %v513_v22, %v514_v28  ;;  %v1010_v36 = vsub.f32 %v1008_v24, %v1009_v30 }
  0xdf   : > { %v506_v35 = vand.u32 4294901760, %v505_v29  ;;  %1761 = vmatprep.subr.mxu1 %v527_v31  ;;  %v1001_v37 = vand.u32 4294901760, %v1000_v32 }
  0xe0   : > { %1791 = vmatprep.subr.mxu0 %v1022_v33  ;;  %v516_v38 = vand.u32 4294901760, %v515_v34  ;;  %v1011_v39 = vand.u32 4294901760, %v1010_v36  ;;  %v1711_v36 = vld [vmem:[#allocation11] ss:$0 sm:$0xff] }
  0xe1   : > { %1758 = vmatprep.mubr.f32.mxu1 %v506_v35  ;;  %1788 = vmatprep.mubr.f32.mxu0 %v1001_v37 }
  0xe2   : > { %1759 = vmatmul.mubr.f32.vlgmr.msra.gmra.mrb[0].mxu1 %v516_v38  ;;  %1789 = vmatmul.mubr.f32.vlgmr.msra.gmra.mrb[0].mxu0 %v1011_v39  ;;  %v1521_v39 = vld [vmem:[%s2538_s11] sm:$0xff] }
  0xe3   : > { %1762 = vmatpush3.msra.mxu1 %v527_v31  ;;  %1792 = vmatpush3.msra.mxu0 %v1022_v33  ;;  %v1710_v33 = vld [vmem:[#allocation10] ss:$0 sm:$0xff] }
  0xe4   : > { %1763 = vmatprep.mubr.f32.mxu1 %v2549_v9  ;;  %1766 = vmatprep.subr.mxu1 %v524_v13 }
  0xe5   : > { %1793 = vmatprep.mubr.f32.mxu0 %v2557_v14  ;;  %1796 = vmatprep.subr.mxu0 %v1019_v15 }
  0xea   : > { %1764 = vmatmul.mubr.f32.vlgmr.msra.gmra.mrb[0].mxu1 %v2560_v16  ;;  %1794 = vmatmul.mubr.f32.vlgmr.msra.gmra.mrb[0].mxu0 %v2565_v18 }
  0xeb   : > { %1767 = vmatpush3.msra.mxu1 %v524_v13  ;;  %1797 = vmatpush3.msra.mxu0 %v1019_v15 }
  0xec   : > { %1768 = vmatprep.mubr.f32.mxu1 %v503_v17  ;;  %1771 = vmatprep.subr.mxu1 %v2544_v3 }
  0xed   : > { %1798 = vmatprep.mubr.f32.mxu0 %v998_v20  ;;  %1801 = vmatprep.subr.mxu0 %v2546_v4 }
  0xf2   : > { %1769 = vmatmul.mubr.f32.vlgmr.msra.gmra.mrb[0].mxu1 %v513_v22  ;;  %1799 = vmatmul.mubr.f32.vlgmr.msra.gmra.mrb[0].mxu0 %v1008_v24 }
  0xf3   : > { %1772 = vmatpush3.msra.mxu1 %v2544_v3  ;;  %1802 = vmatpush3.msra.mxu0 %v2546_v4 }
  0xf4   : > { %1773 = vmatprep.mubr.f32.mxu1 %v504_v23  ;;  %1776 = vmatprep.subr.mxu1 %v525_v19 }
  0xf5   : > { %1803 = vmatprep.mubr.f32.mxu0 %v999_v26  ;;  %1806 = vmatprep.subr.mxu0 %v1020_v21 }
  0xfa   : > { %1774 = vmatmul.mubr.f32.vlgmr.msra.gmra.mrb[0].mxu1 %v514_v28  ;;  %1804 = vmatmul.mubr.f32.vlgmr.msra.gmra.mrb[0].mxu0 %v1009_v30 }
  0xfb   : > { %1777 = vmatpush3.msra.mxu1 %v525_v19  ;;  %1807 = vmatpush3.msra.mxu0 %v1020_v21 }
  0xfc   : > { %1778 = vmatprep.mubr.f32.mxu1 %v2549_v9  ;;  %1781 = vmatprep.subr.mxu1 %v2544_v3 }
  0xfd   : > { %1808 = vmatprep.mubr.f32.mxu0 %v2557_v14  ;;  %1811 = vmatprep.subr.mxu0 %v2546_v4 }
 0x102   : > { %1779 = vmatmul.mubr.f32.vlgmr.msra.gmra.mrb[0].mxu1 %v2560_v16  ;;  %1809 = vmatmul.mubr.f32.vlgmr.msra.gmra.mrb[0].mxu0 %v2565_v18 }
 0x103   : > { %1782 = vmatpush3.msra.mxu1 %v2544_v3  ;;  %1812 = vmatpush3.msra.mxu0 %v2546_v4 }
 0x104   : > { %1783 = vmatprep.mubr.f32.mxu1 %v2549_v9  ;;  %1813 = vmatprep.mubr.f32.mxu0 %v2557_v14 }
 0x10a   : > { %1784 = vmatmul.mubr.f32.vlgmr.msra.gmra.mrb[0].mxu1 %v2560_v16  ;;  %1814 = vmatmul.mubr.f32.vlgmr.msra.gmra.mrb[0].mxu0 %v2565_v18 }
 0x1dd   : > { %v1785_v40 = vpop.f32.mrb[0].mxu1  ;;  %v1815_v41 = vpop.f32.mrb[0].mxu0 }
 0x1de   : > { %v915_v43 = vpop.f32.mrb[1].mxu1  ;;  %v1816_v44 = vadd.f32 %v1815_v41, %v1785_v40  ;;  %v1410_v45 = vpop.f32.mrb[1].mxu0  ;;  %v1522_v40 = vld [vmem:[%s2538_s11 + $0x8] sm:$0xff]  ;;  %s2138_s11 = sshll.u32 %s2233_s0, 4  ;;  %s2139_s11 = int_to_ptr.vmem [resolvable:$false] %s2138_s11 }
 0x1df   : > { %v1817_v46 = vadd.f32 %v1410_v45, %v915_v43  ;;  %p2141_p11 = scmp.lt.s32.totalorder %s2604_s19, %s2139_s11 }
 0x1e0   : > { %v1428_v47 = vadd.f32 %v1816_v44, %v1709_v42 }
 0x1e1   : > { %v1427_v48 = vadd.f32 %v1817_v46, %v1709_v42 }
 0x1e2   : > { %v1430_v49 = vand.u32 2147483647, %v1428_v47  ;;  %vm1438_vm2 = vcmp.ge.f32.partialorder %v1428_v47, 0.0 }
 0x1e3   : > { %v1429_v50 = vand.u32 2147483647, %v1427_v48  ;;  %vm1437_vm1 = vcmp.ge.f32.partialorder %v1427_v48, 0.0 }
 0x1e4   : > { %v1432_v51 = vsub.f32 0.0, %v1430_v49 }
 0x1e5   : > { %v1431_v52 = vsub.f32 0.0, %v1429_v50 }
 0x1e6   : > { %v1435_v53 = vmul.f32 1.442695, %v1432_v51 }
 0x1e7   : > { %v1433_v54 = vmul.f32 1.442695, %v1431_v52 }
 0x1e8   : > { %1956 = vpow2.f32 %v1435_v53 }
 0x1e9   : > { %1958 = vpow2.f32 %v1433_v54 }
 0x1f2   : > { %v1957_v55 = vpop.eup %1956 }
 0x1f3   : > { %v1959_v56 = vpop.eup %1958  ;;  %v1440_v57 = vadd.f32 1.0, %v1957_v55 }
 0x1f4   : > { %v1439_v58 = vadd.f32 1.0, %v1959_v56 }
 0x1f5   : > { %1960 = vrcp.f32 %v1440_v57 }
 0x1f6   : > { %1962 = vrcp.f32 %v1439_v58 }
 0x1ff   : > { %v1961_v59 = vpop.eup %1960 }
 0x200   : > { %v1963_v60 = vpop.eup %1962  ;;  %v1446_v63 = vmul.f32 %v1961_v59, %v1957_v55 }
 0x201   : > { %v1445_v61 = vmul.f32 %v1963_v60, %v1959_v56 }
 0x202   : > { %v1448_v0 = vsel %vm1438_vm2, %v1961_v59, %v1446_v63 }
 0x203   : > { %v1447_v62 = vsel %vm1437_vm1, %v1963_v60, %v1445_v61 }
 0x204   : > { %1451 = vrot.lane.b32.xlu0 %v1447_v62, %s2232_s12 }
 0x208   : > { %1453 = vrot.lane.b32.xlu0 %v1448_v0, %s2232_s12  ;;  %s2140_s12 = scalar_lea.vmem %s2139_s11, 512 }
 0x209   : > { %p2142_p6 = scmp.lt.s32.totalorder %s2140_s12, %s2134_s17 }
 0x20b   : > { %p2143_p12 = por %p2142_p6, %p2141_p11 }
 0x20d   : > { %p2144_p0 = pnand %p2143_p12, %p2137_p5 }
 0x276   : > { %v1452_v1 = vpop.permute.xlu0 %1451 }
 0x277   : > { %v1457_v2 = vmul.f32 %v1452_v1, %v1427_v48 }
 0x279   : > { %v1459_v5 = vsel %vm429_vm0, %v1457_v2, 0.0  ;;  %v1474_v7 = vmul.f32 %v1457_v2, %v1457_v2 }
 0x27a   : > { %v1454_v3 = vpop.permute.xlu0 %1453 }
 0x27b   : > { %v1458_v4 = vmul.f32 %v1454_v3, %v1428_v47  ;;  %v1476_v11 = vsel %vm429_vm0, %v1474_v7, 0.0 }
 0x27d   : > { %v1460_v6 = vsel %vm429_vm0, %v1458_v4, 0.0  ;;  %v1475_v8 = vmul.f32 %v1458_v4, %v1458_v4 }
 0x27e   : > { %v1461_v9 = vadd.f32 %v1460_v6, %v1459_v5 }
 0x27f   : > { %v1477_v10 = vsel %vm429_vm0, %v1475_v8, 0.0 }
 0x280   : > { %1462 = vadd.xlane.f32.xlu1 %v1461_v9  ;;  %v1478_v12 = vadd.f32 %v1477_v10, %v1476_v11 }
 0x284   : > { %1479 = vadd.xlane.f32.xlu1 %v1478_v12 }
 0x30d   : > { %v1463_v13 = vpop.xlane.xlu1 %1462 }
 0x30e   : > { %v1464_v14 = vrot.slane %v1463_v13, 4 }
 0x310   : > { %v1465_v15 = vadd.f32 %v1464_v14, %v1463_v13 }
 0x311   : > { %v1480_v16 = vpop.xlane.xlu1 %1479 }
 0x312   : > { %v1466_v17 = vrot.slane %v1465_v15, 2  ;;  %v1481_v18 = vrot.slane %v1480_v16, 4 }
 0x314   : > { %v1482_v19 = vadd.f32 %v1481_v18, %v1480_v16  ;;  %v1467_v20 = vadd.f32 %v1466_v17, %v1465_v15 }
 0x316   : > { %v1483_v21 = vrot.slane %v1482_v19, 2  ;;  %v1468_v22 = vrot.slane %v1467_v20, 1 }
 0x318   : > { %v1484_v23 = vadd.f32 %v1483_v21, %v1482_v19  ;;  %v1469_v24 = vadd.f32 %v1468_v22, %v1467_v20 }
 0x31a   : > { %1838 = vpush %v1469_v24  ;;  %v1485_v25 = vrot.slane %v1484_v23, 1 }
 0x31c   : > { %v1486_v26 = vadd.f32 %v1485_v25, %v1484_v23 }
 0x31e   : > { %1840 = vpush %v1486_v26 }
 0x34b   : > { %s1839_s15 = spop %1838 }
 0x34c   : > { %s1473_s21 = smul.f32 0.0078125, %s1839_s15 }
 0x34e   : > { %s1491_s14 = smul.f32 %s1473_s21, %s1473_s21  ;;  %v1493_v29 = vstv %s1473_s21 }
 0x34f   : > { %s1841_s8 = spop %1840  ;;  %v1494_v30 = vsub.f32 %v1457_v2, %v1493_v29  ;;  %v1495_v31 = vsub.f32 %v1458_v4, %v1493_v29 }
 0x350   : > { %s1490_s9 = smul.f32 0.0078125, %s1841_s8 }
 0x352   : > { %s1492_s20 = ssub.f32 %s1490_s9, %s1491_s14 }
 0x354   : > { %s1496_s1 = sadd.f32 1e-05, %s1492_s20 }
 0x356   : > { %v1497_v27 = vstv %s1496_s1 }
 0x357   : > { %1964 = vrsqrt.f32 %v1497_v27 }
 0x361   : > { %v1965_v28 = vpop.eup %1964 }
 0x362   : > { %1842 = vpush %v1965_v28 }
 0x393   : > { %s1843_s23 = spop %1842 }
 0x394   : > { %v1500_v32 = vstv %s1843_s23 }
 0x395   : > { %v1501_v34 = vmul.f32 %v1500_v32, %v1494_v30  ;;  %v1502_v35 = vmul.f32 %v1500_v32, %v1495_v31 }
 0x397   : > { %v1510_v37 = vmul.f32 %v1710_v33, %v1501_v34  ;;  %v1511_v38 = vmul.f32 %v1710_v33, %v1502_v35 }
 0x399   : > { %v1519_v41 = vadd.f32 %v1711_v36, %v1510_v37  ;;  %v1520_v42 = vadd.f32 %v1711_v36, %v1511_v38 }
 0x39b   : > { %v1523_v43 = vadd.f32 %v1521_v39, %v1519_v41  ;;  %v1524_v44 = vadd.f32 %v1522_v40, %v1520_v42 }
 0x39d   : > { %1525 = vst.msk [vmem:[%s421_s22] sm:$0xff] %vm429_vm0, %v1523_v43  ;;  %1526 = vst.msk [vmem:[%s421_s22 + $0x8] sm:$0xff] %vm429_vm0, %v1524_v44 }
 0x39e   : > { %2147 = shalt.err (!%p2144_p0)
}
 0x39f   : > { %s2148_s15 = scalar_lea.hbm %s2602_s16, 256  ;;  %s2152_s8 = scalar_lea.hbm %s2657_s7, 512 }
 0x3a0   : > { %p2149_p13 = scmp.ne.s32.totalorder %s2602_s16, %s2148_s15  ;;  %p2153_p9 = scmp.lt.u32.totalorder %s2602_s16, %s2657_s7 }
 0x3a1   : > { %p2154_p10 = scmp.lt.u32.totalorder %s2152_s8, %s2148_s15  ;;  %p2156_p2 = scmp.lt.u32.totalorder %s2148_s15, %s2602_s16 }
 0x3a2   : > { %p2150_p7 = pnand %p2149_p13, %p2689_p3 }
 0x3a3   : > { %p2155_p1 = por %p2154_p10, %p2153_p9 }
 0x3a4   : > { %p2151_p8 = pneg %p2150_p7 }
 0x3a5   : > { %p2157_p5 = por %p2156_p2, %p2155_p1 }
 0x3a7   : > { %p2158_p11 = pnand %p2157_p5, %p2151_p8 }
 0x3a9   : > { %2161 = shalt.err (!%p2158_p11)
}
 0x3aa   : > { %s2234_s1 = smov 128   ;;  %s2235_s23 = smov 8  }
 0x3ab   : > { %1875 = dma.vmem_to_hbm [thread:$0]  (%p2689_p3), %s2604_s19, 256, %s2602_s16, %s1528_s28, %s2234_s1, %s2234_s1, %s2235_s23  }
 0x3ac PF: > { %s2690_s10 = sld [smem:[#allocation26_spill]]  ;;  %s1556_s22 = sand.u32 1, %s2204_s24  }
 0x3ad   : > { %s1557_s30 = scalar_lea.sflag [#allocation4], %s1556_s22 }
 0x3b2   : > { %p2691_p6 = scmp.ne.s32.totalorder %s2690_s10, 0 }
 0x3b4   : > { %p1894_p12 = pnand %p1689_p4, %p2691_p6 }
 0x3b6   : > { %2199 = dma.done.wait (!%p1894_p12), %s1557_s30, 256  }
 0x3b7   : > { %2201 = vsyncadd (!%p1894_p12), %s1557_s30, 4294967040  ;;  %s2692_s27 = sld [smem:[#allocation24_spill]]  ;;  %s2693_s29 = sld [smem:[#allocation25_spill]] }
 0x3b8   : > { %s2694_s24 = smov %s2208_s25  ;;  %s2695_s25 = smov %s2212_s26 }
 0x3bd   : > { %p23_p0 = scmp.ge.s32.totalorder %s2692_s27, 4   ;;  %s2696_s26 = smov %s2693_s29 }
 0x3bf   :  { %25 = sbr.rel (!%p23_p0) target bundleno = 11 (0xb), region = 130 }
 0x3c6   :  { %1562 = vsyncpa [#allocation3], 1 }
 0x3c7   :  { %1564 = vsyncpa [#allocation3 + $0x1], 1 }
 0x3c8   :  { %1565 = vsyncpa [#allocation6], 1 }
 0x3c9   :  { %1566 = vsyncpa [#allocation9], 1 }
 0x3ca   :  { %1567 = vsyncpa [#allocation12], 1 }
 0x3cb   :  { %1568 = vsyncpa [#allocation4], 1 }
 0x3cc   :  { %1570 = vsyncpa [#allocation4 + $0x1], 1 }

// kernel: _lambda_.4
= control target key start
LH: loop header
LB: loop body
LE: loop exit
PB: predicated region body
PF: predicated region fallthrough
CT: control target
= control target key end

     0   :  { %s5921_s0 = inlined_call_operand.hbm [shape: f32[2,2,16,8], index: 0, kind: input, shape index: {}]   ;;  %s5922_s1 = inlined_call_operand.hbm [shape: f32[2,8,32], index: 1, kind: input, shape index: {}]   ;;  %s5923_s2 = inlined_call_operand.hbm [shape: f32[2,4,16], index: 2, kind: input, shape index: {}]   ;;  %s5924_s3 = inlined_call_operand.hbm [shape: f32[2,1,16], index: 3, kind: input, shape index: {}]   ;;  %s5925_s4 = inlined_call_operand.hbm [shape: f32[2,16,33], index: 4, kind: input, shape index: {}]   ;;  %s5926_s5 = inlined_call_operand.hbm [shape: f32[2,1,16], index: 5, kind: input, shape index: {}]   ;;  %s5927_s6 = inlined_call_operand.hbm [shape: f32[2,1,16], index: 6, kind: input, shape index: {}]   ;;  %s5928_s7 = inlined_call_operand.hbm [shape: f32[2,16,16], index: 7, kind: input, shape index: {}]   ;;  %s5929_s8 = inlined_call_operand.hbm [shape: f32[2,1,16], index: 8, kind: input, shape index: {}]   ;;  %s5930_s9 = inlined_call_operand.hbm [shape: f32[2,16,8], index: 9, kind: input, shape index: {}]   ;;  %s5931_s10 = inlined_call_operand.hbm [shape: f32[2,2,16,8], index: 10, kind: output, shape index: {}]  }
   0x1   :  { %5979 = sst [smem:[#allocation60_spill]] %s5921_s0 }
   0x2   :  { %5980 = sst [smem:[#allocation61_spill]] %s5922_s1 }
   0x3   :  { %5981 = sst [smem:[#allocation62_spill]] %s5923_s2 }
   0x4   :  { %5982 = sst [smem:[#allocation63_spill]] %s5924_s3 }
   0x5   :  { %5983 = sst [smem:[#allocation64_spill]] %s5925_s4 }
   0x6   :  { %5984 = sst [smem:[#allocation65_spill]] %s5926_s5 }
   0x7   :  { %5985 = sst [smem:[#allocation66_spill]] %s5927_s6 }
   0x8   :  { %5986 = sst [smem:[#allocation67_spill]] %s5928_s7 }
   0x9   :  { %5987 = sst [smem:[#allocation68_spill]] %s5929_s8 }
   0xa   :  { %5988 = sst [smem:[#allocation69_spill]] %s5930_s9 }
   0xb   :  { %5989 = sst [smem:[#allocation70_spill]] %s5931_s10 }
   0xc   :  { %15 = vsyncpa [#allocation5], 0 }
   0xd   :  { %17 = vsyncpa [#allocation5 + $0x1], 0 }
   0xe   :  { %18 = vsyncpa [#allocation8], 0 }
   0xf   :  { %20 = vsyncpa [#allocation8 + $0x1], 0 }
  0x10   :  { %21 = vsyncpa [#allocation11], 0 }
  0x11   :  { %23 = vsyncpa [#allocation11 + $0x1], 0 }
  0x12   :  { %24 = vsyncpa [#allocation14], 0 }
  0x13   :  { %26 = vsyncpa [#allocation14 + $0x1], 0 }
  0x14   :  { %27 = vsyncpa [#allocation17], 0 }
  0x15   :  { %29 = vsyncpa [#allocation17 + $0x1], 0 }
  0x16   :  { %30 = vsyncpa [#allocation20], 0 }
  0x17   :  { %32 = vsyncpa [#allocation20 + $0x1], 0 }
  0x18   :  { %33 = vsyncpa [#allocation6], 0 }
  0x19   :  { %35 = vsyncpa [#allocation6 + $0x1], 0  ;;  %s4799_s13 = smov 0   ;;  %s4801_s14 = smov 0  }
  0x1a   :  { %s4803_s15 = smov 0   ;;  %s4805_s16 = smov 0  }
  0x1b   :  { %s4807_s17 = smov 0   ;;  %s4809_s18 = smov 0  }
  0x1c   :  { %s4811_s19 = smov 0   ;;  %s4813_s20 = smov 0  }
  0x1d   :  { %s4815_s21 = smov 0   ;;  %s4817_s22 = smov 0  }
  0x1e   :  { %s4819_s23 = smov 0   ;;  %s4821_s24 = smov 0  }
  0x1f   :  { %s4823_s25 = smov 0  }
  0x20 LB: > { %5990 = sst [smem:[#allocation29_spill]] %s4679_s14  ;;  %p5936_p0 = scmp.eq.s32.totalorder %s4723_s25, 0  ;;  %s4723_s25 = sphi %s4823_s25, %s41_s25   ;;  %s4719_s24 = sphi %s4821_s24, %s6117_s24   ;;  %s4715_s23 = sphi %s4819_s23, %s6116_s23   ;;  %s4711_s22 = sphi %s4817_s22, %s6115_s22   ;;  %s4707_s21 = sphi %s4815_s21, %s6114_s21   ;;  %s4703_s20 = sphi %s4813_s20, %s6113_s20   ;;  %s4699_s19 = sphi %s4811_s19, %s6112_s19   ;;  %s4695_s18 = sphi %s4809_s18, %s6111_s18   ;;  %s4691_s17 = sphi %s4807_s17, %s6110_s17   ;;  %s4687_s16 = sphi %s4805_s16, %s6104_s16   ;;  %s4683_s15 = sphi %s4803_s15, %s6109_s15   ;;  %s4679_s14 = sphi %s4801_s14, %s6108_s14   ;;  %s4675_s13 = sphi %s4799_s13, %s6103_s13  }
  0x21   : > { %5991 = sst [smem:[#allocation30_spill]] %s4687_s16  ;;  %p104_p1 = scmp.ne.s32.totalorder %s4683_s15, %s4679_s14 }
  0x22   : > { %5992 = sst [smem:[#allocation31_spill]] %s4691_s17  ;;  %p5935_p2 = scmp.lt.s32.totalorder %s4723_s25, 8 }
  0x23   : > { %5993 = sst [smem:[#allocation32_spill]] %s4699_s19  ;;  %p106_p3 = por %p104_p1, %p5936_p0 }
  0x24   : > { %5994 = sst [smem:[#allocation33_spill]] %s4703_s20  ;;  %s4871_s26 = sand.u32 1, %s4723_s25  }
  0x25   : > { %5995 = sst [smem:[#allocation34_spill]] %s4707_s21  ;;  %s4874_s27 = sand.u32 1, %s4683_s15  }
  0x26   : > { %s3731_s28 = sshll.u32 %s4874_s27, 3  ;;  %s3732_s29 = sshll.u32 %s4719_s24, 7 }
  0x27   : > { %s5996_s1 = sld [smem:[#allocation61_spill]]  ;;  %s398_s10 = scalar_lea.vmem [#allocation7], %s3731_s28 }
  0x28   : > { %s405_s21 = sshll.u32 %s398_s10, 4  ;;  %p4885_p4 = pnand %p5935_p2, %p106_p3  ;;  %s4889_s21 = int_to_ptr.vmem [resolvable:$true] %s405_s21 }
  0x2a   : > { %s5997_s20 = scalar_select %p4885_p4, 1, 0 }
  0x2b   : > { %p4898_p8 = pneg %p4885_p4 }
  0x2d   : > { %s4881_s12 = scalar_lea.hbm %s5996_s1, %s3732_s29  ;;  %s4270_s11 = scalar_lea.hbm %s5996_s1, 256 }
  0x2e   : > { %s4265_s30 = scalar_lea.hbm %s4881_s12, 128  ;;  %p4271_p11 = scmp.lt.u32.totalorder %s4881_s12, %s5996_s1 }
  0x2f   : > { %p4266_p7 = scmp.ne.s32.totalorder %s4881_s12, %s4265_s30  ;;  %p4272_p12 = scmp.lt.u32.totalorder %s4270_s11, %s4265_s30 }
  0x30   : > { %p4274_p1 = scmp.lt.u32.totalorder %s4265_s30, %s4881_s12 }
  0x31   : > { %p4268_p9 = pnand %p4898_p8, %p4266_p7  ;;  %p4273_p13 = por %p4272_p12, %p4271_p11 }
  0x33   : > { %p4269_p10 = pneg %p4268_p9  ;;  %p4275_p3 = por %p4274_p1, %p4273_p13 }
  0x35   : > { %p4276_p2 = pnand %p4275_p3, %p4269_p10 }
  0x37   : > { %4279 = shalt.err (!%p4276_p2)
}
  0x38   : > { %s4280_s19 = scalar_lea.vmem %s4889_s21, 128  ;;  %s4725_s10 = smov [#allocation7]  }
  0x39   : > { %p4281_p7 = scmp.ne.s32.totalorder %s4889_s21, %s4280_s19  ;;  %s4285_s28 = sshll.u32 %s4725_s10, 4  ;;  %s4286_s28 = int_to_ptr.vmem [resolvable:$false] %s4285_s28 }
  0x3a   : > { %s4287_s8 = scalar_lea.vmem %s4286_s28, 256  ;;  %p4288_p5 = scmp.lt.s32.totalorder %s4889_s21, %s4286_s28 }
  0x3b   : > { %p4283_p9 = pnand %p4281_p7, %p4898_p8  ;;  %p4289_p6 = scmp.lt.s32.totalorder %s4287_s8, %s4280_s19 }
  0x3d   : > { %p4284_p0 = pneg %p4283_p9  ;;  %p4290_p11 = por %p4289_p6, %p4288_p5 }
  0x3f   : > { %p4291_p12 = pnand %p4290_p11, %p4284_p0 }
  0x41   : > { %4294 = shalt.err (!%p4291_p12)
}
  0x42   : > { %s5999_s9 = scalar_lea.sflag [#allocation8], %s4871_s26  ;;  %p6000_p2 = scmp.lt.s32.totalorder %s4723_s25, 9 }
  0x43   : > { %4078 = dma.hbm_to_vmem [thread:$0]  (!%p4885_p4), %s4881_s12, 128, %s4889_s21, %s5999_s9  }
  0x44   : > { %p6001_p10 = scmp.ge.s32.totalorder %s4723_s25, 1  ;;  %s4932_s30 = sshll.u32 %s4719_s24, 4 }
  0x45   : > { %6004 = sst [smem:[#allocation36_spill]] %s4932_s30  ;;  %s6005_s3 = sld [smem:[#allocation63_spill]] }
  0x46   : > { %p4927_p13 = pnand %p6001_p10, %p6000_p2  ;;  %s433_s8 = scalar_lea.vmem [#allocation10], %s4874_s27 }
  0x47   : > { %s440_s21 = sshll.u32 %s433_s8, 4  ;;  %s441_s21 = int_to_ptr.vmem [resolvable:$true] %s440_s21 }
  0x48   : > { %s6002_s19 = scalar_select %p4927_p13, 1, 0 }
  0x4a   : > { %6003 = sst [smem:[#allocation35_spill]] %s6002_s19 }
  0x4b   : > { %s4938_s28 = scalar_lea.hbm %s6005_s3, %s4932_s30  ;;  %s4300_s6 = scalar_lea.hbm %s6005_s3, 32 }
  0x4c   : > { %s4295_s9 = scalar_lea.hbm %s4938_s28, 16  ;;  %p4301_p1 = scmp.lt.u32.totalorder %s4938_s28, %s6005_s3 }
  0x4d   : > { %p4296_p0 = scmp.ne.s32.totalorder %s4938_s28, %s4295_s9  ;;  %p4302_p3 = scmp.lt.u32.totalorder %s4300_s6, %s4295_s9 }
  0x4e   : > { %p4304_p9 = scmp.lt.u32.totalorder %s4295_s9, %s4938_s28 }
  0x4f   : > { %p4298_p5 = pnand %p4296_p0, %p4898_p8  ;;  %p4303_p7 = por %p4302_p3, %p4301_p1 }
  0x51   : > { %p4299_p6 = pneg %p4298_p5  ;;  %p4305_p11 = por %p4304_p9, %p4303_p7 }
  0x53   : > { %p4306_p12 = pnand %p4305_p11, %p4299_p6 }
  0x55   : > { %4309 = shalt.err (!%p4306_p12)
}
  0x56   : > { %s4310_s8 = scalar_lea.vmem %s441_s21, 16  ;;  %s4726_s12 = smov [#allocation10]  }
  0x57   : > { %p4311_p2 = scmp.ne.s32.totalorder %s441_s21, %s4310_s8  ;;  %s4315_s4 = sshll.u32 %s4726_s12, 4  ;;  %s4316_s4 = int_to_ptr.vmem [resolvable:$false] %s4315_s4 }
  0x58   : > { %s4317_s1 = scalar_lea.vmem %s4316_s4, 32  ;;  %p4318_p5 = scmp.lt.s32.totalorder %s441_s21, %s4316_s4 }
  0x59   : > { %p4313_p10 = pnand %p4311_p2, %p4898_p8  ;;  %p4319_p13 = scmp.lt.s32.totalorder %s4317_s1, %s4310_s8 }
  0x5b   : > { %p4314_p0 = pneg %p4313_p10  ;;  %p4320_p4 = por %p4319_p13, %p4318_p5 }
  0x5d   : > { %p4321_p1 = pnand %p4320_p4, %p4314_p0 }
  0x5f   : > { %4324 = shalt.err (!%p4321_p1)
}
  0x60   : > { %p6006_p3 = scmp.ne.s32.totalorder %s5997_s20, 0  ;;  %s6007_s6 = scalar_lea.sflag [#allocation11], %s4871_s26 }
  0x61   : > { %s6008_s5 = sld [smem:[#allocation65_spill]]  ;;  %s471_s9 = scalar_lea.vmem [#allocation13], %s4874_s27 }
  0x62   : > { %4084 = dma.hbm_to_vmem [thread:$0]  (!%p6006_p3), %s4938_s28, 16, %s441_s21, %s6007_s6  }
  0x63   : > { %s478_s11 = sshll.u32 %s471_s9, 4  ;;  %s4969_s10 = sshll.u32 %s4874_s27, 4  ;;  %s4971_s11 = int_to_ptr.vmem [resolvable:$true] %s478_s11 }
  0x64   : > { %s4974_s8 = sshll.u32 %s4719_s24, 8  ;;  %s5942_s1 = scalar_lea.sflag [#allocation14], %s4871_s26 }
  0x67   : > { %s4965_s4 = scalar_lea.hbm %s6008_s5, %s4932_s30  ;;  %s4330_s6 = scalar_lea.hbm %s6008_s5, 32 }
  0x68   : > { %s4325_s3 = scalar_lea.hbm %s4965_s4, 16  ;;  %p4331_p7 = scmp.lt.u32.totalorder %s4965_s4, %s6008_s5 }
  0x69   : > { %p4326_p4 = scmp.ne.s32.totalorder %s4965_s4, %s4325_s3  ;;  %p4332_p9 = scmp.lt.u32.totalorder %s4330_s6, %s4325_s3 }
  0x6a   : > { %p4334_p12 = scmp.lt.u32.totalorder %s4325_s3, %s4965_s4 }
  0x6b   : > { %p4328_p13 = pnand %p4326_p4, %p4898_p8  ;;  %p4333_p11 = por %p4332_p9, %p4331_p7 }
  0x6d   : > { %p4329_p6 = pneg %p4328_p13  ;;  %p4335_p2 = por %p4334_p12, %p4333_p11 }
  0x6f   : > { %p4336_p10 = pnand %p4335_p2, %p4329_p6 }
  0x71   : > { %4339 = shalt.err (!%p4336_p10)
}
  0x72   : > { %s4340_s9 = scalar_lea.vmem %s4971_s11, 16  ;;  %s4727_s28 = smov [#allocation13]  }
  0x73   : > { %p4341_p0 = scmp.ne.s32.totalorder %s4971_s11, %s4340_s9  ;;  %s4345_s21 = sshll.u32 %s4727_s28, 4  ;;  %s4346_s21 = int_to_ptr.vmem [resolvable:$false] %s4345_s21 }
  0x74   : > { %s4347_s19 = scalar_lea.vmem %s4346_s21, 32  ;;  %p4348_p4 = scmp.lt.s32.totalorder %s4971_s11, %s4346_s21 }
  0x75   : > { %p4343_p5 = pnand %p4341_p0, %p4898_p8  ;;  %p4349_p13 = scmp.lt.s32.totalorder %s4347_s19, %s4340_s9 }
  0x77   : > { %p4344_p1 = pneg %p4343_p5  ;;  %p4350_p7 = por %p4349_p13, %p4348_p4 }
  0x79   : > { %p4351_p9 = pnand %p4350_p7, %p4344_p1 }
  0x7b   : > { %4354 = shalt.err (!%p4351_p9)
}
  0x7c   : > { %4090 = dma.hbm_to_vmem [thread:$0]  (!%p6006_p3), %s4965_s4, 16, %s4971_s11, %s5942_s1  }
  0x7d   : > { %s6009_s7 = sld [smem:[#allocation67_spill]]  ;;  %s506_s9 = scalar_lea.vmem [#allocation16], %s4969_s10 }
  0x7e   : > { %s513_s28 = sshll.u32 %s506_s9, 4  ;;  %s5943_s21 = scalar_lea.sflag [#allocation17], %s4871_s26  ;;  %s5007_s28 = int_to_ptr.vmem [resolvable:$true] %s513_s28 }
  0x83   : > { %s5004_s12 = scalar_lea.hbm %s6009_s7, %s4974_s8  ;;  %s4360_s3 = scalar_lea.hbm %s6009_s7, 512 }
  0x84   : > { %s4355_s19 = scalar_lea.hbm %s5004_s12, 256  ;;  %p4361_p2 = scmp.lt.u32.totalorder %s5004_s12, %s6009_s7 }
  0x85   : > { %p4356_p6 = scmp.ne.s32.totalorder %s5004_s12, %s4355_s19  ;;  %p4362_p10 = scmp.lt.u32.totalorder %s4360_s3, %s4355_s19 }
  0x86   : > { %p4364_p5 = scmp.lt.u32.totalorder %s4355_s19, %s5004_s12 }
  0x87   : > { %p4358_p11 = pnand %p4356_p6, %p4898_p8  ;;  %p4363_p0 = por %p4362_p10, %p4361_p2 }
  0x89   : > { %p4359_p12 = pneg %p4358_p11  ;;  %p4365_p1 = por %p4364_p5, %p4363_p0 }
  0x8b   : > { %p4366_p4 = pnand %p4365_p1, %p4359_p12 }
  0x8d   : > { %4369 = shalt.err (!%p4366_p4)
}
  0x8e   : > { %s4370_s9 = scalar_lea.vmem %s5007_s28, 256  ;;  %s4728_s4 = smov [#allocation16]  }
  0x8f   : > { %p4371_p13 = scmp.ne.s32.totalorder %s5007_s28, %s4370_s9  ;;  %s4375_s11 = sshll.u32 %s4728_s4, 4  ;;  %s4376_s11 = int_to_ptr.vmem [resolvable:$false] %s4375_s11 }
  0x90   : > { %s4377_s1 = scalar_lea.vmem %s4376_s11, 512  ;;  %p4378_p6 = scmp.lt.s32.totalorder %s5007_s28, %s4376_s11 }
  0x91   : > { %p4373_p7 = pnand %p4371_p13, %p4898_p8  ;;  %p4379_p11 = scmp.lt.s32.totalorder %s4377_s1, %s4370_s9 }
  0x93   : > { %p4374_p9 = pneg %p4373_p7  ;;  %p4380_p2 = por %p4379_p11, %p4378_p6 }
  0x95   : > { %p4381_p10 = pnand %p4380_p2, %p4374_p9 }
  0x97   : > { %4384 = shalt.err (!%p4381_p10)
}
  0x98   : > { %s5944_s19 = smov 128   ;;  %s5946_s3 = smov 8  }
  0x99   : > { %4096 = dma.hbm_to_vmem [thread:$0]  (!%p6006_p3), %s5004_s12, 256, %s5007_s28, %s5943_s21, %s5944_s19, %s5944_s19, %s5946_s3  }
  0x9a   : > { %s5037_s6 = sadd.s32 4294967295, %s4723_s25   ;;  %s3724_s9 = sadd.s32 4294967294, %s4723_s25  }
  0x9b   : > { %6010 = sst [smem:[#allocation37_spill]] %s5037_s6  ;;  %s53_s4 = sadd.s32 1, %s4711_s22 }
  0x9c   : > { %p54_p12 = scmp.ge.s32.totalorder %s53_s4, 2  ;;  %s56_s11 = sadd.s32 1, %s4715_s23 }
  0x9d   : > { %s60_s1 = sadd.s32 1, %s4719_s24  ;;  %p78_p0 = scmp.ne.s32.totalorder %s4695_s18, %s4691_s17 }
  0x9e   : > { %s6119_s4 = smov (%p54_p12, %s53_s4), 0  ;;  %s6121_s11 = smov (!%p54_p12, %s56_s11), %s4715_s23 }
  0x9f   : > { %6011 = sst [smem:[#allocation38_spill]] %s6119_s4  ;;  %s67_s12 = ssub.s32 %s4711_s22, %s6119_s4 }
  0xa0   : > { %p58_p5 = scmp.ge.s32.totalorder %s6121_s11, 2  ;;  %p84_p1 = scmp.ne.s32.totalorder %s4691_s17, %s4687_s16 }
  0xa1   : > { %p6012_p4 = scmp.eq.s32.totalorder %s4723_s25, 0  ;;  %p85_p7 = scmp.eq.s32.totalorder %s5037_s6, 0 }
  0xa2   : > { %s6123_s11 = smov (%p58_p5, %s6121_s11), 0  ;;  %s6125_s1 = smov (!%p58_p5, %s60_s1), %s4719_s24 }
  0xa3   : > { %p5058_p13 = por %p6012_p4, %p78_p0  ;;  %6014 = sst [smem:[#allocation39_spill]] %s6123_s11 }
  0xa4   : > { %s65_s21 = ssub.s32 %s4715_s23, %s6123_s11  ;;  %p5071_p9 = por %p85_p7, %p84_p1 }
  0xa5   : > { %p62_p6 = scmp.ge.s32.totalorder %s6125_s1, 2  ;;  %s97_s3 = sadd.s32 1, %s4683_s15 }
  0xa6   : > { %s6015_s19 = scalar_select %p5071_p9, 1, 0 }
  0xa7   : > { %p110_p11 = scmp.ne.s32.totalorder %s4679_s14, %s4675_s13  ;;  %p346_p2 = scmp.eq.s32.totalorder %s5037_s6, 7 }
  0xa8   : > { %6016 = sst [smem:[#allocation40_spill]] %s6015_s19  ;;  %s6127_s1 = smov (%p62_p6, %s6125_s1), 0 }
  0xa9   : > { %6017 = sst [smem:[#allocation41_spill]] %s6127_s1  ;;  %p5081_p10 = por %p110_p11, %p85_p7 }
  0xaa   : > { %p5088_p12 = por %p346_p2, %p78_p0  ;;  %s64_s11 = ssub.s32 %s4719_s24, %s6127_s1 }
  0xab   : > { %s6018_s5 = scalar_select %p5081_p10, 1, 0 }
  0xac   : > { %s6020_s7 = scalar_select %p5088_p12, 1, 0 }
  0xad   : > { %6019 = sst [smem:[#allocation42_spill]] %s6018_s5  ;;  %p352_p5 = scmp.eq.s32.totalorder %s3724_s9, 7 }
  0xae   : > { %6021 = sst [smem:[#allocation43_spill]] %s6020_s7  ;;  %s66_s4 = sor.u32 %s65_s21, %s64_s11 }
  0xaf   : > { %p95_p4 = scmp.eq.s32.totalorder %s64_s11, 0  ;;  %s68_s13 = sor.u32 %s67_s12, %s66_s4 }
  0xb0   : > { %p5097_p6 = por %p352_p5, %p84_p1  ;;  %p69_p7 = scmp.eq.s32.totalorder %s68_s13, 0 }
  0xb1   : > { %s372_s5 = sand.u32 1, %s4695_s18   ;;  %s6024_s19 = sadd.s32 1, %s4695_s18 }
  0xb2   : > { %s6022_s14 = scalar_select %p5097_p6, 1, 0 }
  0xb3   : > { %s5103_s6 = scalar_select %p95_p4, %s4683_s15, %s97_s3  }
  0xb4   : > { %6023 = sst [smem:[#allocation44_spill]] %s6022_s14  ;;  %s3727_s9 = sshll.u32 %s372_s5, 3 }
  0xb5   : > { %s5108_s7 = scalar_select %p69_p7, %s4695_s18, %s6024_s19  }
  0xb6   : > { %s3728_s21 = sshll.u32 %s4715_s23, 1  ;;  %s3729_s4 = sshll.u32 %s4719_s24, 2 }
  0xb7   : > { %s381_s11 = sadd.s32 %s4711_s22, %s3728_s21  ;;  %s376_s1 = scalar_lea.vmem [#allocation4], %s3727_s9 }
  0xb8   : > { %s383_s12 = sadd.s32 %s3729_s4, %s381_s11  ;;  %s387_s16 = sshll.u32 %s376_s1, 4  ;;  %s5113_s16 = int_to_ptr.vmem [resolvable:$true] %s387_s16 }
  0xb9   : > { %s3730_s17 = sshll.u32 %s383_s12, 7  ;;  %s6025_s0 = sld [smem:[#allocation60_spill]] }
  0xba   : > { %p6026_p0 = scmp.lt.s32.totalorder %s4723_s25, 8  ;;  %s3733_s3 = sshll.u32 %s4874_s27, 2 }
  0xbb   : > { %s3734_s1 = sshll.u32 %s4719_s24, 6  ;;  %s373_s9 = scalar_lea.sflag [#allocation5], %s372_s5 }
  0xbc   : > { %p5124_p1 = pnand %p6026_p0, %p5058_p13 }
  0xbe   : > { %p4387_p2 = pneg %p5124_p1 }
  0xbf   : > { %s5118_s13 = scalar_lea.hbm %s6025_s0, %s3730_s17  ;;  %s4390_s30 = scalar_lea.hbm %s6025_s0, 1024 }
  0xc0   : > { %s4385_s21 = scalar_lea.hbm %s5118_s13, 128  ;;  %p4391_p13 = scmp.lt.u32.totalorder %s5118_s13, %s6025_s0 }
  0xc1   : > { %p4386_p11 = scmp.ne.s32.totalorder %s5118_s13, %s4385_s21  ;;  %p4392_p7 = scmp.lt.u32.totalorder %s4390_s30, %s4385_s21 }
  0xc2   : > { %p4394_p6 = scmp.lt.u32.totalorder %s4385_s21, %s5118_s13 }
  0xc3   : > { %p4388_p5 = pnand %p4387_p2, %p4386_p11  ;;  %p4393_p0 = por %p4392_p7, %p4391_p13 }
  0xc5   : > { %p4389_p4 = pneg %p4388_p5  ;;  %p4395_p12 = por %p4394_p6, %p4393_p0 }
  0xc7   : > { %p4396_p10 = pnand %p4395_p12, %p4389_p4 }
  0xc9   : > { %4399 = shalt.err (!%p4396_p10)
}
  0xca   : > { %s4400_s5 = scalar_lea.vmem %s5113_s16, 128  ;;  %s4731_s4 = smov [#allocation4]  }
  0xcb   : > { %p4401_p11 = scmp.ne.s32.totalorder %s5113_s16, %s4400_s5  ;;  %s4405_s12 = sshll.u32 %s4731_s4, 4  ;;  %s4406_s12 = int_to_ptr.vmem [resolvable:$false] %s4405_s12 }
  0xcc   : > { %s4407_s14 = scalar_lea.vmem %s4406_s12, 256  ;;  %p4408_p3 = scmp.lt.s32.totalorder %s5113_s16, %s4406_s12 }
  0xcd   : > { %p4403_p5 = pnand %p4401_p11, %p4387_p2  ;;  %p4409_p13 = scmp.lt.s32.totalorder %s4407_s14, %s4400_s5 }
  0xcf   : > { %p4404_p9 = pneg %p4403_p5  ;;  %p4410_p7 = por %p4409_p13, %p4408_p3 }
  0xd1   : > { %p4411_p6 = pnand %p4410_p7, %p4404_p9 }
  0xd3   : > { %4414 = shalt.err (!%p4411_p6)
}
  0xd4   : > { %4075 = dma.hbm_to_vmem [thread:$0]  (!%p5124_p1), %s5118_s13, 128, %s5113_s16, %s373_s9  }
  0xd5   : > { %s6028_s2 = sld [smem:[#allocation62_spill]]  ;;  %s416_s28 = scalar_lea.vmem [#allocation9], %s3733_s3 }
  0xd6   : > { %s423_s11 = sshll.u32 %s416_s28, 4  ;;  %s424_s11 = int_to_ptr.vmem [resolvable:$true] %s423_s11 }
  0xdb   : > { %s5160_s30 = scalar_lea.hbm %s6028_s2, %s3734_s1  ;;  %s4420_s9 = scalar_lea.hbm %s6028_s2, 128 }
  0xdc   : > { %s4415_s19 = scalar_lea.hbm %s5160_s30, 64  ;;  %p4421_p12 = scmp.lt.u32.totalorder %s5160_s30, %s6028_s2 }
  0xdd   : > { %p4416_p3 = scmp.ne.s32.totalorder %s5160_s30, %s4415_s19  ;;  %p4422_p1 = scmp.lt.u32.totalorder %s4420_s9, %s4415_s19 }
  0xde   : > { %p4424_p4 = scmp.lt.u32.totalorder %s4415_s19, %s5160_s30 }
  0xdf   : > { %p4418_p9 = pnand %p4416_p3, %p4898_p8  ;;  %p4423_p2 = por %p4422_p1, %p4421_p12 }
  0xe1   : > { %p4419_p10 = pneg %p4418_p9  ;;  %p4425_p0 = por %p4424_p4, %p4423_p2 }
  0xe3   : > { %p4426_p11 = pnand %p4425_p0, %p4419_p10 }
  0xe5   : > { %4429 = shalt.err (!%p4426_p11)
}
  0xe6   : > { %s4430_s3 = scalar_lea.vmem %s424_s11, 64  ;;  %s4732_s4 = smov [#allocation9]  }
  0xe7   : > { %p4431_p5 = scmp.ne.s32.totalorder %s424_s11, %s4430_s3  ;;  %s4435_s12 = sshll.u32 %s4732_s4, 4  ;;  %s4436_s12 = int_to_ptr.vmem [resolvable:$false] %s4435_s12 }
  0xe8   : > { %s4437_s14 = scalar_lea.vmem %s4436_s12, 128  ;;  %p4438_p6 = scmp.lt.s32.totalorder %s424_s11, %s4436_s12 }
  0xe9   : > { %p4433_p13 = pnand %p4431_p5, %p4898_p8  ;;  %p4439_p3 = scmp.lt.s32.totalorder %s4437_s14, %s4430_s3 }
  0xeb   : > { %p4434_p7 = pneg %p4433_p13  ;;  %p4440_p9 = por %p4439_p3, %p4438_p6 }
  0xed   : > { %p4441_p1 = pnand %p4440_p9, %p4434_p7 }
  0xef   : > { %4444 = shalt.err (!%p4441_p1)
}
  0xf0   : > { %p6029_p12 = scmp.ne.s32.totalorder %s5997_s20, 0  ;;  %s6030_s21 = scalar_lea.sflag [#allocation8], %s4871_s26 }
  0xf1   : > { %s6031_s19 = sld [smem:[#allocation64_spill]]  ;;  %s451_s13 = scalar_lea.vmem [#allocation12], %s4969_s10 }
  0xf2   : > { %4081 = dma.hbm_to_vmem [thread:$0]  (!%p6029_p12), %s5160_s30, 64, %s424_s11, %s6030_s21  }
  0xf3   : > { %s458_s5 = sshll.u32 %s451_s13, 4  ;;  %s5190_s5 = int_to_ptr.vmem [resolvable:$true] %s458_s5 }
  0xf7   : > { %s6032_s9 = smov %s6031_s19  ;;  %s5187_s16 = scalar_lea.hbm %s6031_s19, %s4974_s8 }
  0xf8   : > { %s4445_s1 = scalar_lea.hbm %s5187_s16, 256  ;;  %s4450_s11 = scalar_lea.hbm %s6032_s9, 512 }
  0xf9   : > { %p4446_p10 = scmp.ne.s32.totalorder %s5187_s16, %s4445_s1  ;;  %p4451_p0 = scmp.lt.u32.totalorder %s5187_s16, %s6032_s9 }
  0xfa   : > { %p4452_p11 = scmp.lt.u32.totalorder %s4450_s11, %s4445_s1  ;;  %p4454_p13 = scmp.lt.u32.totalorder %s4445_s1, %s5187_s16 }
  0xfb   : > { %p4448_p2 = pnand %p4446_p10, %p4898_p8 }
  0xfc   : > { %p4453_p5 = por %p4452_p11, %p4451_p0 }
  0xfd   : > { %p4449_p4 = pneg %p4448_p2 }
  0xfe   : > { %p4455_p7 = por %p4454_p13, %p4453_p5 }
 0x100   : > { %p4456_p6 = pnand %p4455_p7, %p4449_p4 }
 0x102   : > { %4459 = shalt.err (!%p4456_p6)
}
 0x103   : > { %s4460_s14 = scalar_lea.vmem %s5190_s5, 256  ;;  %s4733_s21 = smov [#allocation12]  }
 0x104   : > { %p4461_p3 = scmp.ne.s32.totalorder %s5190_s5, %s4460_s14  ;;  %s4465_s17 = sshll.u32 %s4733_s21, 4  ;;  %s4466_s17 = int_to_ptr.vmem [resolvable:$false] %s4465_s17 }
 0x105   : > { %s4467_s28 = scalar_lea.vmem %s4466_s17, 512  ;;  %p4468_p10 = scmp.lt.s32.totalorder %s5190_s5, %s4466_s17 }
 0x106   : > { %p4463_p9 = pnand %p4461_p3, %p4898_p8  ;;  %p4469_p2 = scmp.lt.s32.totalorder %s4467_s28, %s4460_s14 }
 0x108   : > { %p4464_p1 = pneg %p4463_p9  ;;  %p4470_p0 = por %p4469_p2, %p4468_p10 }
 0x10a   : > { %p4471_p11 = pnand %p4470_p0, %p4464_p1 }
 0x10c   : > { %4474 = shalt.err (!%p4471_p11)
}
 0x10d   : > { %s6033_s19 = smov 8   ;;  %s6034_s13 = smov 128  }
 0x10e   : > { %s6035_s1 = scalar_lea.sflag [#allocation11], %s4871_s26  ;;  %s6036_s3 = sld [smem:[#allocation36_spill]] }
 0x10f   : > { %4087 = dma.hbm_to_vmem [thread:$0]  (!%p6029_p12), %s5187_s16, 256, %s5190_s5, %s6035_s1, %s6034_s13, %s6034_s13, %s6033_s19  }
 0x110   : > { %s6037_s4 = sld [smem:[#allocation66_spill]]  ;;  %s488_s14 = scalar_lea.vmem [#allocation15], %s4874_s27 }
 0x111   : > { %s495_s21 = sshll.u32 %s488_s14, 4  ;;  %s496_s21 = int_to_ptr.vmem [resolvable:$true] %s495_s21 }
 0x116   : > { %s5222_s12 = scalar_lea.hbm %s6037_s4, %s6036_s3  ;;  %s4480_s16 = scalar_lea.hbm %s6037_s4, 32 }
 0x117   : > { %s4475_s17 = scalar_lea.hbm %s5222_s12, 16  ;;  %p4481_p7 = scmp.lt.u32.totalorder %s5222_s12, %s6037_s4 }
 0x118   : > { %p4476_p4 = scmp.ne.s32.totalorder %s5222_s12, %s4475_s17  ;;  %p4482_p6 = scmp.lt.u32.totalorder %s4480_s16, %s4475_s17 }
 0x119   : > { %p4484_p9 = scmp.lt.u32.totalorder %s4475_s17, %s5222_s12 }
 0x11a   : > { %p4478_p5 = pnand %p4476_p4, %p4898_p8  ;;  %p4483_p3 = por %p4482_p6, %p4481_p7 }
 0x11c   : > { %p4479_p13 = pneg %p4478_p5  ;;  %p4485_p1 = por %p4484_p9, %p4483_p3 }
 0x11e   : > { %p4486_p10 = pnand %p4485_p1, %p4479_p13 }
 0x120   : > { %4489 = shalt.err (!%p4486_p10)
}
 0x121   : > { %s4490_s30 = scalar_lea.vmem %s496_s21, 16  ;;  %s4734_s11 = smov [#allocation15]  }
 0x122   : > { %p4491_p2 = scmp.ne.s32.totalorder %s496_s21, %s4490_s30  ;;  %s4495_s14 = sshll.u32 %s4734_s11, 4  ;;  %s4496_s14 = int_to_ptr.vmem [resolvable:$false] %s4495_s14 }
 0x123   : > { %s4497_s0 = scalar_lea.vmem %s4496_s14, 32  ;;  %p4498_p4 = scmp.lt.s32.totalorder %s496_s21, %s4496_s14 }
 0x124   : > { %p4493_p0 = pnand %p4491_p2, %p4898_p8  ;;  %p4499_p5 = scmp.lt.s32.totalorder %s4497_s0, %s4490_s30 }
 0x126   : > { %p4494_p11 = pneg %p4493_p0  ;;  %p4500_p12 = por %p4499_p5, %p4498_p4 }
 0x128   : > { %p4501_p6 = pnand %p4500_p12, %p4494_p11 }
 0x12a   : > { %4504 = shalt.err (!%p4501_p6)
}
 0x12b   : > { %p6038_p7 = scmp.ne.s32.totalorder %s5997_s20, 0  ;;  %s6039_s17 = scalar_lea.sflag [#allocation14], %s4871_s26 }
 0x12c   : > { %s6040_s5 = sld [smem:[#allocation68_spill]]  ;;  %s526_s30 = scalar_lea.vmem [#allocation18], %s4874_s27 }
 0x12d   : > { %4093 = dma.hbm_to_vmem [thread:$0]  (!%p6038_p7), %s5222_s12, 16, %s496_s21, %s6039_s17  }
 0x12e   : > { %s533_s11 = sshll.u32 %s526_s30, 4  ;;  %s534_s11 = int_to_ptr.vmem [resolvable:$true] %s533_s11 }
 0x132   : > { %s5248_s1 = scalar_lea.hbm %s6040_s5, %s6036_s3  ;;  %s4510_s12 = scalar_lea.hbm %s6040_s5, 32 }
 0x133   : > { %s4505_s14 = scalar_lea.hbm %s5248_s1, 16  ;;  %p4511_p9 = scmp.lt.u32.totalorder %s5248_s1, %s6040_s5 }
 0x134   : > { %p4506_p12 = scmp.ne.s32.totalorder %s5248_s1, %s4505_s14  ;;  %p4512_p1 = scmp.lt.u32.totalorder %s4510_s12, %s4505_s14 }
 0x135   : > { %p4514_p2 = scmp.lt.u32.totalorder %s4505_s14, %s5248_s1 }
 0x136   : > { %p4508_p13 = pnand %p4506_p12, %p4898_p8  ;;  %p4513_p10 = por %p4512_p1, %p4511_p9 }
 0x138   : > { %p4509_p3 = pneg %p4508_p13  ;;  %p4515_p0 = por %p4514_p2, %p4513_p10 }
 0x13a   : > { %p4516_p11 = pnand %p4515_p0, %p4509_p3 }
 0x13c   : > { %4519 = shalt.err (!%p4516_p11)
}
 0x13d   : > { %s4520_s3 = scalar_lea.vmem %s534_s11, 16  ;;  %s4735_s28 = smov [#allocation18]  }
 0x13e   : > { %p4521_p4 = scmp.ne.s32.totalorder %s534_s11, %s4520_s3  ;;  %s4525_s16 = sshll.u32 %s4735_s28, 4  ;;  %s4526_s16 = int_to_ptr.vmem [resolvable:$false] %s4525_s16 }
 0x13f   : > { %s4527_s2 = scalar_lea.vmem %s4526_s16, 32  ;;  %p4528_p12 = scmp.lt.s32.totalorder %s534_s11, %s4526_s16 }
 0x140   : > { %p4523_p5 = pnand %p4521_p4, %p4898_p8  ;;  %p4529_p13 = scmp.lt.s32.totalorder %s4527_s2, %s4520_s3 }
 0x142   : > { %p4524_p6 = pneg %p4523_p5  ;;  %p4530_p7 = por %p4529_p13, %p4528_p12 }
 0x144   : > { %p4531_p1 = pnand %p4530_p7, %p4524_p6 }
 0x146   : > { %4534 = shalt.err (!%p4531_p1)
}
 0x147   : > { %p6041_p9 = scmp.ne.s32.totalorder %s5997_s20, 0  ;;  %s6042_s30 = scalar_lea.sflag [#allocation17], %s4871_s26 }
 0x148   : > { %s6043_s12 = sld [smem:[#allocation69_spill]]  ;;  %s544_s17 = scalar_lea.vmem [#allocation19], %s4969_s10 }
 0x149   : > { %4099 = dma.hbm_to_vmem [thread:$0]  (!%p6041_p9), %s5248_s1, 16, %s534_s11, %s6042_s30  }
 0x14a   : > { %s551_s3 = sshll.u32 %s544_s17, 4  ;;  %s541_s26 = scalar_lea.sflag [#allocation20], %s4874_s27  ;;  %s5277_s3 = int_to_ptr.vmem [resolvable:$true] %s551_s3 }
 0x14e   : > { %s5274_s21 = scalar_lea.hbm %s6043_s12, %s4974_s8  ;;  %s4540_s16 = scalar_lea.hbm %s6043_s12, 512 }
 0x14f   : > { %s4535_s28 = scalar_lea.hbm %s5274_s21, 256  ;;  %p4541_p2 = scmp.lt.u32.totalorder %s5274_s21, %s6043_s12 }
 0x150   : > { %p4536_p7 = scmp.ne.s32.totalorder %s5274_s21, %s4535_s28  ;;  %p4542_p0 = scmp.lt.u32.totalorder %s4540_s16, %s4535_s28 }
 0x151   : > { %p4544_p4 = scmp.lt.u32.totalorder %s4535_s28, %s5274_s21 }
 0x152   : > { %p4538_p3 = pnand %p4536_p7, %p4898_p8  ;;  %p4543_p11 = por %p4542_p0, %p4541_p2 }
 0x154   : > { %p4539_p10 = pneg %p4538_p3  ;;  %p4545_p5 = por %p4544_p4, %p4543_p11 }
 0x156   : > { %p4546_p6 = pnand %p4545_p5, %p4539_p10 }
 0x158   : > { %4549 = shalt.err (!%p4546_p6)
}
 0x159   : > { %s4550_s10 = scalar_lea.vmem %s5277_s3, 256  ;;  %s4736_s30 = smov [#allocation19]  }
 0x15a   : > { %p4551_p12 = scmp.ne.s32.totalorder %s5277_s3, %s4550_s10  ;;  %s4555_s14 = sshll.u32 %s4736_s30, 4  ;;  %s4556_s14 = int_to_ptr.vmem [resolvable:$false] %s4555_s14 }
 0x15b   : > { %s4557_s0 = scalar_lea.vmem %s4556_s14, 512  ;;  %p4558_p7 = scmp.lt.s32.totalorder %s5277_s3, %s4556_s14 }
 0x15c   : > { %p4553_p13 = pnand %p4551_p12, %p4898_p8  ;;  %p4559_p3 = scmp.lt.s32.totalorder %s4557_s0, %s4550_s10 }
 0x15e   : > { %p4554_p1 = pneg %p4553_p13  ;;  %p4560_p2 = por %p4559_p3, %p4558_p7 }
 0x160   : > { %p4561_p0 = pnand %p4560_p2, %p4554_p1 }
 0x162   : > { %4564 = shalt.err (!%p4561_p0)
}
 0x163   : > { %4102 = dma.hbm_to_vmem [thread:$0]  (!%p6041_p9), %s5274_s21, 256, %s5277_s3, %s541_s26, %s6034_s13, %s6034_s13, %s6033_s19  }
 0x164   : > { %s6044_s29 = sld [smem:[#allocation35_spill]] }
 0x16a   : > { %p6045_p8 = scmp.ne.s32.totalorder %s6044_s29, 0 }
 0x16c   : > { %563 = sbr.rel (%p6045_p8) target bundleno = 1677 (0x68d), region = 60 }
 0x173   : > { %s6046_s17 = sld [smem:[#allocation31_spill]]  ;;  %s6047_s28 = sld [smem:[#allocation40_spill]] }
 0x179   : > { %s5309_s1 = sand.u32 1, %s6046_s17   ;;  %p6048_p10 = scmp.ne.s32.totalorder %s6047_s28, 0 }
 0x17a   : > { %s3749_s11 = sshll.u32 %s5309_s1, 3  ;;  %s566_s20 = scalar_lea.sflag [#allocation5], %s5309_s1 }
 0x17b   : > { %s5315_s16 = scalar_lea.vmem [#allocation4], %s3749_s11 }
 0x17c   : > { %4646 = dma.done.wait (%p6048_p10), %s566_s20, 128  }
 0x17d   : > { %4648 = vsyncadd (%p6048_p10), %s566_s20, 4294967168  ;;  %s6049_s27 = sld [smem:[#allocation37_spill]]  ;;  %s6050_s19 = sld [smem:[#allocation29_spill]] }
 0x17e   : > { %s6051_s13 = sld [smem:[#allocation42_spill]] }
 0x183   : > { %s574_s21 = sand.u32 1, %s6049_s27   ;;  %s5323_s3 = sand.u32 1, %s6050_s19  }
 0x184   : > { %s3750_s26 = sshll.u32 %s5323_s3, 3  ;;  %s575_s8 = scalar_lea.sflag [#allocation8], %s574_s21 }
 0x185   : > { %s5326_s2 = scalar_lea.vmem [#allocation7], %s3750_s26  ;;  %p6052_p9 = scmp.ne.s32.totalorder %s6051_s13, 0 }
 0x187   : > { %4650 = dma.done.wait (%p6052_p9), %s575_s8, 192  }
 0x188   : > { %4652 = vsyncadd (%p6052_p9), %s575_s8, 4294967104  ;;  %s3751_s10 = sshll.u32 %s5323_s3, 2  ;;  %s593_s14 = scalar_lea.sflag [#allocation11], %s574_s21 }
 0x189   : > { %s5333_s30 = scalar_lea.vmem [#allocation9], %s3751_s10  ;;  %s595_s0 = scalar_lea.vmem [#allocation10], %s5323_s3 }
 0x18a   : > { %4654 = dma.done.wait (%p6052_p9), %s593_s14, 272  }
 0x18b   : > { %4656 = vsyncadd (%p6052_p9), %s593_s14, 4294967024  ;;  %s5341_s29 = sshll.u32 %s5323_s3, 4  ;;  %s610_s28 = scalar_lea.sflag [#allocation14], %s574_s21 }
 0x18c   : > { %s604_s17 = scalar_lea.vmem [#allocation12], %s5341_s29  ;;  %s612_s20 = scalar_lea.vmem [#allocation13], %s5323_s3 }
 0x18d   : > { %4658 = dma.done.wait (%p6052_p9), %s610_s28, 32  }
 0x18e   : > { %4660 = vsyncadd (%p6052_p9), %s610_s28, 4294967264  ;;  %s620_s27 = scalar_lea.vmem [#allocation15], %s5323_s3  ;;  %s626_s19 = scalar_lea.sflag [#allocation17], %s574_s21 }
 0x18f   : > { %s629_s26 = scalar_lea.vmem [#allocation16], %s5341_s29 }
 0x190   : > { %4662 = dma.done.wait (%p6052_p9), %s626_s19, 272  }
 0x191   : > { %4664 = vsyncadd (%p6052_p9), %s626_s19, 4294967024  ;;  %s637_s8 = scalar_lea.vmem [#allocation18], %s5323_s3  ;;  %s643_s10 = scalar_lea.sflag [#allocation20], %s5323_s3 }
 0x192   : > { %s646_s14 = scalar_lea.vmem [#allocation19], %s5341_s29 }
 0x193   : > { %4666 = dma.done.wait (%p6052_p9), %s643_s10, 256  }
 0x194   : > { %4668 = vsyncadd (%p6052_p9), %s643_s10, 4294967040  ;;  %s5364_s21 = scalar_lea.vmem [#allocation21], %s3749_s11  ;;  %s6053_s28 = sld [smem:[#allocation32_spill]] }
 0x19a   : > { %p3756_p11 = scmp.ne.s32.totalorder %s6053_s28, 0 }
 0x19b   : > { %vm728_vm0 = vcmask (!%p3756_p11), 124928   ;;  %vm730_vm1 = vcmask (!%p3756_p11), 130048   ;;  %v4737_v0 = vmov (!%p3756_p11), 0.0  }
 0x19c   : > { %727 = sbr.rel (%p3756_p11) target bundleno = 419 (0x1a3), region = 104  ;;  %729 = vst.msk [vmem:[#allocation2] sm:$0x7] (!%p3756_p11), %vm728_vm0, %v4737_v0 }
 0x19d   : > { %731 = vst.msk [vmem:[#allocation3] sm:$0xff] (!%p3756_p11), %vm730_vm1, %v4737_v0  ;;  %732 = vst.msk [vmem:[#allocation3 + $0x8] sm:$0xff] (!%p3756_p11), %vm730_vm1, %v4737_v0 }
 0x1a3 PF: > { %v734_v1 = vld [vmem:[%s5326_s2] sm:$0xff]  ;;  %v733_v2 = vld [vmem:[%s5315_s16] sm:$0xff]  ;;  %vm735_vm2 = vcmask 64512   ;;  %v5971_v3 = vmov 0.0   ;;  %vm4739_vm3 = vmmov 0   ;;  %v5969_v17 = vmov 0.0|0.0  }
 0x1a4   : > { %3829 = vmatprep.subr.mxu0 %v5971_v3  ;;  %v740_v4 = vand.u32 4294901760, %v734_v1  ;;  %3831 = vmatprep.mubr.msk.f32.mxu0 %vm4739_vm3, %v5971_v3  ;;  %v737_v5 = vsel %vm735_vm2, %v733_v2, 0  ;;  %v1260_v15 = vld [vmem:[%s604_s17] sm:$0xff]  ;;  %v1261_v16 = vld [vmem:[%s604_s17 + $0x8] sm:$0xff]  ;;  %v1201_v32 = vlaneseq  ;;  %vm1190_vm4 = vcmask 1042432   ;;  %s4741_s11 = smov 112  }
 0x1a5   : > { %v805_v6 = vand.u32 4294901760, %v737_v5  ;;  %3863 = vmatprep.mubr.msk.f32.mxu1 %vm4739_vm3, %v5971_v3  ;;  %3973 = vmatprep.subr.bf16.mxu1 %v5969_v17  ;;  %v1267_v18 = vand.u32 4294901760, %v1260_v15  ;;  %v1270_v19 = vand.u32 4294901760, %v1261_v16  ;;  %v1185_v37 = vld [vmem:[%s5333_s30] sm:$0xf]  ;;  %vm1192_vm5 = vcmask 124928  }
 0x1a6   : > { %3830 = vmatpush3.msra.mxu0 %v740_v4  ;;  %v817_v7 = vsub.f32 %v734_v1, %v740_v4  ;;  %v5416_v33 = vshrl.u32 %v1201_v32, 7  ;;  %v1186_v43 = vld [vmem:[#allocation2] sm:$0x7]  ;;  %vm1215_vm6 = vcmask 1046528   ;;  %vm1229_vm7 = vcmask 1045504   ;;  %s6091_s16 = sld [smem:[#allocation33_spill]] }
 0x1a7   : > { %3834 = vmatprep.subr.mxu0 %v5971_v3  ;;  %v806_v8 = vsub.f32 %v737_v5, %v805_v6  ;;  %v5398_v20 = vpack.c.bf16 %v1270_v19, %v1267_v18  ;;  %v5400_v21 = vsub.f32 %v1260_v15, %v1267_v18  ;;  %v5402_v22 = vsub.f32 %v1261_v16, %v1270_v19  ;;  %v3757_v48 = vld [vmem:[%s595_s0] ss:$0 sm:$0xff]  ;;  %s6092_s13 = sld [smem:[#allocation32_spill]]  ;;  %s6093_s3 = sld [smem:[#allocation34_spill]] }
 0x1a8   : > { %v818_v9 = vand.u32 4294901760, %v817_v7  ;;  %v1209_v34 = vsub.s32 1, %v5416_v33  ;;  %v1223_v35 = vsub.s32 2, %v5416_v33  ;;  %v1237_v36 = vsub.s32 3, %v5416_v33  ;;  %s6096_s2 = sld [smem:[#allocation43_spill]] }
 0x1a9   : > { %v807_v10 = vand.u32 4294901760, %v806_v8  ;;  %3975 = vmatpush3.bf16.msra.mxu1 %v5398_v20  ;;  %v1346_v23 = vand.u32 4294901760, %v5400_v21  ;;  %v1353_v24 = vand.u32 4294901760, %v5402_v22  ;;  %v3980_v30 = vpack.c.bf16 %v5402_v22, %v5400_v21 }
 0x1aa   : > { %v819_v11 = vsub.f32 %v817_v7, %v818_v9  ;;  %3976 = vmatprep.subr.bf16.mxu1 %v5969_v17  ;;  %v5423_v38 = vsub.s32 0, %v5416_v33  ;;  %v1210_v39 = vrot.slane %v1185_v37, %v1209_v34  ;;  %v1224_v40 = vrot.slane %v1185_v37, %v1223_v35 }
 0x1ab   : > { %v808_v12 = vsub.f32 %v806_v8, %v807_v10  ;;  %v1347_v25 = vsub.f32 %v5400_v21, %v1346_v23  ;;  %v1354_v26 = vsub.f32 %v5402_v22, %v1353_v24  ;;  %v5414_v31 = vpack.c.bf16 %v1353_v24, %v1346_v23  ;;  %v1725_v21 = vld [vmem:[%s612_s20] sm:$0x1] }
 0x1ac   : > { %v820_v13 = vand.u32 4294901760, %v819_v11  ;;  %v1238_v41 = vrot.slane %v1185_v37, %v1237_v36  ;;  %v1204_v44 = vrot.slane %v1185_v37, %v5423_v38  ;;  %vm1243_vm8 = vcmask 1044480   ;;  %s3761_s30 = sshll.u32 %s6091_s16, 1 }
 0x1ad   : > { %v809_v14 = vand.u32 4294901760, %v808_v12  ;;  %v1348_v27 = vand.u32 4294901760, %v1347_v25  ;;  %v1355_v28 = vand.u32 4294901760, %v1354_v26  ;;  %vm1262_vm10 = vcmask 130048   ;;  %s3439_s0 = sadd.s32 %s6092_s13, %s3761_s30  ;;  %s3762_s29 = sshll.u32 %s6093_s3, 2 }
 0x1ae   : > { %vm1737_vm11 = vcmask 1040384   ;;  %vm1733_vm12 = vcmask 7168   ;;  %vm2945_vm14 = vcmask 1041409   ;;  %vm2948_vm15 = vcmask 1042434   ;;  %s3441_s17 = sadd.s32 %s3762_s29, %s3439_s0  ;;  %p6098_p5 = scmp.ne.s32.totalorder %s6096_s2, 0 }
 0x1af   : > { %3832 = vmatmul.mubr.f32.vlgmr.msra.gmra.mrb[0].mxu0 %v809_v14  ;;  %v5410_v29 = vpack.c.bf16 %v1355_v28, %v1348_v27  ;;  %v1739_v22 = vsel %vm1737_vm11, %v1725_v21, 0  ;;  %vm2951_vm0 = vcmask 1043459   ;;  %vm2954_vm1 = vcmask 1044484   ;;  %s3763_s20 = sshll.u32 %s3441_s17, 7 }
 0x1b0   : > { %3835 = vmatpush3.msra.mxu0 %v820_v13  ;;  %3836 = vmatprep.mubr.msk.f32.mxu0 %vm4739_vm3, %v5971_v3  ;;  %v5467_v25 = vand.u32 4294901760, %v1739_v22 }
 0x1b1   : > { %3839 = vmatprep.subr.mxu0 %v5971_v3 }
 0x1b7   : > { %3837 = vmatmul.mubr.f32.vlgmr.msra.gmra.mrb[0].mxu0 %v805_v6 }
 0x1b8   : > { %3840 = vmatpush3.msra.mxu0 %v817_v7  ;;  %3841 = vmatprep.mubr.msk.f32.mxu0 %vm4739_vm3, %v5971_v3 }
 0x1b9   : > { %3844 = vmatprep.subr.mxu0 %v5971_v3 }
 0x1bf   : > { %3842 = vmatmul.mubr.f32.vlgmr.msra.gmra.mrb[0].mxu0 %v806_v8 }
 0x1c0   : > { %3845 = vmatpush3.msra.mxu0 %v740_v4  ;;  %3846 = vmatprep.mubr.msk.f32.mxu0 %vm4739_vm3, %v5971_v3 }
 0x1c1   : > { %3849 = vmatprep.subr.mxu0 %v5971_v3 }
 0x1c7   : > { %3847 = vmatmul.mubr.f32.vlgmr.msra.gmra.mrb[0].mxu0 %v807_v10 }
 0x1c8   : > { %3850 = vmatpush3.msra.mxu0 %v818_v9  ;;  %3851 = vmatprep.mubr.msk.f32.mxu0 %vm4739_vm3, %v5971_v3 }
 0x1c9   : > { %3854 = vmatprep.subr.mxu0 %v5971_v3 }
 0x1cf   : > { %3852 = vmatmul.mubr.f32.vlgmr.msra.gmra.mrb[0].mxu0 %v805_v6 }
 0x1d0   : > { %3855 = vmatpush3.msra.mxu0 %v740_v4  ;;  %3856 = vmatprep.mubr.msk.f32.mxu0 %vm4739_vm3, %v5971_v3 }
 0x1d1   : > { %3901 = vmatprep.subr.mxu0 %v5971_v3 }
 0x1d7   : > { %3857 = vmatmul.mubr.f32.vlgmr.msra.gmra.mrb[0].mxu0 %v805_v6 }
 0x1d8   : > { %3903 = vmatprep.mubr.msk.f32.mxu0 %vm4739_vm3, %v5971_v3  ;;  %3902 = vmatpush3.msra.mxu0 %v5467_v25 }
 0x1d9   : > { %3906 = vmatprep.subr.mxu0 %v5971_v3 }
 0x2aa   : > { %v5431_v42 = vpop.f32.mrb[0].mxu0 }
 0x2ab   : > { %v1188_v45 = vrot.slane %v5431_v42, 5  ;;  %v3858_v46 = vpop.f32.mrb[1].mxu0  ;;  %vm2887_vm13 = vcmp.ge.f32.partialorder %v5431_v42, 0.0 }
 0x2ad   : > { %v1191_v47 = vsel %vm1190_vm4, %v1186_v43, %v1188_v45  ;;  %1193 = vst.msk [vmem:[#allocation2] sm:$0x7] %vm1192_vm5, %v1188_v45  ;;  %v1212_v49 = vmul.f32 %v1210_v39, %v1188_v45  ;;  %v1226_v50 = vmul.f32 %v1224_v40, %v1188_v45  ;;  %v1240_v51 = vmul.f32 %v1238_v41, %v1188_v45 }
 0x2ae   : > { %v1205_v52 = vmul.f32 %v1204_v44, %v1191_v47  ;;  %v1211_v53 = vmul.f32 %v1210_v39, %v1191_v47  ;;  %v1225_v54 = vmul.f32 %v1224_v40, %v1191_v47  ;;  %v1239_v55 = vmul.f32 %v1238_v41, %v1191_v47 }
 0x2af   : > { %v1217_v56 = vrot.slane %v1212_v49, 1  ;;  %v1231_v60 = vrot.slane %v1226_v50, 2  ;;  %v1245_v63 = vrot.slane %v1240_v51, 3  ;;  %v2883_v45 = vand.u32 2147483647, %v5431_v42 }
 0x2b0   : > { %v1206_v57 = vadd.f32 %v3757_v48, %v1205_v52  ;;  %v1216_v58 = vrot.slane %v1211_v53, 1  ;;  %v1230_v59 = vrot.slane %v1225_v54, 2  ;;  %v1244_v62 = vrot.slane %v1239_v55, 3 }
 0x2b1   : > { %v2386_v47 = vsub.s32 4, %v5416_v33  ;;  %v2398_v49 = vsub.s32 5, %v5416_v33  ;;  %v2410_v51 = vsub.s32 6, %v5416_v33  ;;  %v2422_v53 = vsub.s32 7, %v5416_v33 }
 0x2b2   : > { %v1218_v61 = vsel %vm1215_vm6, %v1216_v58, %v1217_v56  ;;  %v1232_v1 = vsel %vm1229_vm7, %v1230_v59, %v1231_v60  ;;  %v1246_v4 = vsel %vm1243_vm8, %v1244_v62, %v1245_v63  ;;  %vm2957_vm4 = vcmask 1045509  }
 0x2b3   : > { %v1220_v0 = vadd.f32 %v1218_v61, %v1206_v57  ;;  %vm2960_vm5 = vcmask 1046534   ;;  %vm2963_vm6 = vcmask 1047559  }
 0x2b5   : > { %v1234_v2 = vadd.f32 %v1232_v1, %v1220_v0 }
 0x2b7   : > { %v1248_v5 = vadd.f32 %v1246_v4, %v1234_v2 }
 0x2b9   : > { %v1249_v6 = vand.u32 2147483647, %v1248_v5  ;;  %vm1253_vm9 = vcmp.ge.f32.partialorder %v1248_v5, 0.0 }
 0x2bb   : > { %v1250_v7 = vsub.f32 0.0, %v1249_v6 }
 0x2bd   : > { %v1251_v8 = vmul.f32 1.442695, %v1250_v7 }
 0x2bf   : > { %4221 = vpow2.f32 %v1251_v8 }
 0x2c9   : > { %v4222_v9 = vpop.eup %4221 }
 0x2ca   : > { %v1254_v10 = vadd.f32 1.0, %v4222_v9 }
 0x2cc   : > { %4223 = vrcp.f32 %v1254_v10 }
 0x2d6   : > { %v4224_v11 = vpop.eup %4223 }
 0x2d7   : > { %v1257_v12 = vmul.f32 %v4224_v11, %v4222_v9 }
 0x2d9   : > { %v1258_v13 = vsel %vm1253_vm9, %v4224_v11, %v1257_v12  ;;  %v3758_v11 = vld [vmem:[%s620_s27] ss:$0 sm:$0xff]  ;;  %s3445_s27 = sshll.u32 %s5364_s21, 4  ;;  %s5846_s27 = int_to_ptr.vmem [resolvable:$true] %s3445_s27 }
 0x2da   : > { %v5437_v14 = vmul.f32 %v1258_v13, %v1248_v5  ;;  %v2935_v5 = vld [vmem:[%s646_s14 + $0x8] sm:$0xff]  ;;  %s4565_s28 = scalar_lea.vmem %s5846_s27, 128 }
 0x2db   : > { %v2971_v7 = vand.u32 4294901760, %v2935_v5  ;;  %p4566_p4 = scmp.ne.s32.totalorder %s5846_s27, %s4565_s28 }
 0x2dc   : > { %v1264_v15 = vsel %vm1262_vm10, %v5437_v14, 0 }
 0x2dd   : > { %v1333_v16 = vand.u32 4294901760, %v1264_v15  ;;  %v5522_v10 = vsub.f32 %v2935_v5, %v2971_v7  ;;  %p4567_p6 = pnand %p4566_p4, %p6098_p5 }
 0x2df   : > { %v1334_v18 = vsub.f32 %v1264_v15, %v1333_v16  ;;  %6056 = vst [vmem:[#allocation47_spill] sm:$0xff] %v5522_v10  ;;  %p4568_p12 = pneg %p4567_p6 }
 0x2e1   : > { %v1335_v19 = vand.u32 4294901760, %v1334_v18 }
 0x2e3   : > { %v1336_v23 = vsub.f32 %v1334_v18, %v1335_v19 }
 0x2e5   : > { %v1337_v24 = vand.u32 4294901760, %v1336_v23 }
 0x2e7   : > { %3864 = vmatmul.mubr.f32.vlgmr.msra.gmra.mrb[0].mxu1 %v1337_v24 }
 0x2e8   : > { %3978 = vmatpush3.bf16.msra.mxu1 %v5410_v29  ;;  %3870 = vmatprep.mubr.msk.f32.mxu1 %vm4739_vm3, %v5971_v3 }
 0x2e9   : > { %3979 = vmatprep.subr.bf16.mxu1 %v5969_v17 }
 0x2ef   : > { %3871 = vmatmul.mubr.f32.vlgmr.msra.gmra.mrb[0].mxu1 %v1333_v16 }
 0x2f0   : > { %3981 = vmatpush3.bf16.msra.mxu1 %v3980_v30  ;;  %3877 = vmatprep.mubr.msk.f32.mxu1 %vm4739_vm3, %v5971_v3 }
 0x2f1   : > { %3982 = vmatprep.subr.bf16.mxu1 %v5969_v17 }
 0x2f7   : > { %3878 = vmatmul.mubr.f32.vlgmr.msra.gmra.mrb[0].mxu1 %v1334_v18 }
 0x2f8   : > { %3984 = vmatpush3.bf16.msra.mxu1 %v5398_v20  ;;  %3884 = vmatprep.mubr.msk.f32.mxu1 %vm4739_vm3, %v5971_v3 }
 0x2f9   : > { %3985 = vmatprep.subr.bf16.mxu1 %v5969_v17 }
 0x2ff   : > { %3885 = vmatmul.mubr.f32.vlgmr.msra.gmra.mrb[0].mxu1 %v1335_v19 }
 0x300   : > { %3987 = vmatpush3.bf16.msra.mxu1 %v5414_v31  ;;  %3891 = vmatprep.mubr.msk.f32.mxu1 %vm4739_vm3, %v5971_v3 }
 0x301   : > { %3988 = vmatprep.subr.bf16.mxu1 %v5969_v17 }
 0x307   : > { %3892 = vmatmul.mubr.f32.vlgmr.msra.gmra.mrb[0].mxu1 %v1333_v16 }
 0x308   : > { %3990 = vmatpush3.bf16.msra.mxu1 %v5398_v20  ;;  %3898 = vmatprep.mubr.msk.f32.mxu1 %vm4739_vm3, %v5971_v3  ;;  %v1819_v20 = vsub.f32 %v1739_v22, %v5467_v25 }
 0x309   : > { %3991 = vmatprep.subr.bf16.mxu1 %v5969_v17 }
 0x30a   : > { %v1820_v31 = vand.u32 4294901760, %v1819_v20 }
 0x30c   : > { %v1821_v39 = vsub.f32 %v1819_v20, %v1820_v31 }
 0x30e   : > { %v1822_v43 = vand.u32 4294901760, %v1821_v39 }
 0x30f   : > { %3899 = vmatmul.mubr.f32.vlgmr.msra.gmra.mrb[0].mxu1 %v1333_v16 }
 0x310   : > { %3935 = vmatprep.mubr.msk.f32.mxu1 %vm4739_vm3, %v5971_v3 }
 0x3e2   : > { %v1721_v26 = vpop.f32.mrb[0].mxu1 }
 0x3e3   : > { %v3900_v27 = vpop.f32.mrb[1].mxu1  ;;  %v2351_v28 = vrot.slane %v1721_v26, %v1209_v34  ;;  %v5475_v29 = vrot.slane %v1721_v26, %v5423_v38  ;;  %v1735_v30 = vsel %vm1733_vm12, %v1721_v26, 0  ;;  %v2363_v34 = vrot.slane %v1721_v26, %v1223_v35 }
 0x3e4   : > { %v5477_v32 = vand.u32 4294901760, %v1735_v30  ;;  %v2375_v46 = vrot.slane %v1721_v26, %v1237_v36  ;;  %v2884_v35 = vsub.f32 0.0, %v2883_v45  ;;  %v2387_v48 = vrot.slane %v1721_v26, %v2386_v47 }
 0x3e5   : > { %2354 = vbcast.lane.b32.xlu1 %v2351_v28, 257  ;;  %2342 = vbcast.lane.b32.xlu0 %v5475_v29, 257  ;;  %v2399_v36 = vrot.slane %v1721_v26, %v2398_v49  ;;  %v2411_v52 = vrot.slane %v1721_v26, %v2410_v51  ;;  %v2423_v54 = vrot.slane %v1721_v26, %v2422_v53 }
 0x3e6   : > { %v1808_v37 = vsub.f32 %v1735_v30, %v5477_v32  ;;  %v2885_v50 = vmul.f32 1.442695, %v2884_v35 }
 0x3e8   : > { %v1809_v40 = vand.u32 4294901760, %v1808_v37  ;;  %4225 = vpow2.f32 %v2885_v50 }
 0x3e9   : > { %2358 = vbcast.lane.b32.xlu1 %v2351_v28, 265  ;;  %2346 = vbcast.lane.b32.xlu0 %v5475_v29, 265 }
 0x3ea   : > { %v1810_v41 = vsub.f32 %v1808_v37, %v1809_v40 }
 0x3ec   : > { %v1811_v44 = vand.u32 4294901760, %v1810_v41 }
 0x3ed   : > { %2370 = vbcast.lane.b32.xlu1 %v2363_v34, 265  ;;  %2366 = vbcast.lane.b32.xlu0 %v2363_v34, 257 }
 0x3ee   : > { %3904 = vmatmul.mubr.f32.vlgmr.msra.gmra.mrb[2].mxu0 %v1811_v44 }
 0x3ef   : > { %3907 = vmatpush3.msra.mxu0 %v1822_v43  ;;  %3908 = vmatprep.mubr.msk.f32.mxu0 %vm4739_vm3, %v5971_v3 }
 0x3f0   : > { %3911 = vmatprep.subr.mxu0 %v5971_v3 }
 0x3f1   : > { %2382 = vbcast.lane.b32.xlu1 %v2375_v46, 265  ;;  %2378 = vbcast.lane.b32.xlu0 %v2375_v46, 257 }
 0x3f2   : > { %v4226_v55 = vpop.eup %4225 }
 0x3f3   : > { %v2888_v56 = vadd.f32 1.0, %v4226_v55 }
 0x3f5   : > { %2394 = vbcast.lane.b32.xlu1 %v2387_v48, 265  ;;  %2390 = vbcast.lane.b32.xlu0 %v2387_v48, 257  ;;  %4227 = vrcp.f32 %v2888_v56 }
 0x3f6   : > { %3909 = vmatmul.mubr.f32.vlgmr.msra.gmra.mrb[2].mxu0 %v5477_v32 }
 0x3f7   : > { %3912 = vmatpush3.msra.mxu0 %v1819_v20  ;;  %3913 = vmatprep.mubr.msk.f32.mxu0 %vm4739_vm3, %v5971_v3  ;;  %v4742_v20 = vmov 1966171168  }
 0x3f8   : > { %3916 = vmatprep.subr.mxu0 %v5971_v3  ;;  %v2201_v26 = vunpack.c.l.s4 %v4742_v20 }
 0x3f9   : > { %2406 = vbcast.lane.b32.xlu1 %v2399_v36, 265  ;;  %2402 = vbcast.lane.b32.xlu0 %v2399_v36, 257 }
 0x3fd   : > { %2418 = vbcast.lane.b32.xlu1 %v2411_v52, 265  ;;  %2414 = vbcast.lane.b32.xlu0 %v2411_v52, 257 }
 0x3fe   : > { %3914 = vmatmul.mubr.f32.vlgmr.msra.gmra.mrb[2].mxu0 %v1808_v37 }
 0x3ff   : > { %3917 = vmatpush3.msra.mxu0 %v5467_v25  ;;  %3918 = vmatprep.mubr.msk.f32.mxu0 %vm4739_vm3, %v5971_v3  ;;  %v4228_v57 = vpop.eup %4227 }
 0x400   : > { %3921 = vmatprep.subr.mxu0 %v5971_v3  ;;  %v2891_v58 = vmul.f32 %v4228_v57, %v4226_v55 }
 0x401   : > { %2430 = vbcast.lane.b32.xlu1 %v2423_v54, 265  ;;  %2426 = vbcast.lane.b32.xlu0 %v2423_v54, 257 }
 0x402   : > { %v2892_v59 = vsel %vm2887_vm13, %v4228_v57, %v2891_v58 }
 0x403   : > { %v2893_v60 = vmul.f32 %v2892_v59, %v5431_v42  ;;  %v2934_v42 = vld [vmem:[%s646_s14] sm:$0xff]  ;;  %s3428_s14 = scalar_lea.sflag [#allocation6], %s5309_s1 }
 0x404   : > { %v2968_v6 = vand.u32 4294901760, %v2934_v42 }
 0x405   : > { %2713 = vbcast.lane.b32.xlu1 %v2351_v28, 281  ;;  %2709 = vbcast.lane.b32.xlu0 %v2351_v28, 273  ;;  %v2896_v61 = vrot.slane %v2893_v60, 2  ;;  %v2895_v62 = vrot.slane %v2893_v60, 1  ;;  %v2897_v63 = vrot.slane %v2893_v60, 3  ;;  %v2899_v0 = vrot.slane %v2893_v60, 5 }
 0x406   : > { %3919 = vmatmul.mubr.f32.vlgmr.msra.gmra.mrb[2].mxu0 %v1809_v40  ;;  %v2898_v1 = vrot.slane %v2893_v60, 4  ;;  %v2901_v2 = vrot.slane %v2893_v60, 7  ;;  %v2900_v4 = vrot.slane %v2893_v60, 6  ;;  %v5518_v8 = vpack.c.bf16 %v2971_v7, %v2968_v6  ;;  %v3759_v40 = vld [vmem:[%s637_s8] ss:$0 sm:$0xff]  ;;  %s6097_s8 = sld [smem:[#allocation70_spill]] }
 0x407   : > { %3922 = vmatpush3.msra.mxu0 %v1820_v31  ;;  %3923 = vmatprep.mubr.msk.f32.mxu0 %vm4739_vm3, %v5971_v3  ;;  %v5520_v9 = vsub.f32 %v2934_v42, %v2968_v6  ;;  %v3054_v28 = vand.u32 4294901760, %v5522_v10  ;;  %v5556_v35 = vmul.f32 %v3759_v40, %v5437_v14 }
 0x408   : > { %3926 = vmatprep.subr.mxu0 %v5971_v3  ;;  %6054 = vst [vmem:[#allocation45_spill] sm:$0xff] %v5518_v8  ;;  %3993 = vmatpush3.bf16.msra.mxu1 %v5518_v8 }
 0x409   : > { %2721 = vbcast.lane.b32.xlu1 %v2363_v34, 281  ;;  %2717 = vbcast.lane.b32.xlu0 %v2363_v34, 273  ;;  %6055 = vst [vmem:[#allocation46_spill] sm:$0xff] %v5520_v9  ;;  %v3047_v27 = vand.u32 4294901760, %v5520_v9  ;;  %v3055_v31 = vsub.f32 %v5522_v10, %v3054_v28  ;;  %6058 = vst [vmem:[#allocation49_spill] sm:$0xff] %v5556_v35 }
 0x40a   : > { %3994 = vmatprep.subr.bf16.mxu1 %v5969_v17 }
 0x40b   : > { %v3048_v30 = vsub.f32 %v5520_v9, %v3047_v27  ;;  %v3056_v39 = vand.u32 4294901760, %v3055_v31 }
 0x40c   : > { %s5844_s10 = scalar_lea.hbm %s6097_s8, %s3763_s20 }
 0x40d   : > { %2705 = vbcast.lane.b32.xlu1 %v5475_v29, 281  ;;  %2701 = vbcast.lane.b32.xlu0 %v5475_v29, 273  ;;  %v3049_v37 = vand.u32 4294901760, %v3048_v30 }
 0x40e   : > { %3924 = vmatmul.mubr.f32.vlgmr.msra.gmra.mrb[2].mxu0 %v5477_v32 }
 0x40f   : > { %3927 = vmatpush3.msra.mxu0 %v5467_v25  ;;  %3928 = vmatprep.mubr.msk.f32.mxu0 %vm4739_vm3, %v5971_v3  ;;  %v5548_v34 = vpack.c.bf16 %v3056_v39, %v3049_v37 }
 0x411   : > { %2729 = vbcast.lane.b32.xlu1 %v2375_v46, 281  ;;  %2725 = vbcast.lane.b32.xlu0 %v2375_v46, 273  ;;  %6057 = vst [vmem:[#allocation48_spill] sm:$0xff] %v5548_v34 }
 0x415   : > { %2737 = vbcast.lane.b32.xlu1 %v2387_v48, 281  ;;  %2733 = vbcast.lane.b32.xlu0 %v2387_v48, 273 }
 0x416   : > { %3929 = vmatmul.mubr.f32.vlgmr.msra.gmra.mrb[2].mxu0 %v5477_v32  ;;  %v2202_v32 = vunpack.c.0.s8 %v2201_v26 }
 0x418   : > { %v5553_v47 = vsub.s32 %v2202_v32, %v5416_v33 }
 0x419   : > { %2745 = vbcast.lane.b32.xlu1 %v2399_v36, 281  ;;  %2741 = vbcast.lane.b32.xlu0 %v2399_v36, 273 }
 0x41d   : > { %2753 = vbcast.lane.b32.xlu1 %v2411_v52, 281  ;;  %2749 = vbcast.lane.b32.xlu0 %v2411_v52, 273 }
 0x421   : > { %2761 = vbcast.lane.b32.xlu1 %v2423_v54, 281  ;;  %2757 = vbcast.lane.b32.xlu0 %v2423_v54, 273 }
 0x425   : > { %2906 = vrot.lane.b32.xlu1 %v2896_v61, %s4741_s11  ;;  %2904 = vrot.lane.b32.xlu0 %v2895_v62, %s4741_s11 }
 0x429   : > { %2908 = vrot.lane.b32.xlu1 %v2897_v63, %s4741_s11  ;;  %2902 = vrot.lane.b32.xlu0 %v2893_v60, %s4741_s11  ;;  %v2196_v63 = vld [vmem:[%s629_s26] sm:$0xff] }
 0x42d   : > { %2912 = vrot.lane.b32.xlu1 %v2899_v0, %s4741_s11  ;;  %2910 = vrot.lane.b32.xlu0 %v2898_v1, %s4741_s11  ;;  %v2197_v0 = vld [vmem:[%s629_s26 + $0x8] sm:$0xff] }
 0x431   : > { %2916 = vrot.lane.b32.xlu1 %v2901_v2, %s4741_s11  ;;  %2914 = vrot.lane.b32.xlu0 %v2900_v4, %s4741_s11  ;;  %s4743_s11 = smov [#allocation21]  }
 0x432   : > { %s4569_s16 = sshll.u32 %s4743_s11, 4  ;;  %s4570_s16 = int_to_ptr.vmem [resolvable:$false] %s4569_s16 }
 0x433   : > { %s4571_s13 = scalar_lea.vmem %s4570_s16, 256  ;;  %p4572_p13 = scmp.lt.s32.totalorder %s5846_s27, %s4570_s16 }
 0x434   : > { %p4573_p1 = scmp.lt.s32.totalorder %s4571_s13, %s4565_s28 }
 0x436   : > { %p4574_p7 = por %p4573_p1, %p4572_p13 }
 0x438   : > { %p4575_p3 = pnand %p4574_p7, %p4568_p12 }
 0x457   : > { %v5528_v24 = vpop.permute.xlu0 %2342  ;;  %v5530_v22 = vpop.permute.xlu1 %2354 }
 0x45b   : > { %v5532_v25 = vpop.permute.xlu0 %2346  ;;  %v5536_v29 = vpop.permute.xlu1 %2358 }
 0x45f   : > { %v5546_v41 = vpop.permute.xlu0 %2366  ;;  %v5550_v44 = vpop.permute.xlu1 %2370 }
 0x463   : > { %v5560_v50 = vpop.permute.xlu0 %2378  ;;  %v5567_v55 = vpop.permute.xlu1 %2382 }
 0x467   : > { %v5597_v26 = vpop.permute.xlu1 %2394 }
 0x4e9   : > { %v2183_v12 = vpop.f32.mrb[2].mxu0 }
 0x4ea   : > { %v4009_v13 = vadd.f32 %v3758_v11, %v2183_v12  ;;  %v3930_v15 = vpop.f32.mrb[3].mxu0  ;;  %v5591_v12 = vpop.permute.xlu0 %2390 }
 0x4ec   : > { %v2188_v16 = vand.u32 2147483647, %v4009_v13  ;;  %v2187_v45 = vmax.f32 %v4009_v13, 0.0 }
 0x4ee   : > { %v2189_v18 = vsub.f32 0.0, %v2188_v16 }
 0x4f0   : > { %v2190_v19 = vmul.f32 1.442695, %v2189_v18 }
 0x4f2   : > { %4229 = vpow2.f32 %v2190_v19 }
 0x4fc   : > { %v4230_v23 = vpop.eup %4229 }
 0x4fd   : > { %v2192_v21 = vadd.f32 1.0, %v4230_v23 }
 0x4ff   : > { %4231 = vlog2.f32 %v2192_v21 }
 0x509   : > { %v4232_v43 = vpop.eup %4231 }
 0x50a   : > { %v2194_v46 = vmul.f32 0.6931472, %v4232_v43 }
 0x50c   : > { %v2195_v49 = vadd.f32 %v2194_v46, %v2187_v45 }
 0x50e   : > { %v2199_v36 = vcombine.high %v2195_v49, %v2195_v49  ;;  %v2206_v51 = vrot.slane %v2195_v49, %v5553_v47  ;;  %v2432_v52 = vmul.f32 %v2195_v49, %v5437_v14 }
 0x510   : > { %v2213_v56 = vrot.slane %v2199_v36, %v5553_v47  ;;  %v2214_v57 = vcombine.high %v2206_v51, %v2206_v51  ;;  %v2222_v58 = vrot.slane %v2206_v51, %v5553_v47  ;;  %v2434_v59 = vcombine.high %v2432_v52, %v2432_v52 }
 0x511   : > { %v5572_v60 = vrot.slane %v2432_v52, %v5553_v47 }
 0x512   : > { %v2215_v1 = vcombine.high %v2213_v56, %v2213_v56  ;;  %v2229_v2 = vrot.slane %v2213_v56, %v5553_v47  ;;  %v2236_v4 = vrot.slane %v2214_v57, %v5553_v47  ;;  %v2244_v42 = vcombine.high %v2222_v58, %v2222_v58 }
 0x513   : > { %v2251_v5 = vrot.slane %v2222_v58, %v5423_v38  ;;  %v2448_v6 = vrot.slane %v2434_v59, %v5553_v47  ;;  %v2449_v7 = vcombine.high %v5572_v60, %v5572_v60  ;;  %v5589_v11 = vrot.slane %v5572_v60, %v5553_v47  ;;  %v5603_v59 = vpop.permute.xlu0 %2402 }
 0x514   : > { %v2243_v13 = vrot.slane %v2215_v1, %v5553_v47  ;;  %v2245_v15 = vcombine.high %v2229_v2, %v2229_v2  ;;  %v2246_v16 = vcombine.high %v2236_v4, %v2236_v4  ;;  %v2255_v18 = vrot.slane %v2236_v4, %v5423_v38 }
 0x515   : > { %v2259_v19 = vrot.slane %v2244_v42, %v5423_v38  ;;  %v2267_v23 = vrot.slane %v2229_v2, %v5423_v38  ;;  %v2288_v21 = vmul.f32 %v2251_v5, %v2196_v63  ;;  %v2289_v20 = vmul.f32 %v2251_v5, %v2197_v0 }
 0x516   : > { %v2247_v30 = vcombine.high %v2243_v13, %v2243_v13  ;;  %v2263_v31 = vrot.slane %v2246_v16, %v5423_v38  ;;  %v2271_v32 = vrot.slane %v2243_v13, %v5423_v38  ;;  %v2275_v37 = vrot.slane %v2245_v15, %v5423_v38  ;;  %v2407_v16 = vpop.permute.xlu1 %2406 }
 0x517   : > { %v2290_v39 = vmul.f32 %v2255_v18, %v2196_v63  ;;  %v2291_v40 = vmul.f32 %v2255_v18, %v2197_v0  ;;  %v2292_v43 = vmul.f32 %v2259_v19, %v2196_v63  ;;  %v2293_v45 = vmul.f32 %v2259_v19, %v2197_v0 }
 0x518   : > { %v2279_v46 = vrot.slane %v2247_v30, %v5423_v38  ;;  %v2294_v49 = vmul.f32 %v2263_v31, %v2196_v63  ;;  %v2295_v36 = vmul.f32 %v2263_v31, %v2197_v0  ;;  %v2296_v51 = vmul.f32 %v2267_v23, %v2196_v63 }
 0x519   : > { %v2297_v52 = vmul.f32 %v2267_v23, %v2197_v0  ;;  %v2298_v56 = vmul.f32 %v2271_v32, %v2196_v63  ;;  %v2299_v57 = vmul.f32 %v2271_v32, %v2197_v0  ;;  %v2300_v58 = vmul.f32 %v2275_v37, %v2196_v63 }
 0x51a   : > { %v2301_v60 = vmul.f32 %v2275_v37, %v2197_v0  ;;  %v2302_v1 = vmul.f32 %v2279_v46, %v2196_v63  ;;  %v2303_v2 = vmul.f32 %v2279_v46, %v2197_v0  ;;  %v2304_v4 = vmul.f32 1.442695, %v2288_v21 }
 0x51b   : > { %v2306_v42 = vmul.f32 1.442695, %v2289_v20  ;;  %v2308_v5 = vmul.f32 1.442695, %v2290_v39  ;;  %v2310_v13 = vmul.f32 1.442695, %v2291_v40  ;;  %v2450_v15 = vcombine.high %v2448_v6, %v2448_v6  ;;  %v2415_v20 = vpop.permute.xlu0 %2414 }
 0x51c   : > { %4233 = vpow2.f32 %v2304_v4  ;;  %v2312_v18 = vmul.f32 1.442695, %v2292_v43  ;;  %v2314_v19 = vmul.f32 1.442695, %v2293_v45  ;;  %v2316_v30 = vmul.f32 1.442695, %v2294_v49 }
 0x51d   : > { %4235 = vpow2.f32 %v2306_v42  ;;  %v2318_v23 = vmul.f32 1.442695, %v2295_v36  ;;  %v2320_v31 = vmul.f32 1.442695, %v2296_v51  ;;  %v2322_v32 = vmul.f32 1.442695, %v2297_v52  ;;  %v2419_v36 = vpop.permute.xlu1 %2418 }
 0x51e   : > { %4237 = vpow2.f32 %v2308_v5  ;;  %v2324_v48 = vmul.f32 1.442695, %v2298_v56  ;;  %v2326_v17 = vmul.f32 1.442695, %v2299_v57  ;;  %v2328_v37 = vmul.f32 1.442695, %v2300_v58 }
 0x51f   : > { %4239 = vpow2.f32 %v2310_v13  ;;  %v2330_v63 = vmul.f32 1.442695, %v2301_v60  ;;  %v2332_v0 = vmul.f32 1.442695, %v2302_v1  ;;  %v2334_v21 = vmul.f32 1.442695, %v2303_v2  ;;  %v2427_v2 = vpop.permute.xlu0 %2426 }
 0x520   : > { %4241 = vpow2.f32 %v2312_v18  ;;  %v2464_v39 = vrot.slane %v2448_v6, %v5553_v47  ;;  %v2471_v40 = vrot.slane %v2449_v7, %v5553_v47  ;;  %v2478_v43 = vrot.slane %v2450_v15, %v5553_v47 }
 0x521   : > { %4243 = vpow2.f32 %v2314_v19  ;;  %v2479_v45 = vcombine.high %v5589_v11, %v5589_v11  ;;  %v2486_v46 = vrot.slane %v5589_v11, %v5423_v38  ;;  %v5616_v49 = vpack.c.bf16 %v3054_v28, %v3047_v27  ;;  %v2431_v18 = vpop.permute.xlu1 %2430 }
 0x522   : > { %4245 = vpow2.f32 %v2316_v30  ;;  %v2480_v6 = vcombine.high %v2464_v39, %v2464_v39  ;;  %v2481_v51 = vcombine.high %v2471_v40, %v2471_v40  ;;  %v2482_v7 = vcombine.high %v2478_v43, %v2478_v43 }
 0x523   : > { %6059 = vst [vmem:[#allocation50_spill] sm:$0xff] %v5616_v49  ;;  %4247 = vpow2.f32 %v2318_v23  ;;  %v2490_v47 = vrot.slane %v2471_v40, %v5423_v38  ;;  %v2494_v52 = vrot.slane %v2479_v45, %v5423_v38  ;;  %v2502_v56 = vrot.slane %v2464_v39, %v5423_v38 }
 0x524   : > { %4249 = vpow2.f32 %v2320_v31  ;;  %v2498_v11 = vrot.slane %v2481_v51, %v5423_v38  ;;  %v2506_v57 = vrot.slane %v2478_v43, %v5423_v38  ;;  %v2510_v27 = vrot.slane %v2480_v6, %v5423_v38 }
 0x525   : > { %4251 = vpow2.f32 %v2322_v32  ;;  %v2514_v28 = vrot.slane %v2482_v7, %v5423_v38  ;;  %v2523_v58 = vmul.f32 %v2486_v46, %v5528_v24  ;;  %v2524_v60 = vmul.f32 %v2486_v46, %v5532_v25  ;;  %v5654_v32 = vpop.permute.xlu0 %2709 }
 0x526   : > { %v5627_v1 = vpop.eup %4233  ;;  %4253 = vpow2.f32 %v2324_v48  ;;  %v2525_v4 = vmul.f32 %v2490_v47, %v5530_v22  ;;  %v2526_v42 = vmul.f32 %v2490_v47, %v5536_v29  ;;  %v2527_v5 = vmul.f32 %v2494_v52, %v5546_v41  ;;  %6060 = vst [vmem:[#allocation51_spill] sm:$0xff] %v5654_v32 }
 0x527   : > { %v5632_v13 = vpop.eup %4235  ;;  %4255 = vpow2.f32 %v2326_v17  ;;  %v2528_v15 = vmul.f32 %v2494_v52, %v5550_v44  ;;  %v2529_v38 = vmul.f32 %v2498_v11, %v5560_v50  ;;  %v2530_v24 = vmul.f32 %v2498_v11, %v5567_v55 }
 0x528   : > { %v4238_v25 = vpop.eup %4237  ;;  %4257 = vpow2.f32 %v2328_v37  ;;  %v2531_v48 = vmul.f32 %v2502_v56, %v5591_v12  ;;  %v2532_v22 = vmul.f32 %v2502_v56, %v5597_v26  ;;  %v2533_v29 = vmul.f32 %v2506_v57, %v5603_v59 }
 0x529   : > { %v4240_v19 = vpop.eup %4239  ;;  %4259 = vpow2.f32 %v2330_v63  ;;  %v2534_v41 = vmul.f32 %v2506_v57, %v2407_v16  ;;  %v5640_v30 = vmul.f32 %v2510_v27, %v2415_v20  ;;  %v5642_v17 = vmul.f32 %v2510_v27, %v2419_v36  ;;  %v5669_v36 = vpop.permute.xlu1 %2713 }
 0x52a   : > { %v4242_v44 = vpop.eup %4241  ;;  %4261 = vpow2.f32 %v2332_v0  ;;  %v5644_v50 = vmul.f32 %v2514_v28, %v2427_v2  ;;  %v5646_v55 = vmul.f32 %v2514_v28, %v2431_v18  ;;  %v5649_v23 = vmul.f32 0.0, %v5627_v1  ;;  %6061 = vst [vmem:[#allocation52_spill] sm:$0xff] %v5669_v36 }
 0x52b   : > { %v4244_v12 = vpop.eup %4243  ;;  %4263 = vpow2.f32 %v2334_v21  ;;  %v5652_v26 = vmul.f32 0.0, %v5632_v13  ;;  %v2541_v59 = vmul.f32 %v4238_v25, %v2523_v58  ;;  %v2542_v16 = vmul.f32 %v4240_v19, %v2524_v60 }
 0x52c   : > { %v4246_v31 = vpop.eup %4245  ;;  %v2543_v37 = vmul.f32 %v4242_v44, %v2525_v4  ;;  %v2544_v63 = vmul.f32 %v4244_v12, %v2526_v42  ;;  %v5657_v0 = vadd.f32 %v5649_v23, %v2523_v58  ;;  %v5660_v20 = vmul.f32 %v4238_v25, %v5627_v1 }
 0x52d   : > { %v4248_v39 = vpop.eup %4247  ;;  %v2545_v40 = vmul.f32 %v4246_v31, %v2527_v5  ;;  %v5663_v21 = vadd.f32 %v5652_v26, %v2524_v60  ;;  %v5665_v43 = vadd.f32 %v2541_v59, %v2525_v4  ;;  %v5667_v45 = vadd.f32 %v2542_v16, %v2526_v42 }
 0x52e   : > { %v4250_v46 = vpop.eup %4249  ;;  %v2546_v6 = vmul.f32 %v4248_v39, %v2528_v15  ;;  %v2559_v51 = vadd.f32 %v2543_v37, %v2527_v5  ;;  %v2560_v7 = vadd.f32 %v2544_v63, %v2528_v15  ;;  %v5672_v47 = vmul.f32 %v4240_v19, %v5632_v13 }
 0x52f   : > { %v4252_v52 = vpop.eup %4251  ;;  %v2547_v56 = vmul.f32 %v4250_v46, %v2529_v38  ;;  %v2561_v11 = vadd.f32 %v2545_v40, %v2529_v38  ;;  %v5674_v57 = vmul.f32 %v4242_v44, %v4238_v25  ;;  %v5676_v27 = vmul.f32 %v4244_v12, %v4240_v19  ;;  %v5686_v38 = vpop.permute.xlu0 %2717 }
 0x530   : > { %v4254_v28 = vpop.eup %4253  ;;  %v2548_v58 = vmul.f32 %v4252_v52, %v2530_v24  ;;  %v2562_v60 = vadd.f32 %v2546_v6, %v2530_v24  ;;  %v5678_v2 = vmul.f32 %v4246_v31, %v4242_v44  ;;  %v5680_v4 = vmul.f32 %v4248_v39, %v4244_v12  ;;  %6062 = vst [vmem:[#allocation53_spill] sm:$0xff] %v5686_v38 }
 0x531   : > { %v4256_v42 = vpop.eup %4255  ;;  %v2549_v5 = vmul.f32 %v4254_v28, %v2531_v48  ;;  %v2563_v15 = vadd.f32 %v2547_v56, %v2531_v48  ;;  %v5682_v18 = vmul.f32 %v4250_v46, %v4246_v31  ;;  %v5684_v59 = vmul.f32 %v4252_v52, %v4248_v39  ;;  %v5695_v31 = vpop.permute.xlu1 %2721 }
 0x532   : > { %v4258_v16 = vpop.eup %4257  ;;  %v2550_v25 = vmul.f32 %v4256_v42, %v2532_v22  ;;  %v2564_v19 = vadd.f32 %v2548_v58, %v2532_v22  ;;  %v5688_v37 = vmul.f32 %v4254_v28, %v4250_v46  ;;  %v5690_v63 = vmul.f32 %v4256_v42, %v4252_v52  ;;  %6063 = vst [vmem:[#allocation54_spill] sm:$0xff] %v5695_v31 }
 0x533   : > { %v4260_v24 = vpop.eup %4259  ;;  %v2551_v44 = vmul.f32 %v4258_v16, %v2533_v29  ;;  %v2565_v12 = vadd.f32 %v2549_v5, %v2533_v29  ;;  %v2581_v40 = vmul.f32 %v4258_v16, %v4254_v28  ;;  %v5693_v6 = vmul.f32 0.0, %v5660_v20 }
 0x534   : > { %v4262_v48 = vpop.eup %4261  ;;  %v2552_v39 = vmul.f32 %v4260_v24, %v2534_v41  ;;  %v2566_v56 = vadd.f32 %v2550_v25, %v2534_v41  ;;  %v2582_v3 = vmul.f32 %v4260_v24, %v4256_v42  ;;  %v5698_v62 = vmul.f32 0.0, %v5672_v47 }
 0x535   : > { %v4264_v22 = vpop.eup %4263  ;;  %v2553_v46 = vmul.f32 %v4262_v48, %v5640_v30  ;;  %v2567_v52 = vadd.f32 %v2551_v44, %v5640_v30  ;;  %v2583_v58 = vmul.f32 %v4262_v48, %v4258_v16  ;;  %v2587_v29 = vmul.f32 %v5674_v57, %v5657_v0  ;;  %v5714_v44 = vpop.permute.xlu0 %2701 }
 0x536   : > { %v2554_v28 = vmul.f32 %v4264_v22, %v5642_v17  ;;  %v2568_v5 = vadd.f32 %v2552_v39, %v5642_v17  ;;  %v2584_v14 = vmul.f32 %v4264_v22, %v4260_v24  ;;  %v2588_v41 = vmul.f32 %v5676_v27, %v5663_v21  ;;  %6064 = vst [vmem:[#allocation55_spill] sm:$0xff] %v5714_v44  ;;  %v5720_v54 = vpop.permute.xlu1 %2705 }
 0x537   : > { %v2569_v42 = vadd.f32 %v2553_v46, %v5644_v50  ;;  %v2589_v25 = vmul.f32 %v5678_v2, %v5665_v43  ;;  %v2590_v30 = vmul.f32 %v5680_v4, %v5667_v45  ;;  %v2591_v16 = vmul.f32 %v5682_v18, %v2559_v51  ;;  %6065 = vst [vmem:[#allocation56_spill] sm:$0xff] %v5720_v54 }
 0x538   : > { %v2570_v48 = vadd.f32 %v2554_v28, %v5646_v55  ;;  %v2592_v17 = vmul.f32 %v5684_v59, %v2560_v7  ;;  %v2593_v24 = vmul.f32 %v5688_v37, %v2561_v11  ;;  %v2594_v39 = vmul.f32 %v5690_v63, %v2562_v60 }
 0x539   : > { %v2595_v22 = vmul.f32 %v2581_v40, %v2563_v15  ;;  %v2596_v50 = vmul.f32 %v2582_v3, %v2564_v19  ;;  %v2597_v46 = vmul.f32 %v2583_v58, %v2565_v12  ;;  %v2598_v61 = vmul.f32 %v2584_v14, %v2566_v56  ;;  %v5730_v44 = vpop.permute.xlu0 %2725 }
 0x53a   : > { %v2599_v33 = vadd.f32 %v5657_v0, %v5649_v23  ;;  %v2600_v53 = vadd.f32 %v5663_v21, %v5652_v26  ;;  %v2601_v55 = vadd.f32 %v5693_v6, %v5665_v43  ;;  %v2602_v28 = vadd.f32 %v5698_v62, %v5667_v45  ;;  %6066 = vst [vmem:[#allocation57_spill] sm:$0xff] %v5730_v44 }
 0x53b   : > { %v2603_v49 = vadd.f32 %v2587_v29, %v2559_v51  ;;  %v2604_v8 = vadd.f32 %v2588_v41, %v2560_v7  ;;  %v2605_v9 = vadd.f32 %v2589_v25, %v2561_v11  ;;  %v2606_v10 = vadd.f32 %v2590_v30, %v2562_v60 }
 0x53c   : > { %v2607_v34 = vadd.f32 %v2591_v16, %v2563_v15  ;;  %v2608_v35 = vadd.f32 %v2592_v17, %v2564_v19  ;;  %v2609_v31 = vadd.f32 %v2593_v24, %v2565_v12  ;;  %v2610_v38 = vadd.f32 %v2594_v39, %v2566_v56  ;;  %v5748_v15 = vpop.permute.xlu1 %2729 }
 0x53d   : > { %v2611_v36 = vadd.f32 %v2595_v22, %v2567_v52  ;;  %v2612_v32 = vadd.f32 %v2596_v50, %v2568_v5  ;;  %v2613_v0 = vadd.f32 %v2597_v46, %v2569_v42  ;;  %v2614_v54 = vadd.f32 %v2598_v61, %v2570_v48  ;;  %6067 = vst [vmem:[#allocation58_spill] sm:$0xff] %v5748_v15  ;;  %v5754_v17 = vpop.permute.xlu0 %2733 }
 0x53e   : > { %v2615_v21 = vmul.f32 %v5627_v1, %v5674_v57  ;;  %v2616_v43 = vmul.f32 %v5632_v13, %v5676_v27  ;;  %v2617_v45 = vmul.f32 %v5678_v2, %v5660_v20  ;;  %v2618_v51 = vmul.f32 %v5680_v4, %v5672_v47  ;;  %6068 = vst [vmem:[#allocation59_spill] sm:$0xff] %v5754_v17 }
 0x53f   : > { %v2619_v7 = vmul.f32 %v5682_v18, %v5674_v57  ;;  %v2620_v61 = vmul.f32 %v5684_v59, %v5676_v27  ;;  %v2621_v11 = vmul.f32 %v5688_v37, %v5678_v2  ;;  %v2622_v60 = vmul.f32 %v5690_v63, %v5680_v4 }
 0x540   : > { %v2623_v19 = vmul.f32 %v2581_v40, %v5682_v18  ;;  %v2624_v12 = vmul.f32 %v2582_v3, %v5684_v59  ;;  %v2625_v56 = vmul.f32 %v2583_v58, %v5688_v37  ;;  %v2626_v52 = vmul.f32 %v2584_v14, %v5690_v63  ;;  %v5760_v24 = vpop.permute.xlu1 %2737 }
 0x541   : > { %v2627_v57 = vmul.f32 0.0, %v2615_v21  ;;  %v2628_v29 = vmul.f32 0.0, %v2616_v43  ;;  %v2629_v5 = vmul.f32 0.0, %v2617_v45  ;;  %v2630_v27 = vmul.f32 0.0, %v2618_v51 }
 0x542   : > { %v2631_v41 = vmul.f32 %v2619_v7, %v2599_v33  ;;  %v2632_v42 = vmul.f32 %v2620_v61, %v2600_v53  ;;  %v2633_v2 = vmul.f32 %v2621_v11, %v2601_v55  ;;  %v2634_v25 = vmul.f32 %v2622_v60, %v2602_v28 }
 0x543   : > { %v2635_v30 = vmul.f32 %v2623_v19, %v2603_v49  ;;  %v2636_v4 = vmul.f32 %v2624_v12, %v2604_v8  ;;  %v2637_v16 = vmul.f32 %v2625_v56, %v2605_v9  ;;  %v2638_v48 = vmul.f32 %v2626_v52, %v2606_v10 }
 0x544   : > { %v2639_v3 = vadd.f32 %v2599_v33, %v5649_v23  ;;  %v2640_v18 = vadd.f32 %v2600_v53, %v5652_v26  ;;  %v2641_v14 = vadd.f32 %v2601_v55, %v5693_v6  ;;  %v2642_v59 = vadd.f32 %v2602_v28, %v5698_v62  ;;  %v2663_v23 = vld [vmem:[#allocation3] sm:$0xff]  ;;  %v2664_v53 = vld [vmem:[#allocation3 + $0x8] sm:$0xff]  ;;  %v2742_v6 = vpop.permute.xlu0 %2741 }
 0x545   : > { %v2643_v37 = vadd.f32 %v2627_v57, %v2603_v49  ;;  %v2644_v63 = vadd.f32 %v2628_v29, %v2604_v8  ;;  %v2645_v40 = vadd.f32 %v2629_v5, %v2605_v9  ;;  %v2646_v58 = vadd.f32 %v2630_v27, %v2606_v10 }
 0x546   : > { %v2647_v39 = vadd.f32 %v2631_v41, %v2607_v34  ;;  %v2648_v22 = vadd.f32 %v2632_v42, %v2608_v35  ;;  %v2649_v50 = vadd.f32 %v2633_v2, %v2609_v31  ;;  %v2650_v46 = vadd.f32 %v2634_v25, %v2610_v38 }
 0x547   : > { %v2651_v15 = vadd.f32 %v2635_v30, %v2611_v36  ;;  %v2652_v17 = vadd.f32 %v2636_v4, %v2612_v32  ;;  %v2653_v44 = vadd.f32 %v2637_v16, %v2613_v0  ;;  %v2654_v33 = vadd.f32 %v2638_v48, %v2614_v54  ;;  %v6069_v48 = vld [vmem:[#allocation55_spill] sm:$0xff] }
 0x548   : > { %v2655_v26 = vmul.f32 %v5627_v1, %v2619_v7  ;;  %v2656_v62 = vmul.f32 %v5632_v13, %v2620_v61  ;;  %v2657_v8 = vmul.f32 %v2621_v11, %v5660_v20  ;;  %v2658_v9 = vmul.f32 %v2622_v60, %v5672_v47  ;;  %v2746_v7 = vpop.permute.xlu1 %2745 }
 0x549   : > { %v2659_v10 = vmul.f32 %v2623_v19, %v2615_v21  ;;  %v2660_v49 = vmul.f32 %v2624_v12, %v2616_v43  ;;  %v2661_v34 = vmul.f32 %v2625_v56, %v2617_v45  ;;  %v2662_v35 = vmul.f32 %v2626_v52, %v2618_v51 }
 0x54a   : > { %v2665_v36 = vmul.f32 %v5627_v1, %v2663_v23  ;;  %v2666_v32 = vmul.f32 %v5632_v13, %v2664_v53  ;;  %v2667_v54 = vmul.f32 %v2663_v23, %v5660_v20  ;;  %v2668_v38 = vmul.f32 %v2664_v53, %v5672_v47 }
 0x54b   : > { %v2669_v31 = vmul.f32 %v2663_v23, %v2615_v21  ;;  %v2670_v55 = vmul.f32 %v2664_v53, %v2616_v43  ;;  %v2671_v28 = vmul.f32 %v2663_v23, %v2617_v45  ;;  %v2672_v0 = vmul.f32 %v2664_v53, %v2618_v51  ;;  %v2750_v43 = vpop.permute.xlu0 %2749 }
 0x54c   : > { %v2673_v61 = vmul.f32 %v2663_v23, %v2655_v26  ;;  %v2674_v11 = vmul.f32 %v2664_v53, %v2656_v62  ;;  %v2675_v60 = vmul.f32 %v2663_v23, %v2657_v8  ;;  %v2676_v19 = vmul.f32 %v2664_v53, %v2658_v9  ;;  %v2754_v16 = vpop.permute.xlu1 %2753 }
 0x54d   : > { %v2677_v12 = vmul.f32 %v2663_v23, %v2659_v10  ;;  %v2678_v56 = vmul.f32 %v2664_v53, %v2660_v49  ;;  %v2679_v52 = vmul.f32 %v2663_v23, %v2661_v34  ;;  %v2680_v57 = vmul.f32 %v2664_v53, %v2662_v35 }
 0x54e   : > { %v2681_v1 = vadd.f32 %v2665_v36, %v2639_v3  ;;  %v2682_v29 = vadd.f32 %v2666_v32, %v2640_v18  ;;  %v2683_v13 = vadd.f32 %v2667_v54, %v2641_v14  ;;  %v2684_v5 = vadd.f32 %v2668_v38, %v2642_v59  ;;  %v6070_v3 = vld [vmem:[#allocation56_spill] sm:$0xff]  ;;  %v6071_v14 = vld [vmem:[#allocation51_spill] sm:$0xff] }
 0x54f   : > { %v2685_v20 = vadd.f32 %v2669_v31, %v2643_v37  ;;  %v2686_v27 = vadd.f32 %v2670_v55, %v2644_v63  ;;  %v2687_v47 = vadd.f32 %v2671_v28, %v2645_v40  ;;  %v2688_v21 = vadd.f32 %v2672_v0, %v2646_v58  ;;  %v6072_v37 = vld [vmem:[#allocation52_spill] sm:$0xff]  ;;  %v6073_v40 = vld [vmem:[#allocation53_spill] sm:$0xff]  ;;  %v2758_v34 = vpop.permute.xlu0 %2757 }
 0x550   : > { %v2689_v45 = vadd.f32 %v2673_v61, %v2647_v39  ;;  %v2690_v51 = vadd.f32 %v2674_v11, %v2648_v22  ;;  %v2691_v41 = vadd.f32 %v2675_v60, %v2649_v50  ;;  %v2692_v42 = vadd.f32 %v2676_v19, %v2650_v46  ;;  %v6074_v39 = vld [vmem:[#allocation54_spill] sm:$0xff]  ;;  %v6077_v46 = vld [vmem:[#allocation59_spill] sm:$0xff]  ;;  %v2762_v55 = vpop.permute.xlu1 %2761 }
 0x551   : > { %v2693_v2 = vadd.f32 %v2677_v12, %v2651_v15  ;;  %v2694_v25 = vadd.f32 %v2678_v56, %v2652_v17  ;;  %v2695_v30 = vadd.f32 %v2679_v52, %v2653_v44  ;;  %v2696_v4 = vadd.f32 %v2680_v57, %v2654_v33  ;;  %v6075_v17 = vld [vmem:[#allocation57_spill] sm:$0xff]  ;;  %v6076_v22 = vld [vmem:[#allocation58_spill] sm:$0xff] }
 0x552   : > { %v2763_v23 = vmul.f32 %v6069_v48, %v2681_v1  ;;  %v2764_v18 = vmul.f32 %v6070_v3, %v2682_v29  ;;  %v2765_v59 = vmul.f32 %v6071_v14, %v2683_v13  ;;  %v2766_v63 = vmul.f32 %v6072_v37, %v2684_v5 }
 0x553   : > { %2697 = vst.msk [vmem:[#allocation3] sm:$0xff] %vm1262_vm10, %v2695_v30  ;;  %2698 = vst.msk [vmem:[#allocation3 + $0x8] sm:$0xff] %vm1262_vm10, %v2696_v4  ;;  %v2767_v58 = vmul.f32 %v6073_v40, %v2685_v20  ;;  %v2768_v15 = vmul.f32 %v6074_v39, %v2686_v27  ;;  %v2769_v44 = vmul.f32 %v6075_v17, %v2687_v47  ;;  %v2905_v27 = vpop.permute.xlu0 %2904 }
 0x554   : > { %v2770_v50 = vmul.f32 %v6076_v22, %v2688_v21  ;;  %v2771_v33 = vmul.f32 %v6077_v46, %v2689_v45  ;;  %v2772_v53 = vmul.f32 %v5760_v24, %v2690_v51  ;;  %v2773_v26 = vmul.f32 %v2742_v6, %v2691_v41 }
 0x555   : > { %v2774_v62 = vmul.f32 %v2746_v7, %v2692_v42  ;;  %v2775_v8 = vmul.f32 %v2750_v43, %v2693_v2  ;;  %v2776_v9 = vmul.f32 %v2754_v16, %v2694_v25  ;;  %v2779_v10 = vsel %vm1262_vm10, %v2763_v23, 0.0  ;;  %v2907_v25 = vpop.permute.xlu1 %2906 }
 0x556   : > { %v2780_v49 = vsel %vm1262_vm10, %v2764_v18, 0.0  ;;  %v2788_v36 = vsel %vm1262_vm10, %v2765_v59, 0.0  ;;  %v2789_v32 = vsel %vm1262_vm10, %v2766_v63, 0.0  ;;  %v2797_v54 = vsel %vm1262_vm10, %v2767_v58, 0.0 }
 0x557   : > { %v2781_v35 = vadd.f32 %v2780_v49, %v2779_v10  ;;  %v2790_v38 = vadd.f32 %v2789_v32, %v2788_v36  ;;  %v2798_v31 = vsel %vm1262_vm10, %v2768_v15, 0.0  ;;  %v2806_v24 = vsel %vm1262_vm10, %v2769_v44, 0.0  ;;  %v2903_v44 = vpop.permute.xlu0 %2902 }
 0x558   : > { %v2807_v6 = vsel %vm1262_vm10, %v2770_v50, 0.0  ;;  %v2799_v0 = vadd.f32 %v2798_v31, %v2797_v54  ;;  %v2815_v61 = vsel %vm1262_vm10, %v2771_v33, 0.0  ;;  %v2816_v60 = vsel %vm1262_vm10, %v2772_v53, 0.0 }
 0x559   : > { %v2782_v28 = vrot.slane %v2781_v35, 4  ;;  %v2808_v7 = vadd.f32 %v2807_v6, %v2806_v24  ;;  %v2791_v11 = vrot.slane %v2790_v38, 4  ;;  %v2824_v19 = vsel %vm1262_vm10, %v2773_v26, 0.0 }
 0x55a   : > { %v2825_v12 = vsel %vm1262_vm10, %v2774_v62, 0.0  ;;  %v2800_v52 = vrot.slane %v2799_v0, 4  ;;  %v2817_v1 = vadd.f32 %v2816_v60, %v2815_v61  ;;  %v2777_v13 = vmul.f32 %v2758_v34, %v2695_v30 }
 0x55b   : > { %v2783_v56 = vadd.f32 %v2782_v28, %v2781_v35  ;;  %v2809_v57 = vrot.slane %v2808_v7, 4  ;;  %v2792_v29 = vadd.f32 %v2791_v11, %v2790_v38  ;;  %v2778_v5 = vmul.f32 %v2762_v55, %v2696_v4  ;;  %v6078_v35 = vld [vmem:[#allocation49_spill] sm:$0xff] }
 0x55c   : > { %v2826_v20 = vadd.f32 %v2825_v12, %v2824_v19  ;;  %v2801_v21 = vadd.f32 %v2800_v52, %v2799_v0  ;;  %v2818_v45 = vrot.slane %v2817_v1, 4  ;;  %v2833_v42 = vsel %vm1262_vm10, %v2775_v8, 0.0  ;;  %v2911_v12 = vpop.permute.xlu0 %2910 }
 0x55d   : > { %v2784_v47 = vrot.slane %v2783_v56, 2  ;;  %v2810_v43 = vadd.f32 %v2809_v57, %v2808_v7  ;;  %v2793_v51 = vrot.slane %v2792_v29, 2  ;;  %v2834_v2 = vsel %vm1262_vm10, %v2776_v9, 0.0  ;;  %v2909_v9 = vpop.permute.xlu1 %2908 }
 0x55e   : > { %v2827_v41 = vrot.slane %v2826_v20, 4  ;;  %v2802_v48 = vrot.slane %v2801_v21, 2  ;;  %v2819_v23 = vadd.f32 %v2818_v45, %v2817_v1  ;;  %v2835_v4 = vadd.f32 %v2834_v2, %v2833_v42 }
 0x55f   : > { %v2785_v16 = vadd.f32 %v2784_v47, %v2783_v56  ;;  %v2811_v3 = vrot.slane %v2810_v43, 2  ;;  %v2794_v18 = vadd.f32 %v2793_v51, %v2792_v29  ;;  %v2842_v14 = vsel %vm1262_vm10, %v2777_v13, 0.0 }
 0x560   : > { %v2828_v30 = vadd.f32 %v2827_v41, %v2826_v20  ;;  %v2803_v37 = vadd.f32 %v2802_v48, %v2801_v21  ;;  %v2820_v40 = vrot.slane %v2819_v23, 2  ;;  %v2836_v15 = vrot.slane %v2835_v4, 4 }
 0x561   : > { %v2786_v59 = vrot.slane %v2785_v16, 1  ;;  %v2812_v63 = vadd.f32 %v2811_v3, %v2810_v43  ;;  %v2795_v58 = vrot.slane %v2794_v18, 1  ;;  %v2843_v17 = vsel %vm1262_vm10, %v2778_v5, 0.0  ;;  %v2913_v43 = vpop.permute.xlu1 %2912 }
 0x562   : > { %v2829_v39 = vrot.slane %v2828_v30, 2  ;;  %v2804_v50 = vrot.slane %v2803_v37, 1  ;;  %v2821_v33 = vadd.f32 %v2820_v40, %v2819_v23  ;;  %v2837_v62 = vadd.f32 %v2836_v15, %v2835_v4 }
 0x563   : > { %v2787_v22 = vadd.f32 %v2786_v59, %v2785_v16  ;;  %v2813_v46 = vrot.slane %v2812_v63, 1  ;;  %v2796_v53 = vadd.f32 %v2795_v58, %v2794_v18  ;;  %v2844_v8 = vadd.f32 %v2843_v17, %v2842_v14  ;;  %v2915_v14 = vpop.permute.xlu0 %2914 }
 0x564   : > { %v2830_v26 = vadd.f32 %v2829_v39, %v2828_v30  ;;  %v2805_v10 = vadd.f32 %v2804_v50, %v2803_v37  ;;  %v2822_v34 = vrot.slane %v2821_v33, 1  ;;  %v2838_v54 = vrot.slane %v2837_v62, 2 }
 0x565   : > { %v2814_v49 = vadd.f32 %v2813_v46, %v2812_v63  ;;  %v2875_v36 = vadd.f32 %v6078_v35, %v2787_v22  ;;  %v2845_v38 = vrot.slane %v2844_v8, 4  ;;  %v6079_v31 = vrot.slane %v6078_v35, 1  ;;  %v2917_v15 = vpop.permute.xlu1 %2916 }
 0x566   : > { %v2831_v32 = vrot.slane %v2830_v26, 1  ;;  %v2823_v6 = vadd.f32 %v2822_v34, %v2821_v33  ;;  %v6080_v55 = vrot.slane %v6078_v35, 2  ;;  %v6081_v0 = vrot.slane %v6078_v35, 3 }
 0x567   : > { %v2876_v24 = vadd.f32 %v6079_v31, %v2796_v53  ;;  %v2839_v11 = vadd.f32 %v2838_v54, %v2837_v62  ;;  %v2846_v60 = vadd.f32 %v2845_v38, %v2844_v8  ;;  %v6082_v56 = vrot.slane %v6078_v35, 4  ;;  %v6094_v54 = vld [vmem:[#allocation45_spill] sm:$0xff]  ;;  %v6095_v38 = vld [vmem:[#allocation50_spill] sm:$0xff] }
 0x568   : > { %v2877_v28 = vadd.f32 %v6080_v55, %v2805_v10  ;;  %v2878_v7 = vadd.f32 %v6081_v0, %v2814_v49  ;;  %v2832_v61 = vadd.f32 %v2831_v32, %v2830_v26  ;;  %v2926_v57 = vmul.f32 %v2903_v44, %v2875_v36  ;;  %v6085_v10 = vld [vmem:[#allocation48_spill] sm:$0xff]  ;;  %v6089_v36 = vld [vmem:[#allocation46_spill] sm:$0xff] }
 0x569   : > { %v2927_v19 = vmul.f32 %v2905_v27, %v2876_v24  ;;  %v2879_v52 = vadd.f32 %v6082_v56, %v2823_v6  ;;  %v2840_v13 = vrot.slane %v2839_v11, 1  ;;  %v2847_v5 = vrot.slane %v2846_v60, 2 }
 0x56a   : > { %v2928_v1 = vmul.f32 %v2907_v25, %v2877_v28  ;;  %v2929_v29 = vmul.f32 %v2909_v9, %v2878_v7  ;;  %v6083_v20 = vrot.slane %v6078_v35, 5  ;;  %v6084_v3 = vrot.slane %v6078_v35, 6 }
 0x56b   : > { %v2944_v21 = vrot.slane %v2927_v19, 7  ;;  %v2930_v45 = vmul.f32 %v2911_v12, %v2879_v52  ;;  %v2841_v42 = vadd.f32 %v2840_v13, %v2839_v11  ;;  %v2848_v27 = vadd.f32 %v2847_v5, %v2846_v60 }
 0x56c   : > { %v2880_v47 = vadd.f32 %v6083_v20, %v2832_v61  ;;  %v2947_v51 = vrot.slane %v2928_v1, 6  ;;  %v2950_v41 = vrot.slane %v2929_v29, 5  ;;  %v2866_v63 = vrot.slane %v6078_v35, 7  ;;  %v6088_v35 = vld [vmem:[#allocation47_spill] sm:$0xff] }
 0x56d   : > { %v2946_v16 = vsel %vm2945_vm14, %v2944_v21, %v2926_v57  ;;  %v2953_v25 = vrot.slane %v2930_v45, 4  ;;  %v2849_v23 = vrot.slane %v2848_v27, 1  ;;  %v2881_v18 = vadd.f32 %v6084_v3, %v2841_v42 }
 0x56e   : > { %v2931_v2 = vmul.f32 %v2913_v43, %v2880_v47  ;;  %v2949_v48 = vsel %vm2948_vm15, %v2947_v51, %v2946_v16  ;;  %v6086_v49 = vmov 0.0   ;;  %v6087_v34 = vmov 0.0|0.0  }
 0x56f   : > { %v2952_v30 = vsel %vm2951_vm0, %v2950_v41, %v2949_v48  ;;  %v2850_v37 = vadd.f32 %v2849_v23, %v2848_v27  ;;  %v2932_v40 = vmul.f32 %v2915_v14, %v2881_v18  ;;  %v6090_v32 = vpack.c.bf16 %v6088_v35, %v6089_v36 }
 0x570   : > { %v2956_v4 = vrot.slane %v2931_v2, 3  ;;  %v2955_v59 = vsel %vm2954_vm1, %v2953_v25, %v2952_v30 }
 0x571   : > { %v2882_v58 = vadd.f32 %v2866_v63, %v2850_v37  ;;  %v2959_v17 = vrot.slane %v2932_v40, 2 }
 0x572   : > { %v2958_v39 = vsel %vm2957_vm4, %v2956_v4, %v2955_v59 }
 0x573   : > { %v2933_v44 = vmul.f32 %v2917_v15, %v2882_v58  ;;  %v2961_v22 = vsel %vm2960_vm5, %v2959_v17, %v2958_v39 }
 0x575   : > { %v2962_v50 = vrot.slane %v2933_v44, 1 }
 0x577   : > { %v2964_v46 = vsel %vm2963_vm6, %v2962_v50, %v2961_v22 }
 0x578   : > { %v2965_v33 = vsel %vm1262_vm10, %v2964_v46, 0 }
 0x579   : > { %v3034_v53 = vand.u32 4294901760, %v2965_v33 }
 0x57b   : > { %v3035_v26 = vsub.f32 %v2965_v33, %v3034_v53 }
 0x57d   : > { %v3036_v62 = vand.u32 4294901760, %v3035_v26 }
 0x57f   : > { %v3037_v8 = vsub.f32 %v3035_v26, %v3036_v62 }
 0x581   : > { %v3038_v9 = vand.u32 4294901760, %v3037_v8 }
 0x583   : > { %3936 = vmatmul.mubr.f32.vlgmr.msra.gmra.mrb[2].mxu1 %v3038_v9 }
 0x584   : > { %3996 = vmatpush3.bf16.msra.mxu1 %v6085_v10  ;;  %3942 = vmatprep.mubr.msk.f32.mxu1 %vm4739_vm3, %v6086_v49 }
 0x585   : > { %3997 = vmatprep.subr.bf16.mxu1 %v6087_v34 }
 0x58b   : > { %3943 = vmatmul.mubr.f32.vlgmr.msra.gmra.mrb[2].mxu1 %v3034_v53 }
 0x58c   : > { %3999 = vmatpush3.bf16.msra.mxu1 %v6090_v32  ;;  %3949 = vmatprep.mubr.msk.f32.mxu1 %vm4739_vm3, %v6086_v49 }
 0x58d   : > { %4000 = vmatprep.subr.bf16.mxu1 %v6087_v34 }
 0x593   : > { %3950 = vmatmul.mubr.f32.vlgmr.msra.gmra.mrb[2].mxu1 %v3035_v26 }
 0x594   : > { %4002 = vmatpush3.bf16.msra.mxu1 %v6094_v54  ;;  %3956 = vmatprep.mubr.msk.f32.mxu1 %vm4739_vm3, %v6086_v49 }
 0x595   : > { %4003 = vmatprep.subr.bf16.mxu1 %v6087_v34 }
 0x59b   : > { %3957 = vmatmul.mubr.f32.vlgmr.msra.gmra.mrb[2].mxu1 %v3036_v62 }
 0x59c   : > { %4005 = vmatpush3.bf16.msra.mxu1 %v6095_v38  ;;  %3963 = vmatprep.mubr.msk.f32.mxu1 %vm4739_vm3, %v6086_v49 }
 0x59d   : > { %4006 = vmatprep.subr.bf16.mxu1 %v6087_v34 }
 0x5a3   : > { %3964 = vmatmul.mubr.f32.vlgmr.msra.gmra.mrb[2].mxu1 %v3034_v53 }
 0x5a4   : > { %4008 = vmatpush3.bf16.msra.mxu1 %v6094_v54  ;;  %3970 = vmatprep.mubr.msk.f32.mxu1 %vm4739_vm3, %v6086_v49 }
 0x5ab   : > { %3971 = vmatmul.mubr.f32.vlgmr.msra.gmra.mrb[2].mxu1 %v3034_v53 }
 0x67e   : > { %v3422_v31 = vpop.f32.mrb[2].mxu1 }
 0x67f   : > { %3426 = vst.msk [vmem:[%s5364_s21] sm:$0xff] %vm735_vm2, %v3422_v31  ;;  %v3972_v24 = vpop.f32.mrb[3].mxu1 }
 0x680   : > { %4578 = shalt.err (!%p4575_p3)
}
 0x681   : > { %s4579_s1 = scalar_lea.hbm %s5844_s10, 128  ;;  %s4583_s30 = scalar_lea.hbm %s6097_s8, 1024 }
 0x682   : > { %p4580_p2 = scmp.ne.s32.totalorder %s5844_s10, %s4579_s1  ;;  %p4584_p10 = scmp.lt.u32.totalorder %s5844_s10, %s6097_s8 }
 0x683   : > { %p4585_p9 = scmp.lt.u32.totalorder %s4583_s30, %s4579_s1  ;;  %p4587_p4 = scmp.lt.u32.totalorder %s4579_s1, %s5844_s10 }
 0x684   : > { %p4581_p0 = pnand %p4580_p2, %p6098_p5 }
 0x685   : > { %p4586_p11 = por %p4585_p9, %p4584_p10 }
 0x686   : > { %p4582_p8 = pneg %p4581_p0 }
 0x687   : > { %p4588_p6 = por %p4587_p4, %p4586_p11 }
 0x689   : > { %p4589_p12 = pnand %p4588_p6, %p4582_p8 }
 0x68b   : > { %4592 = shalt.err (!%p4589_p12)
}
 0x68c   : > { %4070 = dma.vmem_to_hbm [thread:$0]  (%p6098_p5), %s5846_s27, 128, %s5844_s10, %s3428_s14  }
 0x68d PF: > { %s6099_s17 = sld [smem:[#allocation30_spill]]  ;;  %s6100_s20 = sld [smem:[#allocation44_spill]] }
 0x68e   : > { %p4108_p13 = scmp.ge.s32.totalorder %s4723_s25, 2 }
 0x693   : > { %s3457_s19 = sand.u32 1, %s6099_s17   ;;  %p6101_p1 = scmp.ne.s32.totalorder %s6100_s20, 0 }
 0x694   : > { %s3458_s26 = scalar_lea.sflag [#allocation6], %s3457_s19 }
 0x695   : > { %p4104_p7 = pnand %p4108_p13, %p6101_p1 }
 0x697   : > { %4670 = dma.done.wait (!%p4104_p7), %s3458_s26, 128  }
 0x698   : > { %4672 = vsyncadd (!%p4104_p7), %s3458_s26, 4294967168  ;;  %s41_s25 = sadd.s32 1, %s4723_s25   ;;  %s6103_s13 = sld [smem:[#allocation29_spill]] }
 0x699   : > { %p5877_p3 = scmp.ge.s32.totalorder %s41_s25, 10   ;;  %s6104_s16 = sld [smem:[#allocation31_spill]] }
 0x69a   : > { %s6105_s2 = sld [smem:[#allocation38_spill]]  ;;  %s6106_s27 = sld [smem:[#allocation39_spill]] }
 0x69b   : > { %s6107_s10 = sld [smem:[#allocation41_spill]]  ;;  %s6108_s14 = smov %s4683_s15 }
 0x69c   : > { %s6109_s15 = smov %s5103_s6  ;;  %s6110_s17 = smov %s4695_s18 }
 0x69d   : > { %s6111_s18 = smov %s5108_s7  ;;  %s6112_s19 = smov %s4711_s22 }
 0x69e   : > { %s6113_s20 = smov %s4715_s23  ;;  %s6114_s21 = smov %s4719_s24 }
 0x69f   :  { %40 = sbr.rel (!%p5877_p3) target bundleno = 32 (0x20), region = 218 }
 0x6a0   : > { %s6115_s22 = smov %s6105_s2  ;;  %s6116_s23 = smov %s6106_s27 }
 0x6a1   : > { %s6117_s24 = smov %s6107_s10 }
 0x6a6   :  { %3463 = vsyncpa [#allocation5], 1 }
 0x6a7   :  { %3465 = vsyncpa [#allocation5 + $0x1], 1 }
 0x6a8   :  { %3466 = vsyncpa [#allocation8], 1 }
 0x6a9   :  { %3468 = vsyncpa [#allocation8 + $0x1], 1 }
 0x6aa   :  { %3469 = vsyncpa [#allocation11], 1 }
 0x6ab   :  { %3471 = vsyncpa [#allocation11 + $0x1], 1 }
 0x6ac   :  { %3472 = vsyncpa [#allocation14], 1 }
 0x6ad   :  { %3474 = vsyncpa [#allocation14 + $0x1], 1 }
 0x6ae   :  { %3475 = vsyncpa [#allocation17], 1 }
 0x6af   :  { %3477 = vsyncpa [#allocation17 + $0x1], 1 }
 0x6b0   :  { %3478 = vsyncpa [#allocation20], 1 }
 0x6b1   :  { %3480 = vsyncpa [#allocation20 + $0x1], 1 }
 0x6b2   :  { %3481 = vsyncpa [#allocation6], 1 }
 0x6b3   :  { %3483 = vsyncpa [#allocation6 + $0x1], 1 }

</bundles_post_ra>
